<compile_context>
chip_gen: v7x
topology: tpu7x:2x2x1
jax: 0.10.0
libtpu: 0.0.40
codegen_flags: <defaults>
</compile_context>

<pallas_src>
import functools

import jax
import jax.numpy as jnp
from jax.experimental import pallas as pl
from jax.experimental.pallas import tpu as pltpu

C_IN = 3
C_OUT = 3
KH = KW = 3
STRIDE = 2
PAD = 1
EPS = 1e-5                       # BatchNorm2d default eps
K_TAPS = C_IN * KH * KW          # 27
N_BANKS = KH * 2 * C_IN          # 18 tap banks: 3 row offsets x 2 col parities x 3 ci
_MAX_TILE_LANES = 4096
_WORK_TARGET = 32768             # output elems per channel per grid step (amortize ~0.35us)

# kj (conv column offset) -> (column-parity bank, sublane offset inside the bank)
_COL_MAP = ((0, 0), (1, 0), (0, 1))


def _cdiv(a, b):
    return -(-a // b)


@functools.lru_cache(maxsize=1)
def _vmem_limit_bytes():
    """Generation-aware VMEM budget (v5e/v6e: 128 MiB physical, v7x: 64 MiB)."""
    try:
        info = pltpu.get_tpu_info()
        cap = int(getattr(info, "vmem_capacity_bytes", 0) or 0)
    except Exception:
        cap = 0
    if cap <= 0:
        return 32 * 1024 * 1024                      # safe everywhere
    limit = min(int(cap * 0.70), 96 * 1024 * 1024)   # <=~45 MiB on v7x, ~90 MiB on v5e/v6e
    return max(limit, 16 * 1024 * 1024)


def _pick_tile(r, wh, wo):
    """Lane tile TR (multiple of 128) sized by the VMEM budget + a per-step work target."""
    budget = _vmem_limit_bytes() // 2                # headroom for scratch / regalloc
    # fp32, double-buffered tap-bank block + double-buffered output block, per lane
    bytes_per_lane = 4 * 2 * (N_BANKS * wh + C_OUT * wo)
    tr_budget = (budget // max(bytes_per_lane, 1)) // 128 * 128
    tr_work = (_WORK_TARGET // max(wo, 1)) // 128 * 128
    tr = int(min(max(tr_budget, 128), max(tr_work, 128), _MAX_TILE_LANES))
    r128 = _cdiv(r, 128) * 128
    tr = min(tr, r128)
    if tr == r128 and r128 >= 256:
        # guarantee >=2 tiles so the "parallel" axis can shard across 2 TCs (v7x megacore)
        tr = _cdiv(_cdiv(r, 2), 128) * 128
    nt = _cdiv(r128, tr)
    return tr, nt


def _make_conv_relu_stats_kernel(wo, tr, r_true):
    """Conv(3x3,s=2,p=1)+bias+ReLU on one lane tile + per-tile BN partial stats.

    wb_ref    : (3, 28)          BN-folded weights (27 taps) + folded bias (col 27)
    banks_ref : (18, WO+1, TR)   tap banks [(ki*2+colparity)*3+ci, width, lane]
    y_ref     : (3, WO, TR)      un-normalized post-ReLU activations (lane-dense)
    s1/s2_ref : (1, 3, 1)        per-tile per-channel sum / sum of squares
    """

    def kernel(wb_ref, banks_ref, y_ref, s1_ref, s2_ref):
        lane = jax.lax.broadcasted_iota(jnp.int32, (wo, tr), 1)
        valid = (pl.program_id(0) * tr + lane) < r_true        # mask lane padding

        accs = [None] * C_OUT
        for ki in range(KH):                                    # conv row offset (H)
            for kj in range(KW):                                # conv col offset (W)
                cp, off = _COL_MAP[kj]
                for ci in range(C_IN):
                    tap = banks_ref[(ki * 2 + cp) * C_IN + ci, off:off + wo, :]
                    t_idx = ci * (KH * KW) + ki * KW + kj
                    for co in range(C_OUT):
                        w11 = wb_ref[co:co + 1, t_idx:t_idx + 1]      # (1,1) broadcast
                        contrib = tap * w11
                        accs[co] = contrib if accs[co] is None else accs[co] + contrib

        s1s, s2s = [], []
        for co in range(C_OUT):
            bias = wb_ref[co:co + 1, K_TAPS:K_TAPS + 1]               # (1,1) broadcast
            yco = jnp.maximum(accs[co] + bias, 0.0)                   # + bias, ReLU
            y_ref[co] = yco
            ym = jnp.where(valid, yco, 0.0)                           # in-register stats
            s1s.append(jnp.sum(ym, keepdims=True))                    # (1, 1)
            s2s.append(jnp.sum(ym * ym, keepdims=True))               # (1, 1)
        s1_ref[...] = jnp.concatenate(s1s, axis=0)[None]              # (1, 3, 1)
        s2_ref[...] = jnp.concatenate(s2s, axis=0)[None]

    return kernel


def encoder_layer(u, prev_mean, prev_inv, w, b):
    """One Conv2d(3,3,k=3,s=2,p=1) -> ReLU layer on an UN-normalized input `u`, with the
    previous layer's training-mode BatchNorm folded into the conv weights.

    u layout: (C, W, N, H) -- width on sublanes, (batch*rows) merged on lanes downstream.
    Returns (un-normalized ReLU output in (C, Wo, N, Ho) layout, this layer's mean, inv_std).
    """
    _, w_in, n, h_in = u.shape
    ho = (h_in + 2 * PAD - KH) // STRIDE + 1
    wo = (w_in + 2 * PAD - KW) // STRIDE + 1
    wh = wo + 1
    r = n * ho
    m_pix = n * ho * wo

    # ---- fold previous-layer BN ((y - mean) * inv) into this conv's weights & bias ----
    w_f = w * prev_inv.reshape(1, C_IN, 1, 1)
    b_f = b - jnp.sum(w * (prev_mean * prev_inv).reshape(1, C_IN, 1, 1), axis=(1, 2, 3))
    wb = jnp.concatenate([w_f.reshape(C_OUT, K_TAPS), b_f.reshape(C_OUT, 1)], axis=1)

    # ---- tap banks: 3 row offsets x 2 column parities (XLA strided slices, ~1.5x act) ----
    # Pad with prev_mean so padded taps normalize to exactly 0 under the folded BN.
    m4 = prev_mean.reshape(C_IN, 1, 1, 1)
    up = jnp.pad(u - m4, ((0, 0), (PAD, PAD + 1), (0, 0), (PAD, PAD + 1))) + m4
    banks = []
    for ki in range(KH):                                           # row offset along H
        rows = up[:, :, :, ki:ki + 2 * ho - 1:STRIDE]              # (C, Wp, N, Ho)
        for cp in range(2):                                        # column parity along W
            banks.append(rows[:, cp:cp + 2 * wh - 1:STRIDE])       # (C, Wo+1, N, Ho)
    banks = jnp.stack(banks, axis=0).reshape(N_BANKS, wh, r)

    tr, nt = _pick_tile(r, wh, wo)
    rp = nt * tr
    if rp > r:
        banks = jnp.pad(banks, ((0, 0), (0, 0), (0, rp - r)))

    kernel = _make_conv_relu_stats_kernel(wo, tr, r)
    y, s1t, s2t = pl.pallas_call(
        kernel,
        grid=(nt,),
        in_specs=[
            pl.BlockSpec((C_OUT, K_TAPS + 1), lambda i: (0, 0)),       # folded weights
            pl.BlockSpec((N_BANKS, wh, tr), lambda i: (0, 0, i)),      # tap banks
        ],
        out_specs=(
            pl.BlockSpec((C_OUT, wo, tr), lambda i: (0, 0, i)),        # lane-dense y
            pl.BlockSpec((1, C_OUT, 1), lambda i: (i, 0, 0)),          # partial sum
            pl.BlockSpec((1, C_OUT, 1), lambda i: (i, 0, 0)),          # partial sum sq
        ),
        out_shape=(
            jax.ShapeDtypeStruct((C_OUT, wo, rp), jnp.float32),
            jax.ShapeDtypeStruct((nt, C_OUT, 1), jnp.float32),
            jax.ShapeDtypeStruct((nt, C_OUT, 1), jnp.float32),
        ),
        compiler_params=pltpu.CompilerParams(
            dimension_semantics=("parallel",),          # disjoint lane tiles -> 2 TCs on v7x
            vmem_limit_bytes=_vmem_limit_bytes(),
        ),
    )(wb, banks)

    # ---- 6-float XLA glue: biased batch statistics of this layer ----
    s1 = jnp.sum(s1t, axis=(0, 2))
    s2 = jnp.sum(s2t, axis=(0, 2))
    mean = s1 / m_pix
    var = jnp.maximum(s2 / m_pix - mean * mean, 0.0)    # biased var; clamp cancellation
    inv = jax.lax.rsqrt(var + EPS)

    u_next = y[:, :, :r].reshape(C_OUT, wo, n, ho)      # (C, W', N, H') for the next layer
    return u_next, mean, inv


def encoder_forward(x_nchw, params):
    """Full Encoder forward (pooling='no'). x: (N, 3, H, W) -> (N, 3, H/2^L, W/2^L)."""
    # Single NCHW -> (C, W, N, H) relayout; all layers keep the width-on-sublanes,
    # (batch*rows)-on-lanes convention.
    u = jnp.transpose(x_nchw, (1, 3, 0, 2)).astype(jnp.float32)
    mean = jnp.zeros((C_IN,), jnp.float32)   # identity "previous BN" for the first layer
    inv = jnp.ones((C_IN,), jnp.float32)
    # TODO(synk): very deep/tiny trailing layers could be fused into one pallas_call
    # (activation resident in VMEM) to save launch + DMA overhead; not done here.
    for (w, b) in params:
        u, mean, inv = encoder_layer(u, mean, inv, w, b)
    # Last layer's BatchNorm affine, fused into the unavoidable output relayout.
    out = (u - mean.reshape(C_OUT, 1, 1, 1)) * inv.reshape(C_OUT, 1, 1, 1)
    # TODO(synk): pooling='max' / 'avg' branches of the reference module are not
    # implemented (the module default is pooling='no').
    return jnp.transpose(out, (2, 0, 3, 1))   # (N, C, Ho, Wo)


def reference_forward(x_nchw, params):
    """Pure-JAX (XLA) reference of the PyTorch Encoder forward, for verification."""
    y = x_nchw.astype(jnp.float32)
    for (w, b) in params:
        y = jax.lax.conv_general_dilated(
            y, w, window_strides=(STRIDE, STRIDE), padding=((PAD, PAD), (PAD, PAD)),
            dimension_numbers=("NCHW", "OIHW", "NCHW"))
        y = y + b.reshape(1, -1, 1, 1)
        y = jnp.maximum(y, 0.0)
        mean = jnp.mean(y, axis=(0, 2, 3), keepdims=True)
        var = jnp.mean(jnp.square(y - mean), axis=(0, 2, 3), keepdims=True)
        y = (y - mean) * jax.lax.rsqrt(var + EPS)
    return y


def init_params(num_layers, key):
    """Deterministic synthetic init matching PyTorch shapes: w (3,3,3,3), b (3,)."""
    params = []
    bound = 1.0 / (C_IN * KH * KW) ** 0.5     # PyTorch default uniform bound
    for i in range(num_layers):
        kw_, kb_ = jax.random.split(jax.random.fold_in(key, i))
        w = jax.random.uniform(kw_, (C_OUT, C_IN, KH, KW), jnp.float32, -bound, bound)
        b = jax.random.uniform(kb_, (C_OUT,), jnp.float32, -bound, bound)
        params.append((w, b))
    return params


if __name__ == "__main__":
    key = jax.random.PRNGKey(0)
    kx, kp = jax.random.split(key)
    num_layers = 2
    x = jax.random.normal(kx, (2, 3, 16, 16), jnp.float32)   # NCHW, like PyTorch input
    params = init_params(num_layers, kp)

    out = jax.jit(encoder_forward)(x, params)
    out = jax.block_until_ready(out)
    assert out.shape == (2, 3, 16 // 2 ** num_layers, 16 // 2 ** num_layers), out.shape

    ref = jax.block_until_ready(reference_forward(x, params))
    max_err = float(jnp.max(jnp.abs(out - ref)))
    assert jnp.allclose(out, ref, atol=1e-3, rtol=1e-3), max_err

    print("KERNEL_OK")
</pallas_src>

<mosaic_0001>
module attributes {stable_mosaic.version = 11 : i64} {
  func.func @kernel(%arg0: i32, %arg1: memref<3x28xf32, #tpu.memory_space<vmem>>, %arg2: memref<18x9x128xf32, #tpu.memory_space<vmem>>, %arg3: memref<3x8x128xf32, #tpu.memory_space<vmem>>, %arg4: memref<1x3x1xf32, #tpu.memory_space<vmem>>, %arg5: memref<1x3x1xf32, #tpu.memory_space<vmem>>) attributes {dimension_semantics = [#tpu.dimension_semantics<parallel>], iteration_bounds = array<i64: 1>, scalar_prefetch = 0 : i64, scratch_operands = 0 : i64, tpu.core_type = #tpu.core_type<tc>, window_params = [{pipeline_mode = #tpu.pipeline_mode<synchronous>, transform_indices = @transform_0, window_bounds = array<i64: 3, 28>}, {transform_indices = @transform_1, window_bounds = array<i64: 18, 9, 128>}, {transform_indices = @transform_2, window_bounds = array<i64: 3, 8, 128>}, {transform_indices = @transform_3, window_bounds = array<i64: 1, 3, 1>}, {transform_indices = @transform_4, window_bounds = array<i64: 1, 3, 1>}]} {
    %0 = tpu.iota {dimensions = array<i32: 1>} : vector<8x128xi32>
    %c128_i32 = arith.constant 128 : i32
    %1 = arith.muli %arg0, %c128_i32 : i32
    %2 = vector.broadcast %1 : i32 to vector<8x128xi32>
    %3 = arith.addi %2, %0 : vector<8x128xi32>
    %c16_i32 = arith.constant 16 : i32
    %4 = vector.broadcast %c16_i32 : i32 to vector<8x128xi32>
    %5 = arith.cmpi slt, %3, %4 : vector<8x128xi32>
    %c0 = arith.constant 0 : index
    %c0_0 = arith.constant 0 : index
    %c0_1 = arith.constant 0 : index
    %6 = vector.load %arg2[%c0, %c0_0, %c0_1] : memref<18x9x128xf32, #tpu.memory_space<vmem>>, vector<1x8x128xf32>
    %7 = vector.shape_cast %6 : vector<1x8x128xf32> to vector<8x128xf32>
    %c0_2 = arith.constant 0 : index
    %c0_3 = arith.constant 0 : index
    %8 = vector.load %arg1[%c0_2, %c0_3] : memref<3x28xf32, #tpu.memory_space<vmem>>, vector<1x1xf32>
    %9 = vector.broadcast %8 : vector<1x1xf32> to vector<8x128xf32>
    %10 = arith.mulf %7, %9 : vector<8x128xf32>
    %c1 = arith.constant 1 : index
    %c0_4 = arith.constant 0 : index
    %11 = vector.load %arg1[%c1, %c0_4] : memref<3x28xf32, #tpu.memory_space<vmem>>, vector<1x1xf32>
    %12 = vector.broadcast %11 : vector<1x1xf32> to vector<8x128xf32>
    %13 = arith.mulf %7, %12 : vector<8x128xf32>
    %c2 = arith.constant 2 : index
    %c0_5 = arith.constant 0 : index
    %14 = vector.load %arg1[%c2, %c0_5] : memref<3x28xf32, #tpu.memory_space<vmem>>, vector<1x1xf32>
    %15 = vector.broadcast %14 : vector<1x1xf32> to vector<8x128xf32>
    %16 = arith.mulf %7, %15 : vector<8x128xf32>
    %c1_6 = arith.constant 1 : index
    %c0_7 = arith.constant 0 : index
    %c0_8 = arith.constant 0 : index
    %17 = vector.load %arg2[%c1_6, %c0_7, %c0_8] : memref<18x9x128xf32, #tpu.memory_space<vmem>>, vector<1x8x128xf32>
    %18 = vector.shape_cast %17 : vector<1x8x128xf32> to vector<8x128xf32>
    %c0_9 = arith.constant 0 : index
    %c9 = arith.constant 9 : index
    %19 = vector.load %arg1[%c0_9, %c9] : memref<3x28xf32, #tpu.memory_space<vmem>>, vector<1x1xf32>
    %20 = vector.broadcast %19 : vector<1x1xf32> to vector<8x128xf32>
    %21 = arith.mulf %18, %20 : vector<8x128xf32>
    %22 = arith.addf %10, %21 : vector<8x128xf32>
    %c1_10 = arith.constant 1 : index
    %c9_11 = arith.constant 9 : index
    %23 = vector.load %arg1[%c1_10, %c9_11] : memref<3x28xf32, #tpu.memory_space<vmem>>, vector<1x1xf32>
    %24 = vector.broadcast %23 : vector<1x1xf32> to vector<8x128xf32>
    %25 = arith.mulf %18, %24 : vector<8x128xf32>
    %26 = arith.addf %13, %25 : vector<8x128xf32>
    %c2_12 = arith.constant 2 : index
    %c9_13 = arith.constant 9 : index
    %27 = vector.load %arg1[%c2_12, %c9_13] : memref<3x28xf32, #tpu.memory_space<vmem>>, vector<1x1xf32>
    %28 = vector.broadcast %27 : vector<1x1xf32> to vector<8x128xf32>
    %29 = arith.mulf %18, %28 : vector<8x128xf32>
    %30 = arith.addf %16, %29 : vector<8x128xf32>
    %c2_14 = arith.constant 2 : index
    %c0_15 = arith.constant 0 : index
    %c0_16 = arith.constant 0 : index
    %31 = vector.load %arg2[%c2_14, %c0_15, %c0_16] : memref<18x9x128xf32, #tpu.memory_space<vmem>>, vector<1x8x128xf32>
    %32 = vector.shape_cast %31 : vector<1x8x128xf32> to vector<8x128xf32>
    %c0_17 = arith.constant 0 : index
    %c18 = arith.constant 18 : index
    %33 = vector.load %arg1[%c0_17, %c18] : memref<3x28xf32, #tpu.memory_space<vmem>>, vector<1x1xf32>
    %34 = vector.broadcast %33 : vector<1x1xf32> to vector<8x128xf32>
    %35 = arith.mulf %32, %34 : vector<8x128xf32>
    %36 = arith.addf %22, %35 : vector<8x128xf32>
    %c1_18 = arith.constant 1 : index
    %c18_19 = arith.constant 18 : index
    %37 = vector.load %arg1[%c1_18, %c18_19] : memref<3x28xf32, #tpu.memory_space<vmem>>, vector<1x1xf32>
    %38 = vector.broadcast %37 : vector<1x1xf32> to vector<8x128xf32>
    %39 = arith.mulf %32, %38 : vector<8x128xf32>
    %40 = arith.addf %26, %39 : vector<8x128xf32>
    %c2_20 = arith.constant 2 : index
    %c18_21 = arith.constant 18 : index
    %41 = vector.load %arg1[%c2_20, %c18_21] : memref<3x28xf32, #tpu.memory_space<vmem>>, vector<1x1xf32>
    %42 = vector.broadcast %41 : vector<1x1xf32> to vector<8x128xf32>
    %43 = arith.mulf %32, %42 : vector<8x128xf32>
    %44 = arith.addf %30, %43 : vector<8x128xf32>
    %c3 = arith.constant 3 : index
    %c0_22 = arith.constant 0 : index
    %c0_23 = arith.constant 0 : index
    %45 = vector.load %arg2[%c3, %c0_22, %c0_23] : memref<18x9x128xf32, #tpu.memory_space<vmem>>, vector<1x8x128xf32>
    %46 = vector.shape_cast %45 : vector<1x8x128xf32> to vector<8x128xf32>
    %c0_24 = arith.constant 0 : index
    %c1_25 = arith.constant 1 : index
    %47 = vector.load %arg1[%c0_24, %c1_25] : memref<3x28xf32, #tpu.memory_space<vmem>>, vector<1x1xf32>
    %48 = vector.broadcast %47 : vector<1x1xf32> to vector<8x128xf32>
    %49 = arith.mulf %46, %48 : vector<8x128xf32>
    %50 = arith.addf %36, %49 : vector<8x128xf32>
    %c1_26 = arith.constant 1 : index
    %c1_27 = arith.constant 1 : index
    %51 = vector.load %arg1[%c1_26, %c1_27] : memref<3x28xf32, #tpu.memory_space<vmem>>, vector<1x1xf32>
    %52 = vector.broadcast %51 : vector<1x1xf32> to vector<8x128xf32>
    %53 = arith.mulf %46, %52 : vector<8x128xf32>
    %54 = arith.addf %40, %53 : vector<8x128xf32>
    %c2_28 = arith.constant 2 : index
    %c1_29 = arith.constant 1 : index
    %55 = vector.load %arg1[%c2_28, %c1_29] : memref<3x28xf32, #tpu.memory_space<vmem>>, vector<1x1xf32>
    %56 = vector.broadcast %55 : vector<1x1xf32> to vector<8x128xf32>
    %57 = arith.mulf %46, %56 : vector<8x128xf32>
    %58 = arith.addf %44, %57 : vector<8x128xf32>
    %c4 = arith.constant 4 : index
    %c0_30 = arith.constant 0 : index
    %c0_31 = arith.constant 0 : index
    %59 = vector.load %arg2[%c4, %c0_30, %c0_31] : memref<18x9x128xf32, #tpu.memory_space<vmem>>, vector<1x8x128xf32>
    %60 = vector.shape_cast %59 : vector<1x8x128xf32> to vector<8x128xf32>
    %c0_32 = arith.constant 0 : index
    %c10 = arith.constant 10 : index
    %61 = vector.load %arg1[%c0_32, %c10] : memref<3x28xf32, #tpu.memory_space<vmem>>, vector<1x1xf32>
    %62 = vector.broadcast %61 : vector<1x1xf32> to vector<8x128xf32>
    %63 = arith.mulf %60, %62 : vector<8x128xf32>
    %64 = arith.addf %50, %63 : vector<8x128xf32>
    %c1_33 = arith.constant 1 : index
    %c10_34 = arith.constant 10 : index
    %65 = vector.load %arg1[%c1_33, %c10_34] : memref<3x28xf32, #tpu.memory_space<vmem>>, vector<1x1xf32>
    %66 = vector.broadcast %65 : vector<1x1xf32> to vector<8x128xf32>
    %67 = arith.mulf %60, %66 : vector<8x128xf32>
    %68 = arith.addf %54, %67 : vector<8x128xf32>
    %c2_35 = arith.constant 2 : index
    %c10_36 = arith.constant 10 : index
    %69 = vector.load %arg1[%c2_35, %c10_36] : memref<3x28xf32, #tpu.memory_space<vmem>>, vector<1x1xf32>
    %70 = vector.broadcast %69 : vector<1x1xf32> to vector<8x128xf32>
    %71 = arith.mulf %60, %70 : vector<8x128xf32>
    %72 = arith.addf %58, %71 : vector<8x128xf32>
    %c5 = arith.constant 5 : index
    %c0_37 = arith.constant 0 : index
    %c0_38 = arith.constant 0 : index
    %73 = vector.load %arg2[%c5, %c0_37, %c0_38] : memref<18x9x128xf32, #tpu.memory_space<vmem>>, vector<1x8x128xf32>
    %74 = vector.shape_cast %73 : vector<1x8x128xf32> to vector<8x128xf32>
    %c0_39 = arith.constant 0 : index
    %c19 = arith.constant 19 : index
    %75 = vector.load %arg1[%c0_39, %c19] : memref<3x28xf32, #tpu.memory_space<vmem>>, vector<1x1xf32>
    %76 = vector.broadcast %75 : vector<1x1xf32> to vector<8x128xf32>
    %77 = arith.mulf %74, %76 : vector<8x128xf32>
    %78 = arith.addf %64, %77 : vector<8x128xf32>
    %c1_40 = arith.constant 1 : index
    %c19_41 = arith.constant 19 : index
    %79 = vector.load %arg1[%c1_40, %c19_41] : memref<3x28xf32, #tpu.memory_space<vmem>>, vector<1x1xf32>
    %80 = vector.broadcast %79 : vector<1x1xf32> to vector<8x128xf32>
    %81 = arith.mulf %74, %80 : vector<8x128xf32>
    %82 = arith.addf %68, %81 : vector<8x128xf32>
    %c2_42 = arith.constant 2 : index
    %c19_43 = arith.constant 19 : index
    %83 = vector.load %arg1[%c2_42, %c19_43] : memref<3x28xf32, #tpu.memory_space<vmem>>, vector<1x1xf32>
    %84 = vector.broadcast %83 : vector<1x1xf32> to vector<8x128xf32>
    %85 = arith.mulf %74, %84 : vector<8x128xf32>
    %86 = arith.addf %72, %85 : vector<8x128xf32>
    %c0_44 = arith.constant 0 : index
    %c1_45 = arith.constant 1 : index
    %c0_46 = arith.constant 0 : index
    %87 = vector.load %arg2[%c0_44, %c1_45, %c0_46] : memref<18x9x128xf32, #tpu.memory_space<vmem>>, vector<1x8x128xf32>
    %88 = vector.shape_cast %87 : vector<1x8x128xf32> to vector<8x128xf32>
    %c0_47 = arith.constant 0 : index
    %c2_48 = arith.constant 2 : index
    %89 = vector.load %arg1[%c0_47, %c2_48] : memref<3x28xf32, #tpu.memory_space<vmem>>, vector<1x1xf32>
    %90 = vector.broadcast %89 : vector<1x1xf32> to vector<8x128xf32>
    %91 = arith.mulf %88, %90 : vector<8x128xf32>
    %92 = arith.addf %78, %91 : vector<8x128xf32>
    %c1_49 = arith.constant 1 : index
    %c2_50 = arith.constant 2 : index
    %93 = vector.load %arg1[%c1_49, %c2_50] : memref<3x28xf32, #tpu.memory_space<vmem>>, vector<1x1xf32>
    %94 = vector.broadcast %93 : vector<1x1xf32> to vector<8x128xf32>
    %95 = arith.mulf %88, %94 : vector<8x128xf32>
    %96 = arith.addf %82, %95 : vector<8x128xf32>
    %c2_51 = arith.constant 2 : index
    %c2_52 = arith.constant 2 : index
    %97 = vector.load %arg1[%c2_51, %c2_52] : memref<3x28xf32, #tpu.memory_space<vmem>>, vector<1x1xf32>
    %98 = vector.broadcast %97 : vector<1x1xf32> to vector<8x128xf32>
    %99 = arith.mulf %88, %98 : vector<8x128xf32>
    %100 = arith.addf %86, %99 : vector<8x128xf32>
    %c1_53 = arith.constant 1 : index
    %c1_54 = arith.constant 1 : index
    %c0_55 = arith.constant 0 : index
    %101 = vector.load %arg2[%c1_53, %c1_54, %c0_55] : memref<18x9x128xf32, #tpu.memory_space<vmem>>, vector<1x8x128xf32>
    %102 = vector.shape_cast %101 : vector<1x8x128xf32> to vector<8x128xf32>
    %c0_56 = arith.constant 0 : index
    %c11 = arith.constant 11 : index
    %103 = vector.load %arg1[%c0_56, %c11] : memref<3x28xf32, #tpu.memory_space<vmem>>, vector<1x1xf32>
    %104 = vector.broadcast %103 : vector<1x1xf32> to vector<8x128xf32>
    %105 = arith.mulf %102, %104 : vector<8x128xf32>
    %106 = arith.addf %92, %105 : vector<8x128xf32>
    %c1_57 = arith.constant 1 : index
    %c11_58 = arith.constant 11 : index
    %107 = vector.load %arg1[%c1_57, %c11_58] : memref<3x28xf32, #tpu.memory_space<vmem>>, vector<1x1xf32>
    %108 = vector.broadcast %107 : vector<1x1xf32> to vector<8x128xf32>
    %109 = arith.mulf %102, %108 : vector<8x128xf32>
    %110 = arith.addf %96, %109 : vector<8x128xf32>
    %c2_59 = arith.constant 2 : index
    %c11_60 = arith.constant 11 : index
    %111 = vector.load %arg1[%c2_59, %c11_60] : memref<3x28xf32, #tpu.memory_space<vmem>>, vector<1x1xf32>
    %112 = vector.broadcast %111 : vector<1x1xf32> to vector<8x128xf32>
    %113 = arith.mulf %102, %112 : vector<8x128xf32>
    %114 = arith.addf %100, %113 : vector<8x128xf32>
    %c2_61 = arith.constant 2 : index
    %c1_62 = arith.constant 1 : index
    %c0_63 = arith.constant 0 : index
    %115 = vector.load %arg2[%c2_61, %c1_62, %c0_63] : memref<18x9x128xf32, #tpu.memory_space<vmem>>, vector<1x8x128xf32>
    %116 = vector.shape_cast %115 : vector<1x8x128xf32> to vector<8x128xf32>
    %c0_64 = arith.constant 0 : index
    %c20 = arith.constant 20 : index
    %117 = vector.load %arg1[%c0_64, %c20] : memref<3x28xf32, #tpu.memory_space<vmem>>, vector<1x1xf32>
    %118 = vector.broadcast %117 : vector<1x1xf32> to vector<8x128xf32>
    %119 = arith.mulf %116, %118 : vector<8x128xf32>
    %120 = arith.addf %106, %119 : vector<8x128xf32>
    %c1_65 = arith.constant 1 : index
    %c20_66 = arith.constant 20 : index
    %121 = vector.load %arg1[%c1_65, %c20_66] : memref<3x28xf32, #tpu.memory_space<vmem>>, vector<1x1xf32>
    %122 = vector.broadcast %121 : vector<1x1xf32> to vector<8x128xf32>
    %123 = arith.mulf %116, %122 : vector<8x128xf32>
    %124 = arith.addf %110, %123 : vector<8x128xf32>
    %c2_67 = arith.constant 2 : index
    %c20_68 = arith.constant 20 : index
    %125 = vector.load %arg1[%c2_67, %c20_68] : memref<3x28xf32, #tpu.memory_space<vmem>>, vector<1x1xf32>
    %126 = vector.broadcast %125 : vector<1x1xf32> to vector<8x128xf32>
    %127 = arith.mulf %116, %126 : vector<8x128xf32>
    %128 = arith.addf %114, %127 : vector<8x128xf32>
    %c6 = arith.constant 6 : index
    %c0_69 = arith.constant 0 : index
    %c0_70 = arith.constant 0 : index
    %129 = vector.load %arg2[%c6, %c0_69, %c0_70] : memref<18x9x128xf32, #tpu.memory_space<vmem>>, vector<1x8x128xf32>
    %130 = vector.shape_cast %129 : vector<1x8x128xf32> to vector<8x128xf32>
    %c0_71 = arith.constant 0 : index
    %c3_72 = arith.constant 3 : index
    %131 = vector.load %arg1[%c0_71, %c3_72] : memref<3x28xf32, #tpu.memory_space<vmem>>, vector<1x1xf32>
    %132 = vector.broadcast %131 : vector<1x1xf32> to vector<8x128xf32>
    %133 = arith.mulf %130, %132 : vector<8x128xf32>
    %134 = arith.addf %120, %133 : vector<8x128xf32>
    %c1_73 = arith.constant 1 : index
    %c3_74 = arith.constant 3 : index
    %135 = vector.load %arg1[%c1_73, %c3_74] : memref<3x28xf32, #tpu.memory_space<vmem>>, vector<1x1xf32>
    %136 = vector.broadcast %135 : vector<1x1xf32> to vector<8x128xf32>
    %137 = arith.mulf %130, %136 : vector<8x128xf32>
    %138 = arith.addf %124, %137 : vector<8x128xf32>
    %c2_75 = arith.constant 2 : index
    %c3_76 = arith.constant 3 : index
    %139 = vector.load %arg1[%c2_75, %c3_76] : memref<3x28xf32, #tpu.memory_space<vmem>>, vector<1x1xf32>
    %140 = vector.broadcast %139 : vector<1x1xf32> to vector<8x128xf32>
    %141 = arith.mulf %130, %140 : vector<8x128xf32>
    %142 = arith.addf %128, %141 : vector<8x128xf32>
    %c7 = arith.constant 7 : index
    %c0_77 = arith.constant 0 : index
    %c0_78 = arith.constant 0 : index
    %143 = vector.load %arg2[%c7, %c0_77, %c0_78] : memref<18x9x128xf32, #tpu.memory_space<vmem>>, vector<1x8x128xf32>
    %144 = vector.shape_cast %143 : vector<1x8x128xf32> to vector<8x128xf32>
    %c0_79 = arith.constant 0 : index
    %c12 = arith.constant 12 : index
    %145 = vector.load %arg1[%c0_79, %c12] : memref<3x28xf32, #tpu.memory_space<vmem>>, vector<1x1xf32>
    %146 = vector.broadcast %145 : vector<1x1xf32> to vector<8x128xf32>
    %147 = arith.mulf %144, %146 : vector<8x128xf32>
    %148 = arith.addf %134, %147 : vector<8x128xf32>
    %c1_80 = arith.constant 1 : index
    %c12_81 = arith.constant 12 : index
    %149 = vector.load %arg1[%c1_80, %c12_81] : memref<3x28xf32, #tpu.memory_space<vmem>>, vector<1x1xf32>
    %150 = vector.broadcast %149 : vector<1x1xf32> to vector<8x128xf32>
    %151 = arith.mulf %144, %150 : vector<8x128xf32>
    %152 = arith.addf %138, %151 : vector<8x128xf32>
    %c2_82 = arith.constant 2 : index
    %c12_83 = arith.constant 12 : index
    %153 = vector.load %arg1[%c2_82, %c12_83] : memref<3x28xf32, #tpu.memory_space<vmem>>, vector<1x1xf32>
    %154 = vector.broadcast %153 : vector<1x1xf32> to vector<8x128xf32>
    %155 = arith.mulf %144, %154 : vector<8x128xf32>
    %156 = arith.addf %142, %155 : vector<8x128xf32>
    %c8 = arith.constant 8 : index
    %c0_84 = arith.constant 0 : index
    %c0_85 = arith.constant 0 : index
    %157 = vector.load %arg2[%c8, %c0_84, %c0_85] : memref<18x9x128xf32, #tpu.memory_space<vmem>>, vector<1x8x128xf32>
    %158 = vector.shape_cast %157 : vector<1x8x128xf32> to vector<8x128xf32>
    %c0_86 = arith.constant 0 : index
    %c21 = arith.constant 21 : index
    %159 = vector.load %arg1[%c0_86, %c21] : memref<3x28xf32, #tpu.memory_space<vmem>>, vector<1x1xf32>
    %160 = vector.broadcast %159 : vector<1x1xf32> to vector<8x128xf32>
    %161 = arith.mulf %158, %160 : vector<8x128xf32>
    %162 = arith.addf %148, %161 : vector<8x128xf32>
    %c1_87 = arith.constant 1 : index
    %c21_88 = arith.constant 21 : index
    %163 = vector.load %arg1[%c1_87, %c21_88] : memref<3x28xf32, #tpu.memory_space<vmem>>, vector<1x1xf32>
    %164 = vector.broadcast %163 : vector<1x1xf32> to vector<8x128xf32>
    %165 = arith.mulf %158, %164 : vector<8x128xf32>
    %166 = arith.addf %152, %165 : vector<8x128xf32>
    %c2_89 = arith.constant 2 : index
    %c21_90 = arith.constant 21 : index
    %167 = vector.load %arg1[%c2_89, %c21_90] : memref<3x28xf32, #tpu.memory_space<vmem>>, vector<1x1xf32>
    %168 = vector.broadcast %167 : vector<1x1xf32> to vector<8x128xf32>
    %169 = arith.mulf %158, %168 : vector<8x128xf32>
    %170 = arith.addf %156, %169 : vector<8x128xf32>
    %c9_91 = arith.constant 9 : index
    %c0_92 = arith.constant 0 : index
    %c0_93 = arith.constant 0 : index
    %171 = vector.load %arg2[%c9_91, %c0_92, %c0_93] : memref<18x9x128xf32, #tpu.memory_space<vmem>>, vector<1x8x128xf32>
    %172 = vector.shape_cast %171 : vector<1x8x128xf32> to vector<8x128xf32>
    %c0_94 = arith.constant 0 : index
    %c4_95 = arith.constant 4 : index
    %173 = vector.load %arg1[%c0_94, %c4_95] : memref<3x28xf32, #tpu.memory_space<vmem>>, vector<1x1xf32>
    %174 = vector.broadcast %173 : vector<1x1xf32> to vector<8x128xf32>
    %175 = arith.mulf %172, %174 : vector<8x128xf32>
    %176 = arith.addf %162, %175 : vector<8x128xf32>
    %c1_96 = arith.constant 1 : index
    %c4_97 = arith.constant 4 : index
    %177 = vector.load %arg1[%c1_96, %c4_97] : memref<3x28xf32, #tpu.memory_space<vmem>>, vector<1x1xf32>
    %178 = vector.broadcast %177 : vector<1x1xf32> to vector<8x128xf32>
    %179 = arith.mulf %172, %178 : vector<8x128xf32>
    %180 = arith.addf %166, %179 : vector<8x128xf32>
    %c2_98 = arith.constant 2 : index
    %c4_99 = arith.constant 4 : index
    %181 = vector.load %arg1[%c2_98, %c4_99] : memref<3x28xf32, #tpu.memory_space<vmem>>, vector<1x1xf32>
    %182 = vector.broadcast %181 : vector<1x1xf32> to vector<8x128xf32>
    %183 = arith.mulf %172, %182 : vector<8x128xf32>
    %184 = arith.addf %170, %183 : vector<8x128xf32>
    %c10_100 = arith.constant 10 : index
    %c0_101 = arith.constant 0 : index
    %c0_102 = arith.constant 0 : index
    %185 = vector.load %arg2[%c10_100, %c0_101, %c0_102] : memref<18x9x128xf32, #tpu.memory_space<vmem>>, vector<1x8x128xf32>
    %186 = vector.shape_cast %185 : vector<1x8x128xf32> to vector<8x128xf32>
    %c0_103 = arith.constant 0 : index
    %c13 = arith.constant 13 : index
    %187 = vector.load %arg1[%c0_103, %c13] : memref<3x28xf32, #tpu.memory_space<vmem>>, vector<1x1xf32>
    %188 = vector.broadcast %187 : vector<1x1xf32> to vector<8x128xf32>
    %189 = arith.mulf %186, %188 : vector<8x128xf32>
    %190 = arith.addf %176, %189 : vector<8x128xf32>
    %c1_104 = arith.constant 1 : index
    %c13_105 = arith.constant 13 : index
    %191 = vector.load %arg1[%c1_104, %c13_105] : memref<3x28xf32, #tpu.memory_space<vmem>>, vector<1x1xf32>
    %192 = vector.broadcast %191 : vector<1x1xf32> to vector<8x128xf32>
    %193 = arith.mulf %186, %192 : vector<8x128xf32>
    %194 = arith.addf %180, %193 : vector<8x128xf32>
    %c2_106 = arith.constant 2 : index
    %c13_107 = arith.constant 13 : index
    %195 = vector.load %arg1[%c2_106, %c13_107] : memref<3x28xf32, #tpu.memory_space<vmem>>, vector<1x1xf32>
    %196 = vector.broadcast %195 : vector<1x1xf32> to vector<8x128xf32>
    %197 = arith.mulf %186, %196 : vector<8x128xf32>
    %198 = arith.addf %184, %197 : vector<8x128xf32>
    %c11_108 = arith.constant 11 : index
    %c0_109 = arith.constant 0 : index
    %c0_110 = arith.constant 0 : index
    %199 = vector.load %arg2[%c11_108, %c0_109, %c0_110] : memref<18x9x128xf32, #tpu.memory_space<vmem>>, vector<1x8x128xf32>
    %200 = vector.shape_cast %199 : vector<1x8x128xf32> to vector<8x128xf32>
    %c0_111 = arith.constant 0 : index
    %c22 = arith.constant 22 : index
    %201 = vector.load %arg1[%c0_111, %c22] : memref<3x28xf32, #tpu.memory_space<vmem>>, vector<1x1xf32>
    %202 = vector.broadcast %201 : vector<1x1xf32> to vector<8x128xf32>
    %203 = arith.mulf %200, %202 : vector<8x128xf32>
    %204 = arith.addf %190, %203 : vector<8x128xf32>
    %c1_112 = arith.constant 1 : index
    %c22_113 = arith.constant 22 : index
    %205 = vector.load %arg1[%c1_112, %c22_113] : memref<3x28xf32, #tpu.memory_space<vmem>>, vector<1x1xf32>
    %206 = vector.broadcast %205 : vector<1x1xf32> to vector<8x128xf32>
    %207 = arith.mulf %200, %206 : vector<8x128xf32>
    %208 = arith.addf %194, %207 : vector<8x128xf32>
    %c2_114 = arith.constant 2 : index
    %c22_115 = arith.constant 22 : index
    %209 = vector.load %arg1[%c2_114, %c22_115] : memref<3x28xf32, #tpu.memory_space<vmem>>, vector<1x1xf32>
    %210 = vector.broadcast %209 : vector<1x1xf32> to vector<8x128xf32>
    %211 = arith.mulf %200, %210 : vector<8x128xf32>
    %212 = arith.addf %198, %211 : vector<8x128xf32>
    %c6_116 = arith.constant 6 : index
    %c1_117 = arith.constant 1 : index
    %c0_118 = arith.constant 0 : index
    %213 = vector.load %arg2[%c6_116, %c1_117, %c0_118] : memref<18x9x128xf32, #tpu.memory_space<vmem>>, vector<1x8x128xf32>
    %214 = vector.shape_cast %213 : vector<1x8x128xf32> to vector<8x128xf32>
    %c0_119 = arith.constant 0 : index
    %c5_120 = arith.constant 5 : index
    %215 = vector.load %arg1[%c0_119, %c5_120] : memref<3x28xf32, #tpu.memory_space<vmem>>, vector<1x1xf32>
    %216 = vector.broadcast %215 : vector<1x1xf32> to vector<8x128xf32>
    %217 = arith.mulf %214, %216 : vector<8x128xf32>
    %218 = arith.addf %204, %217 : vector<8x128xf32>
    %c1_121 = arith.constant 1 : index
    %c5_122 = arith.constant 5 : index
    %219 = vector.load %arg1[%c1_121, %c5_122] : memref<3x28xf32, #tpu.memory_space<vmem>>, vector<1x1xf32>
    %220 = vector.broadcast %219 : vector<1x1xf32> to vector<8x128xf32>
    %221 = arith.mulf %214, %220 : vector<8x128xf32>
    %222 = arith.addf %208, %221 : vector<8x128xf32>
    %c2_123 = arith.constant 2 : index
    %c5_124 = arith.constant 5 : index
    %223 = vector.load %arg1[%c2_123, %c5_124] : memref<3x28xf32, #tpu.memory_space<vmem>>, vector<1x1xf32>
    %224 = vector.broadcast %223 : vector<1x1xf32> to vector<8x128xf32>
    %225 = arith.mulf %214, %224 : vector<8x128xf32>
    %226 = arith.addf %212, %225 : vector<8x128xf32>
    %c7_125 = arith.constant 7 : index
    %c1_126 = arith.constant 1 : index
    %c0_127 = arith.constant 0 : index
    %227 = vector.load %arg2[%c7_125, %c1_126, %c0_127] : memref<18x9x128xf32, #tpu.memory_space<vmem>>, vector<1x8x128xf32>
    %228 = vector.shape_cast %227 : vector<1x8x128xf32> to vector<8x128xf32>
    %c0_128 = arith.constant 0 : index
    %c14 = arith.constant 14 : index
    %229 = vector.load %arg1[%c0_128, %c14] : memref<3x28xf32, #tpu.memory_space<vmem>>, vector<1x1xf32>
    %230 = vector.broadcast %229 : vector<1x1xf32> to vector<8x128xf32>
    %231 = arith.mulf %228, %230 : vector<8x128xf32>
    %232 = arith.addf %218, %231 : vector<8x128xf32>
    %c1_129 = arith.constant 1 : index
    %c14_130 = arith.constant 14 : index
    %233 = vector.load %arg1[%c1_129, %c14_130] : memref<3x28xf32, #tpu.memory_space<vmem>>, vector<1x1xf32>
    %234 = vector.broadcast %233 : vector<1x1xf32> to vector<8x128xf32>
    %235 = arith.mulf %228, %234 : vector<8x128xf32>
    %236 = arith.addf %222, %235 : vector<8x128xf32>
    %c2_131 = arith.constant 2 : index
    %c14_132 = arith.constant 14 : index
    %237 = vector.load %arg1[%c2_131, %c14_132] : memref<3x28xf32, #tpu.memory_space<vmem>>, vector<1x1xf32>
    %238 = vector.broadcast %237 : vector<1x1xf32> to vector<8x128xf32>
    %239 = arith.mulf %228, %238 : vector<8x128xf32>
    %240 = arith.addf %226, %239 : vector<8x128xf32>
    %c8_133 = arith.constant 8 : index
    %c1_134 = arith.constant 1 : index
    %c0_135 = arith.constant 0 : index
    %241 = vector.load %arg2[%c8_133, %c1_134, %c0_135] : memref<18x9x128xf32, #tpu.memory_space<vmem>>, vector<1x8x128xf32>
    %242 = vector.shape_cast %241 : vector<1x8x128xf32> to vector<8x128xf32>
    %c0_136 = arith.constant 0 : index
    %c23 = arith.constant 23 : index
    %243 = vector.load %arg1[%c0_136, %c23] : memref<3x28xf32, #tpu.memory_space<vmem>>, vector<1x1xf32>
    %244 = vector.broadcast %243 : vector<1x1xf32> to vector<8x128xf32>
    %245 = arith.mulf %242, %244 : vector<8x128xf32>
    %246 = arith.addf %232, %245 : vector<8x128xf32>
    %c1_137 = arith.constant 1 : index
    %c23_138 = arith.constant 23 : index
    %247 = vector.load %arg1[%c1_137, %c23_138] : memref<3x28xf32, #tpu.memory_space<vmem>>, vector<1x1xf32>
    %248 = vector.broadcast %247 : vector<1x1xf32> to vector<8x128xf32>
    %249 = arith.mulf %242, %248 : vector<8x128xf32>
    %250 = arith.addf %236, %249 : vector<8x128xf32>
    %c2_139 = arith.constant 2 : index
    %c23_140 = arith.constant 23 : index
    %251 = vector.load %arg1[%c2_139, %c23_140] : memref<3x28xf32, #tpu.memory_space<vmem>>, vector<1x1xf32>
    %252 = vector.broadcast %251 : vector<1x1xf32> to vector<8x128xf32>
    %253 = arith.mulf %242, %252 : vector<8x128xf32>
    %254 = arith.addf %240, %253 : vector<8x128xf32>
    %c12_141 = arith.constant 12 : index
    %c0_142 = arith.constant 0 : index
    %c0_143 = arith.constant 0 : index
    %255 = vector.load %arg2[%c12_141, %c0_142, %c0_143] : memref<18x9x128xf32, #tpu.memory_space<vmem>>, vector<1x8x128xf32>
    %256 = vector.shape_cast %255 : vector<1x8x128xf32> to vector<8x128xf32>
    %c0_144 = arith.constant 0 : index
    %c6_145 = arith.constant 6 : index
    %257 = vector.load %arg1[%c0_144, %c6_145] : memref<3x28xf32, #tpu.memory_space<vmem>>, vector<1x1xf32>
    %258 = vector.broadcast %257 : vector<1x1xf32> to vector<8x128xf32>
    %259 = arith.mulf %256, %258 : vector<8x128xf32>
    %260 = arith.addf %246, %259 : vector<8x128xf32>
    %c1_146 = arith.constant 1 : index
    %c6_147 = arith.constant 6 : index
    %261 = vector.load %arg1[%c1_146, %c6_147] : memref<3x28xf32, #tpu.memory_space<vmem>>, vector<1x1xf32>
    %262 = vector.broadcast %261 : vector<1x1xf32> to vector<8x128xf32>
    %263 = arith.mulf %256, %262 : vector<8x128xf32>
    %264 = arith.addf %250, %263 : vector<8x128xf32>
    %c2_148 = arith.constant 2 : index
    %c6_149 = arith.constant 6 : index
    %265 = vector.load %arg1[%c2_148, %c6_149] : memref<3x28xf32, #tpu.memory_space<vmem>>, vector<1x1xf32>
    %266 = vector.broadcast %265 : vector<1x1xf32> to vector<8x128xf32>
    %267 = arith.mulf %256, %266 : vector<8x128xf32>
    %268 = arith.addf %254, %267 : vector<8x128xf32>
    %c13_150 = arith.constant 13 : index
    %c0_151 = arith.constant 0 : index
    %c0_152 = arith.constant 0 : index
    %269 = vector.load %arg2[%c13_150, %c0_151, %c0_152] : memref<18x9x128xf32, #tpu.memory_space<vmem>>, vector<1x8x128xf32>
    %270 = vector.shape_cast %269 : vector<1x8x128xf32> to vector<8x128xf32>
    %c0_153 = arith.constant 0 : index
    %c15 = arith.constant 15 : index
    %271 = vector.load %arg1[%c0_153, %c15] : memref<3x28xf32, #tpu.memory_space<vmem>>, vector<1x1xf32>
    %272 = vector.broadcast %271 : vector<1x1xf32> to vector<8x128xf32>
    %273 = arith.mulf %270, %272 : vector<8x128xf32>
    %274 = arith.addf %260, %273 : vector<8x128xf32>
    %c1_154 = arith.constant 1 : index
    %c15_155 = arith.constant 15 : index
    %275 = vector.load %arg1[%c1_154, %c15_155] : memref<3x28xf32, #tpu.memory_space<vmem>>, vector<1x1xf32>
    %276 = vector.broadcast %275 : vector<1x1xf32> to vector<8x128xf32>
    %277 = arith.mulf %270, %276 : vector<8x128xf32>
    %278 = arith.addf %264, %277 : vector<8x128xf32>
    %c2_156 = arith.constant 2 : index
    %c15_157 = arith.constant 15 : index
    %279 = vector.load %arg1[%c2_156, %c15_157] : memref<3x28xf32, #tpu.memory_space<vmem>>, vector<1x1xf32>
    %280 = vector.broadcast %279 : vector<1x1xf32> to vector<8x128xf32>
    %281 = arith.mulf %270, %280 : vector<8x128xf32>
    %282 = arith.addf %268, %281 : vector<8x128xf32>
    %c14_158 = arith.constant 14 : index
    %c0_159 = arith.constant 0 : index
    %c0_160 = arith.constant 0 : index
    %283 = vector.load %arg2[%c14_158, %c0_159, %c0_160] : memref<18x9x128xf32, #tpu.memory_space<vmem>>, vector<1x8x128xf32>
    %284 = vector.shape_cast %283 : vector<1x8x128xf32> to vector<8x128xf32>
    %c0_161 = arith.constant 0 : index
    %c24 = arith.constant 24 : index
    %285 = vector.load %arg1[%c0_161, %c24] : memref<3x28xf32, #tpu.memory_space<vmem>>, vector<1x1xf32>
    %286 = vector.broadcast %285 : vector<1x1xf32> to vector<8x128xf32>
    %287 = arith.mulf %284, %286 : vector<8x128xf32>
    %288 = arith.addf %274, %287 : vector<8x128xf32>
    %c1_162 = arith.constant 1 : index
    %c24_163 = arith.constant 24 : index
    %289 = vector.load %arg1[%c1_162, %c24_163] : memref<3x28xf32, #tpu.memory_space<vmem>>, vector<1x1xf32>
    %290 = vector.broadcast %289 : vector<1x1xf32> to vector<8x128xf32>
    %291 = arith.mulf %284, %290 : vector<8x128xf32>
    %292 = arith.addf %278, %291 : vector<8x128xf32>
    %c2_164 = arith.constant 2 : index
    %c24_165 = arith.constant 24 : index
    %293 = vector.load %arg1[%c2_164, %c24_165] : memref<3x28xf32, #tpu.memory_space<vmem>>, vector<1x1xf32>
    %294 = vector.broadcast %293 : vector<1x1xf32> to vector<8x128xf32>
    %295 = arith.mulf %284, %294 : vector<8x128xf32>
    %296 = arith.addf %282, %295 : vector<8x128xf32>
    %c15_166 = arith.constant 15 : index
    %c0_167 = arith.constant 0 : index
    %c0_168 = arith.constant 0 : index
    %297 = vector.load %arg2[%c15_166, %c0_167, %c0_168] : memref<18x9x128xf32, #tpu.memory_space<vmem>>, vector<1x8x128xf32>
    %298 = vector.shape_cast %297 : vector<1x8x128xf32> to vector<8x128xf32>
    %c0_169 = arith.constant 0 : index
    %c7_170 = arith.constant 7 : index
    %299 = vector.load %arg1[%c0_169, %c7_170] : memref<3x28xf32, #tpu.memory_space<vmem>>, vector<1x1xf32>
    %300 = vector.broadcast %299 : vector<1x1xf32> to vector<8x128xf32>
    %301 = arith.mulf %298, %300 : vector<8x128xf32>
    %302 = arith.addf %288, %301 : vector<8x128xf32>
    %c1_171 = arith.constant 1 : index
    %c7_172 = arith.constant 7 : index
    %303 = vector.load %arg1[%c1_171, %c7_172] : memref<3x28xf32, #tpu.memory_space<vmem>>, vector<1x1xf32>
    %304 = vector.broadcast %303 : vector<1x1xf32> to vector<8x128xf32>
    %305 = arith.mulf %298, %304 : vector<8x128xf32>
    %306 = arith.addf %292, %305 : vector<8x128xf32>
    %c2_173 = arith.constant 2 : index
    %c7_174 = arith.constant 7 : index
    %307 = vector.load %arg1[%c2_173, %c7_174] : memref<3x28xf32, #tpu.memory_space<vmem>>, vector<1x1xf32>
    %308 = vector.broadcast %307 : vector<1x1xf32> to vector<8x128xf32>
    %309 = arith.mulf %298, %308 : vector<8x128xf32>
    %310 = arith.addf %296, %309 : vector<8x128xf32>
    %c16 = arith.constant 16 : index
    %c0_175 = arith.constant 0 : index
    %c0_176 = arith.constant 0 : index
    %311 = vector.load %arg2[%c16, %c0_175, %c0_176] : memref<18x9x128xf32, #tpu.memory_space<vmem>>, vector<1x8x128xf32>
    %312 = vector.shape_cast %311 : vector<1x8x128xf32> to vector<8x128xf32>
    %c0_177 = arith.constant 0 : index
    %c16_178 = arith.constant 16 : index
    %313 = vector.load %arg1[%c0_177, %c16_178] : memref<3x28xf32, #tpu.memory_space<vmem>>, vector<1x1xf32>
    %314 = vector.broadcast %313 : vector<1x1xf32> to vector<8x128xf32>
    %315 = arith.mulf %312, %314 : vector<8x128xf32>
    %316 = arith.addf %302, %315 : vector<8x128xf32>
    %c1_179 = arith.constant 1 : index
    %c16_180 = arith.constant 16 : index
    %317 = vector.load %arg1[%c1_179, %c16_180] : memref<3x28xf32, #tpu.memory_space<vmem>>, vector<1x1xf32>
    %318 = vector.broadcast %317 : vector<1x1xf32> to vector<8x128xf32>
    %319 = arith.mulf %312, %318 : vector<8x128xf32>
    %320 = arith.addf %306, %319 : vector<8x128xf32>
    %c2_181 = arith.constant 2 : index
    %c16_182 = arith.constant 16 : index
    %321 = vector.load %arg1[%c2_181, %c16_182] : memref<3x28xf32, #tpu.memory_space<vmem>>, vector<1x1xf32>
    %322 = vector.broadcast %321 : vector<1x1xf32> to vector<8x128xf32>
    %323 = arith.mulf %312, %322 : vector<8x128xf32>
    %324 = arith.addf %310, %323 : vector<8x128xf32>
    %c17 = arith.constant 17 : index
    %c0_183 = arith.constant 0 : index
    %c0_184 = arith.constant 0 : index
    %325 = vector.load %arg2[%c17, %c0_183, %c0_184] : memref<18x9x128xf32, #tpu.memory_space<vmem>>, vector<1x8x128xf32>
    %326 = vector.shape_cast %325 : vector<1x8x128xf32> to vector<8x128xf32>
    %c0_185 = arith.constant 0 : index
    %c25 = arith.constant 25 : index
    %327 = vector.load %arg1[%c0_185, %c25] : memref<3x28xf32, #tpu.memory_space<vmem>>, vector<1x1xf32>
    %328 = vector.broadcast %327 : vector<1x1xf32> to vector<8x128xf32>
    %329 = arith.mulf %326, %328 : vector<8x128xf32>
    %330 = arith.addf %316, %329 : vector<8x128xf32>
    %c1_186 = arith.constant 1 : index
    %c25_187 = arith.constant 25 : index
    %331 = vector.load %arg1[%c1_186, %c25_187] : memref<3x28xf32, #tpu.memory_space<vmem>>, vector<1x1xf32>
    %332 = vector.broadcast %331 : vector<1x1xf32> to vector<8x128xf32>
    %333 = arith.mulf %326, %332 : vector<8x128xf32>
    %334 = arith.addf %320, %333 : vector<8x128xf32>
    %c2_188 = arith.constant 2 : index
    %c25_189 = arith.constant 25 : index
    %335 = vector.load %arg1[%c2_188, %c25_189] : memref<3x28xf32, #tpu.memory_space<vmem>>, vector<1x1xf32>
    %336 = vector.broadcast %335 : vector<1x1xf32> to vector<8x128xf32>
    %337 = arith.mulf %326, %336 : vector<8x128xf32>
    %338 = arith.addf %324, %337 : vector<8x128xf32>
    %c12_190 = arith.constant 12 : index
    %c1_191 = arith.constant 1 : index
    %c0_192 = arith.constant 0 : index
    %339 = vector.load %arg2[%c12_190, %c1_191, %c0_192] : memref<18x9x128xf32, #tpu.memory_space<vmem>>, vector<1x8x128xf32>
    %340 = vector.shape_cast %339 : vector<1x8x128xf32> to vector<8x128xf32>
    %c0_193 = arith.constant 0 : index
    %c8_194 = arith.constant 8 : index
    %341 = vector.load %arg1[%c0_193, %c8_194] : memref<3x28xf32, #tpu.memory_space<vmem>>, vector<1x1xf32>
    %342 = vector.broadcast %341 : vector<1x1xf32> to vector<8x128xf32>
    %343 = arith.mulf %340, %342 : vector<8x128xf32>
    %344 = arith.addf %330, %343 : vector<8x128xf32>
    %c1_195 = arith.constant 1 : index
    %c8_196 = arith.constant 8 : index
    %345 = vector.load %arg1[%c1_195, %c8_196] : memref<3x28xf32, #tpu.memory_space<vmem>>, vector<1x1xf32>
    %346 = vector.broadcast %345 : vector<1x1xf32> to vector<8x128xf32>
    %347 = arith.mulf %340, %346 : vector<8x128xf32>
    %348 = arith.addf %334, %347 : vector<8x128xf32>
    %c2_197 = arith.constant 2 : index
    %c8_198 = arith.constant 8 : index
    %349 = vector.load %arg1[%c2_197, %c8_198] : memref<3x28xf32, #tpu.memory_space<vmem>>, vector<1x1xf32>
    %350 = vector.broadcast %349 : vector<1x1xf32> to vector<8x128xf32>
    %351 = arith.mulf %340, %350 : vector<8x128xf32>
    %352 = arith.addf %338, %351 : vector<8x128xf32>
    %c13_199 = arith.constant 13 : index
    %c1_200 = arith.constant 1 : index
    %c0_201 = arith.constant 0 : index
    %353 = vector.load %arg2[%c13_199, %c1_200, %c0_201] : memref<18x9x128xf32, #tpu.memory_space<vmem>>, vector<1x8x128xf32>
    %354 = vector.shape_cast %353 : vector<1x8x128xf32> to vector<8x128xf32>
    %c0_202 = arith.constant 0 : index
    %c17_203 = arith.constant 17 : index
    %355 = vector.load %arg1[%c0_202, %c17_203] : memref<3x28xf32, #tpu.memory_space<vmem>>, vector<1x1xf32>
    %356 = vector.broadcast %355 : vector<1x1xf32> to vector<8x128xf32>
    %357 = arith.mulf %354, %356 : vector<8x128xf32>
    %358 = arith.addf %344, %357 : vector<8x128xf32>
    %c1_204 = arith.constant 1 : index
    %c17_205 = arith.constant 17 : index
    %359 = vector.load %arg1[%c1_204, %c17_205] : memref<3x28xf32, #tpu.memory_space<vmem>>, vector<1x1xf32>
    %360 = vector.broadcast %359 : vector<1x1xf32> to vector<8x128xf32>
    %361 = arith.mulf %354, %360 : vector<8x128xf32>
    %362 = arith.addf %348, %361 : vector<8x128xf32>
    %c2_206 = arith.constant 2 : index
    %c17_207 = arith.constant 17 : index
    %363 = vector.load %arg1[%c2_206, %c17_207] : memref<3x28xf32, #tpu.memory_space<vmem>>, vector<1x1xf32>
    %364 = vector.broadcast %363 : vector<1x1xf32> to vector<8x128xf32>
    %365 = arith.mulf %354, %364 : vector<8x128xf32>
    %366 = arith.addf %352, %365 : vector<8x128xf32>
    %c14_208 = arith.constant 14 : index
    %c1_209 = arith.constant 1 : index
    %c0_210 = arith.constant 0 : index
    %367 = vector.load %arg2[%c14_208, %c1_209, %c0_210] : memref<18x9x128xf32, #tpu.memory_space<vmem>>, vector<1x8x128xf32>
    %368 = vector.shape_cast %367 : vector<1x8x128xf32> to vector<8x128xf32>
    %c0_211 = arith.constant 0 : index
    %c26 = arith.constant 26 : index
    %369 = vector.load %arg1[%c0_211, %c26] : memref<3x28xf32, #tpu.memory_space<vmem>>, vector<1x1xf32>
    %370 = vector.broadcast %369 : vector<1x1xf32> to vector<8x128xf32>
    %371 = arith.mulf %368, %370 : vector<8x128xf32>
    %372 = arith.addf %358, %371 : vector<8x128xf32>
    %c1_212 = arith.constant 1 : index
    %c26_213 = arith.constant 26 : index
    %373 = vector.load %arg1[%c1_212, %c26_213] : memref<3x28xf32, #tpu.memory_space<vmem>>, vector<1x1xf32>
    %374 = vector.broadcast %373 : vector<1x1xf32> to vector<8x128xf32>
    %375 = arith.mulf %368, %374 : vector<8x128xf32>
    %376 = arith.addf %362, %375 : vector<8x128xf32>
    %c2_214 = arith.constant 2 : index
    %c26_215 = arith.constant 26 : index
    %377 = vector.load %arg1[%c2_214, %c26_215] : memref<3x28xf32, #tpu.memory_space<vmem>>, vector<1x1xf32>
    %378 = vector.broadcast %377 : vector<1x1xf32> to vector<8x128xf32>
    %379 = arith.mulf %368, %378 : vector<8x128xf32>
    %380 = arith.addf %366, %379 : vector<8x128xf32>
    %c0_216 = arith.constant 0 : index
    %c27 = arith.constant 27 : index
    %381 = vector.load %arg1[%c0_216, %c27] : memref<3x28xf32, #tpu.memory_space<vmem>>, vector<1x1xf32>
    %382 = vector.broadcast %381 : vector<1x1xf32> to vector<8x128xf32>
    %383 = arith.addf %372, %382 : vector<8x128xf32>
    %cst = arith.constant 0.000000e+00 : f32
    %384 = vector.broadcast %cst : f32 to vector<8x128xf32>
    %385 = arith.maximumf %383, %384 : vector<8x128xf32>
    %c0_217 = arith.constant 0 : index
    %c0_218 = arith.constant 0 : index
    %c0_219 = arith.constant 0 : index
    %386 = vector.load %arg3[%c0_217, %c0_218, %c0_219] : memref<3x8x128xf32, #tpu.memory_space<vmem>>, vector<1x8x128xf32>
    %387 = vector.shape_cast %386 : vector<1x8x128xf32> to vector<8x128xf32>
    %388 = vector.shape_cast %385 : vector<8x128xf32> to vector<1x8x128xf32>
    tpu.vector_store %arg3[%c0_217, %c0_218, %c0_219], %388 {strides = array<i32>} : memref<3x8x128xf32, #tpu.memory_space<vmem>>, vector<1x8x128xf32>,
    %cst_220 = arith.constant 0.000000e+00 : f32
    %389 = vector.broadcast %cst_220 : f32 to vector<8x128xf32>
    %390 = arith.select %5, %385, %389 : vector<8x128xi1>, vector<8x128xf32>
    %391 = vector.shape_cast %390 : vector<8x128xf32> to vector<1x8x128xf32>
    %cst_221 = arith.constant dense<0.000000e+00> : vector<1xf32>
    %392 = vector.multi_reduction <add>, %391, %cst_221 [1, 2] : vector<1x8x128xf32> to vector<1xf32>
    %393 = vector.shape_cast %392 : vector<1xf32> to vector<1x1x1xf32>
    %394 = vector.extract %393[0, 0, 0] : f32 from vector<1x1x1xf32>
    %395 = vector.broadcast %394 : f32 to vector<1x1xf32>
    %396 = arith.mulf %390, %390 : vector<8x128xf32>
    %397 = vector.shape_cast %396 : vector<8x128xf32> to vector<1x8x128xf32>
    %cst_222 = arith.constant dense<0.000000e+00> : vector<1xf32>
    %398 = vector.multi_reduction <add>, %397, %cst_222 [1, 2] : vector<1x8x128xf32> to vector<1xf32>
    %399 = vector.shape_cast %398 : vector<1xf32> to vector<1x1x1xf32>
    %400 = vector.extract %399[0, 0, 0] : f32 from vector<1x1x1xf32>
    %401 = vector.broadcast %400 : f32 to vector<1x1xf32>
    %c1_223 = arith.constant 1 : index
    %c27_224 = arith.constant 27 : index
    %402 = vector.load %arg1[%c1_223, %c27_224] : memref<3x28xf32, #tpu.memory_space<vmem>>, vector<1x1xf32>
    %403 = vector.broadcast %402 : vector<1x1xf32> to vector<8x128xf32>
    %404 = arith.addf %376, %403 : vector<8x128xf32>
    %cst_225 = arith.constant 0.000000e+00 : f32
    %405 = vector.broadcast %cst_225 : f32 to vector<8x128xf32>
    %406 = arith.maximumf %404, %405 : vector<8x128xf32>
    %c1_226 = arith.constant 1 : index
    %c0_227 = arith.constant 0 : index
    %c0_228 = arith.constant 0 : index
    %407 = vector.load %arg3[%c1_226, %c0_227, %c0_228] : memref<3x8x128xf32, #tpu.memory_space<vmem>>, vector<1x8x128xf32>
    %408 = vector.shape_cast %407 : vector<1x8x128xf32> to vector<8x128xf32>
    %409 = vector.shape_cast %406 : vector<8x128xf32> to vector<1x8x128xf32>
    tpu.vector_store %arg3[%c1_226, %c0_227, %c0_228], %409 {strides = array<i32>} : memref<3x8x128xf32, #tpu.memory_space<vmem>>, vector<1x8x128xf32>,
    %cst_229 = arith.constant 0.000000e+00 : f32
    %410 = vector.broadcast %cst_229 : f32 to vector<8x128xf32>
    %411 = arith.select %5, %406, %410 : vector<8x128xi1>, vector<8x128xf32>
    %412 = vector.shape_cast %411 : vector<8x128xf32> to vector<1x8x128xf32>
    %cst_230 = arith.constant dense<0.000000e+00> : vector<1xf32>
    %413 = vector.multi_reduction <add>, %412, %cst_230 [1, 2] : vector<1x8x128xf32> to vector<1xf32>
    %414 = vector.shape_cast %413 : vector<1xf32> to vector<1x1x1xf32>
    %415 = vector.extract %414[0, 0, 0] : f32 from vector<1x1x1xf32>
    %416 = vector.broadcast %415 : f32 to vector<1x1xf32>
    %417 = arith.mulf %411, %411 : vector<8x128xf32>
    %418 = vector.shape_cast %417 : vector<8x128xf32> to vector<1x8x128xf32>
    %cst_231 = arith.constant dense<0.000000e+00> : vector<1xf32>
    %419 = vector.multi_reduction <add>, %418, %cst_231 [1, 2] : vector<1x8x128xf32> to vector<1xf32>
    %420 = vector.shape_cast %419 : vector<1xf32> to vector<1x1x1xf32>
    %421 = vector.extract %420[0, 0, 0] : f32 from vector<1x1x1xf32>
    %422 = vector.broadcast %421 : f32 to vector<1x1xf32>
    %c2_232 = arith.constant 2 : index
    %c27_233 = arith.constant 27 : index
    %423 = vector.load %arg1[%c2_232, %c27_233] : memref<3x28xf32, #tpu.memory_space<vmem>>, vector<1x1xf32>
    %424 = vector.broadcast %423 : vector<1x1xf32> to vector<8x128xf32>
    %425 = arith.addf %380, %424 : vector<8x128xf32>
    %cst_234 = arith.constant 0.000000e+00 : f32
    %426 = vector.broadcast %cst_234 : f32 to vector<8x128xf32>
    %427 = arith.maximumf %425, %426 : vector<8x128xf32>
    %c2_235 = arith.constant 2 : index
    %c0_236 = arith.constant 0 : index
    %c0_237 = arith.constant 0 : index
    %428 = vector.load %arg3[%c2_235, %c0_236, %c0_237] : memref<3x8x128xf32, #tpu.memory_space<vmem>>, vector<1x8x128xf32>
    %429 = vector.shape_cast %428 : vector<1x8x128xf32> to vector<8x128xf32>
    %430 = vector.shape_cast %427 : vector<8x128xf32> to vector<1x8x128xf32>
    tpu.vector_store %arg3[%c2_235, %c0_236, %c0_237], %430 {strides = array<i32>} : memref<3x8x128xf32, #tpu.memory_space<vmem>>, vector<1x8x128xf32>,
    %cst_238 = arith.constant 0.000000e+00 : f32
    %431 = vector.broadcast %cst_238 : f32 to vector<8x128xf32>
    %432 = arith.select %5, %427, %431 : vector<8x128xi1>, vector<8x128xf32>
    %433 = vector.shape_cast %432 : vector<8x128xf32> to vector<1x8x128xf32>
    %cst_239 = arith.constant dense<0.000000e+00> : vector<1xf32>
    %434 = vector.multi_reduction <add>, %433, %cst_239 [1, 2] : vector<1x8x128xf32> to vector<1xf32>
    %435 = vector.shape_cast %434 : vector<1xf32> to vector<1x1x1xf32>
    %436 = vector.extract %435[0, 0, 0] : f32 from vector<1x1x1xf32>
    %437 = vector.broadcast %436 : f32 to vector<1x1xf32>
    %438 = arith.mulf %432, %432 : vector<8x128xf32>
    %439 = vector.shape_cast %438 : vector<8x128xf32> to vector<1x8x128xf32>
    %cst_240 = arith.constant dense<0.000000e+00> : vector<1xf32>
    %440 = vector.multi_reduction <add>, %439, %cst_240 [1, 2] : vector<1x8x128xf32> to vector<1xf32>
    %441 = vector.shape_cast %440 : vector<1xf32> to vector<1x1x1xf32>
    %442 = vector.extract %441[0, 0, 0] : f32 from vector<1x1x1xf32>
    %443 = vector.broadcast %442 : f32 to vector<1x1xf32>
    %444 = tpu.concatenate %395, %416, %437 in 0 : vector<1x1xf32>, vector<1x1xf32>, vector<1x1xf32> -> vector<3x1xf32>
    %445 = vector.shape_cast %444 : vector<3x1xf32> to vector<1x3x1xf32>
    %c0_241 = arith.constant 0 : index
    %c0_242 = arith.constant 0 : index
    %c0_243 = arith.constant 0 : index
    %446 = vector.load %arg4[%c0_241, %c0_242, %c0_243] : memref<1x3x1xf32, #tpu.memory_space<vmem>>, vector<1x3x1xf32>
    tpu.vector_store %arg4[%c0_241, %c0_242, %c0_243], %445 {strides = array<i32>} : memref<1x3x1xf32, #tpu.memory_space<vmem>>, vector<1x3x1xf32>,
    %447 = tpu.concatenate %401, %422, %443 in 0 : vector<1x1xf32>, vector<1x1xf32>, vector<1x1xf32> -> vector<3x1xf32>
    %448 = vector.shape_cast %447 : vector<3x1xf32> to vector<1x3x1xf32>
    %c0_244 = arith.constant 0 : index
    %c0_245 = arith.constant 0 : index
    %c0_246 = arith.constant 0 : index
    %449 = vector.load %arg5[%c0_244, %c0_245, %c0_246] : memref<1x3x1xf32, #tpu.memory_space<vmem>>, vector<1x3x1xf32>
    tpu.vector_store %arg5[%c0_244, %c0_245, %c0_246], %448 {strides = array<i32>} : memref<1x3x1xf32, #tpu.memory_space<vmem>>, vector<1x3x1xf32>,
    return
  }
  func.func @transform_0(%arg0: i32) -> (i32, i32) {
    %c0_i32 = arith.constant 0 : i32
    %c0_i32_0 = arith.constant 0 : i32
    %c0_i32_1 = arith.constant 0 : i32
    return %c0_i32, %c0_i32_0 : i32, i32
  }
  func.func @transform_1(%arg0: i32) -> (i32, i32, i32) {
    %c0_i32 = arith.constant 0 : i32
    %c0_i32_0 = arith.constant 0 : i32
    %c0_i32_1 = arith.constant 0 : i32
    return %c0_i32, %c0_i32_0, %arg0 : i32, i32, i32
  }
  func.func @transform_2(%arg0: i32) -> (i32, i32, i32) {
    %c0_i32 = arith.constant 0 : i32
    %c0_i32_0 = arith.constant 0 : i32
    %c0_i32_1 = arith.constant 0 : i32
    return %c0_i32, %c0_i32_0, %arg0 : i32, i32, i32
  }
  func.func @transform_3(%arg0: i32) -> (i32, i32, i32) {
    %c0_i32 = arith.constant 0 : i32
    %c0_i32_0 = arith.constant 0 : i32
    %c0_i32_1 = arith.constant 0 : i32
    return %arg0, %c0_i32, %c0_i32_0 : i32, i32, i32
  }
  func.func @transform_4(%arg0: i32) -> (i32, i32, i32) {
    %c0_i32 = arith.constant 0 : i32
    %c0_i32_0 = arith.constant 0 : i32
    %c0_i32_1 = arith.constant 0 : i32
    return %arg0, %c0_i32, %c0_i32_0 : i32, i32, i32
  }
}

module attributes {stable_mosaic.version = 11 : i64} {
  func.func @kernel(%arg0: i32, %arg1: memref<3x28xf32, #tpu.memory_space<vmem>>, %arg2: memref<18x5x128xf32, #tpu.memory_space<vmem>>, %arg3: memref<3x4x128xf32, #tpu.memory_space<vmem>>, %arg4: memref<1x3x1xf32, #tpu.memory_space<vmem>>, %arg5: memref<1x3x1xf32, #tpu.memory_space<vmem>>) attributes {dimension_semantics = [#tpu.dimension_semantics<parallel>], iteration_bounds = array<i64: 1>, scalar_prefetch = 0 : i64, scratch_operands = 0 : i64, tpu.core_type = #tpu.core_type<tc>, window_params = [{pipeline_mode = #tpu.pipeline_mode<synchronous>, transform_indices = @transform_0, window_bounds = array<i64: 3, 28>}, {transform_indices = @transform_1, window_bounds = array<i64: 18, 5, 128>}, {transform_indices = @transform_2, window_bounds = array<i64: 3, 4, 128>}, {transform_indices = @transform_3, window_bounds = array<i64: 1, 3, 1>}, {transform_indices = @transform_4, window_bounds = array<i64: 1, 3, 1>}]} {
    %0 = tpu.iota {dimensions = array<i32: 1>} : vector<4x128xi32>
    %c128_i32 = arith.constant 128 : i32
    %1 = arith.muli %arg0, %c128_i32 : i32
    %2 = vector.broadcast %1 : i32 to vector<4x128xi32>
    %3 = arith.addi %2, %0 : vector<4x128xi32>
    %c8_i32 = arith.constant 8 : i32
    %4 = vector.broadcast %c8_i32 : i32 to vector<4x128xi32>
    %5 = arith.cmpi slt, %3, %4 : vector<4x128xi32>
    %c0 = arith.constant 0 : index
    %c0_0 = arith.constant 0 : index
    %c0_1 = arith.constant 0 : index
    %6 = vector.load %arg2[%c0, %c0_0, %c0_1] : memref<18x5x128xf32, #tpu.memory_space<vmem>>, vector<1x4x128xf32>
    %7 = vector.shape_cast %6 : vector<1x4x128xf32> to vector<4x128xf32>
    %c0_2 = arith.constant 0 : index
    %c0_3 = arith.constant 0 : index
    %8 = vector.load %arg1[%c0_2, %c0_3] : memref<3x28xf32, #tpu.memory_space<vmem>>, vector<1x1xf32>
    %9 = vector.broadcast %8 : vector<1x1xf32> to vector<4x128xf32>
    %10 = arith.mulf %7, %9 : vector<4x128xf32>
    %c1 = arith.constant 1 : index
    %c0_4 = arith.constant 0 : index
    %11 = vector.load %arg1[%c1, %c0_4] : memref<3x28xf32, #tpu.memory_space<vmem>>, vector<1x1xf32>
    %12 = vector.broadcast %11 : vector<1x1xf32> to vector<4x128xf32>
    %13 = arith.mulf %7, %12 : vector<4x128xf32>
    %c2 = arith.constant 2 : index
    %c0_5 = arith.constant 0 : index
    %14 = vector.load %arg1[%c2, %c0_5] : memref<3x28xf32, #tpu.memory_space<vmem>>, vector<1x1xf32>
    %15 = vector.broadcast %14 : vector<1x1xf32> to vector<4x128xf32>
    %16 = arith.mulf %7, %15 : vector<4x128xf32>
    %c1_6 = arith.constant 1 : index
    %c0_7 = arith.constant 0 : index
    %c0_8 = arith.constant 0 : index
    %17 = vector.load %arg2[%c1_6, %c0_7, %c0_8] : memref<18x5x128xf32, #tpu.memory_space<vmem>>, vector<1x4x128xf32>
    %18 = vector.shape_cast %17 : vector<1x4x128xf32> to vector<4x128xf32>
    %c0_9 = arith.constant 0 : index
    %c9 = arith.constant 9 : index
    %19 = vector.load %arg1[%c0_9, %c9] : memref<3x28xf32, #tpu.memory_space<vmem>>, vector<1x1xf32>
    %20 = vector.broadcast %19 : vector<1x1xf32> to vector<4x128xf32>
    %21 = arith.mulf %18, %20 : vector<4x128xf32>
    %22 = arith.addf %10, %21 : vector<4x128xf32>
    %c1_10 = arith.constant 1 : index
    %c9_11 = arith.constant 9 : index
    %23 = vector.load %arg1[%c1_10, %c9_11] : memref<3x28xf32, #tpu.memory_space<vmem>>, vector<1x1xf32>
    %24 = vector.broadcast %23 : vector<1x1xf32> to vector<4x128xf32>
    %25 = arith.mulf %18, %24 : vector<4x128xf32>
    %26 = arith.addf %13, %25 : vector<4x128xf32>
    %c2_12 = arith.constant 2 : index
    %c9_13 = arith.constant 9 : index
    %27 = vector.load %arg1[%c2_12, %c9_13] : memref<3x28xf32, #tpu.memory_space<vmem>>, vector<1x1xf32>
    %28 = vector.broadcast %27 : vector<1x1xf32> to vector<4x128xf32>
    %29 = arith.mulf %18, %28 : vector<4x128xf32>
    %30 = arith.addf %16, %29 : vector<4x128xf32>
    %c2_14 = arith.constant 2 : index
    %c0_15 = arith.constant 0 : index
    %c0_16 = arith.constant 0 : index
    %31 = vector.load %arg2[%c2_14, %c0_15, %c0_16] : memref<18x5x128xf32, #tpu.memory_space<vmem>>, vector<1x4x128xf32>
    %32 = vector.shape_cast %31 : vector<1x4x128xf32> to vector<4x128xf32>
    %c0_17 = arith.constant 0 : index
    %c18 = arith.constant 18 : index
    %33 = vector.load %arg1[%c0_17, %c18] : memref<3x28xf32, #tpu.memory_space<vmem>>, vector<1x1xf32>
    %34 = vector.broadcast %33 : vector<1x1xf32> to vector<4x128xf32>
    %35 = arith.mulf %32, %34 : vector<4x128xf32>
    %36 = arith.addf %22, %35 : vector<4x128xf32>
    %c1_18 = arith.constant 1 : index
    %c18_19 = arith.constant 18 : index
    %37 = vector.load %arg1[%c1_18, %c18_19] : memref<3x28xf32, #tpu.memory_space<vmem>>, vector<1x1xf32>
    %38 = vector.broadcast %37 : vector<1x1xf32> to vector<4x128xf32>
    %39 = arith.mulf %32, %38 : vector<4x128xf32>
    %40 = arith.addf %26, %39 : vector<4x128xf32>
    %c2_20 = arith.constant 2 : index
    %c18_21 = arith.constant 18 : index
    %41 = vector.load %arg1[%c2_20, %c18_21] : memref<3x28xf32, #tpu.memory_space<vmem>>, vector<1x1xf32>
    %42 = vector.broadcast %41 : vector<1x1xf32> to vector<4x128xf32>
    %43 = arith.mulf %32, %42 : vector<4x128xf32>
    %44 = arith.addf %30, %43 : vector<4x128xf32>
    %c3 = arith.constant 3 : index
    %c0_22 = arith.constant 0 : index
    %c0_23 = arith.constant 0 : index
    %45 = vector.load %arg2[%c3, %c0_22, %c0_23] : memref<18x5x128xf32, #tpu.memory_space<vmem>>, vector<1x4x128xf32>
    %46 = vector.shape_cast %45 : vector<1x4x128xf32> to vector<4x128xf32>
    %c0_24 = arith.constant 0 : index
    %c1_25 = arith.constant 1 : index
    %47 = vector.load %arg1[%c0_24, %c1_25] : memref<3x28xf32, #tpu.memory_space<vmem>>, vector<1x1xf32>
    %48 = vector.broadcast %47 : vector<1x1xf32> to vector<4x128xf32>
    %49 = arith.mulf %46, %48 : vector<4x128xf32>
    %50 = arith.addf %36, %49 : vector<4x128xf32>
    %c1_26 = arith.constant 1 : index
    %c1_27 = arith.constant 1 : index
    %51 = vector.load %arg1[%c1_26, %c1_27] : memref<3x28xf32, #tpu.memory_space<vmem>>, vector<1x1xf32>
    %52 = vector.broadcast %51 : vector<1x1xf32> to vector<4x128xf32>
    %53 = arith.mulf %46, %52 : vector<4x128xf32>
    %54 = arith.addf %40, %53 : vector<4x128xf32>
    %c2_28 = arith.constant 2 : index
    %c1_29 = arith.constant 1 : index
    %55 = vector.load %arg1[%c2_28, %c1_29] : memref<3x28xf32, #tpu.memory_space<vmem>>, vector<1x1xf32>
    %56 = vector.broadcast %55 : vector<1x1xf32> to vector<4x128xf32>
    %57 = arith.mulf %46, %56 : vector<4x128xf32>
    %58 = arith.addf %44, %57 : vector<4x128xf32>
    %c4 = arith.constant 4 : index
    %c0_30 = arith.constant 0 : index
    %c0_31 = arith.constant 0 : index
    %59 = vector.load %arg2[%c4, %c0_30, %c0_31] : memref<18x5x128xf32, #tpu.memory_space<vmem>>, vector<1x4x128xf32>
    %60 = vector.shape_cast %59 : vector<1x4x128xf32> to vector<4x128xf32>
    %c0_32 = arith.constant 0 : index
    %c10 = arith.constant 10 : index
    %61 = vector.load %arg1[%c0_32, %c10] : memref<3x28xf32, #tpu.memory_space<vmem>>, vector<1x1xf32>
    %62 = vector.broadcast %61 : vector<1x1xf32> to vector<4x128xf32>
    %63 = arith.mulf %60, %62 : vector<4x128xf32>
    %64 = arith.addf %50, %63 : vector<4x128xf32>
    %c1_33 = arith.constant 1 : index
    %c10_34 = arith.constant 10 : index
    %65 = vector.load %arg1[%c1_33, %c10_34] : memref<3x28xf32, #tpu.memory_space<vmem>>, vector<1x1xf32>
    %66 = vector.broadcast %65 : vector<1x1xf32> to vector<4x128xf32>
    %67 = arith.mulf %60, %66 : vector<4x128xf32>
    %68 = arith.addf %54, %67 : vector<4x128xf32>
    %c2_35 = arith.constant 2 : index
    %c10_36 = arith.constant 10 : index
    %69 = vector.load %arg1[%c2_35, %c10_36] : memref<3x28xf32, #tpu.memory_space<vmem>>, vector<1x1xf32>
    %70 = vector.broadcast %69 : vector<1x1xf32> to vector<4x128xf32>
    %71 = arith.mulf %60, %70 : vector<4x128xf32>
    %72 = arith.addf %58, %71 : vector<4x128xf32>
    %c5 = arith.constant 5 : index
    %c0_37 = arith.constant 0 : index
    %c0_38 = arith.constant 0 : index
    %73 = vector.load %arg2[%c5, %c0_37, %c0_38] : memref<18x5x128xf32, #tpu.memory_space<vmem>>, vector<1x4x128xf32>
    %74 = vector.shape_cast %73 : vector<1x4x128xf32> to vector<4x128xf32>
    %c0_39 = arith.constant 0 : index
    %c19 = arith.constant 19 : index
    %75 = vector.load %arg1[%c0_39, %c19] : memref<3x28xf32, #tpu.memory_space<vmem>>, vector<1x1xf32>
    %76 = vector.broadcast %75 : vector<1x1xf32> to vector<4x128xf32>
    %77 = arith.mulf %74, %76 : vector<4x128xf32>
    %78 = arith.addf %64, %77 : vector<4x128xf32>
    %c1_40 = arith.constant 1 : index
    %c19_41 = arith.constant 19 : index
    %79 = vector.load %arg1[%c1_40, %c19_41] : memref<3x28xf32, #tpu.memory_space<vmem>>, vector<1x1xf32>
    %80 = vector.broadcast %79 : vector<1x1xf32> to vector<4x128xf32>
    %81 = arith.mulf %74, %80 : vector<4x128xf32>
    %82 = arith.addf %68, %81 : vector<4x128xf32>
    %c2_42 = arith.constant 2 : index
    %c19_43 = arith.constant 19 : index
    %83 = vector.load %arg1[%c2_42, %c19_43] : memref<3x28xf32, #tpu.memory_space<vmem>>, vector<1x1xf32>
    %84 = vector.broadcast %83 : vector<1x1xf32> to vector<4x128xf32>
    %85 = arith.mulf %74, %84 : vector<4x128xf32>
    %86 = arith.addf %72, %85 : vector<4x128xf32>
    %c0_44 = arith.constant 0 : index
    %c1_45 = arith.constant 1 : index
    %c0_46 = arith.constant 0 : index
    %87 = vector.load %arg2[%c0_44, %c1_45, %c0_46] : memref<18x5x128xf32, #tpu.memory_space<vmem>>, vector<1x4x128xf32>
    %88 = vector.shape_cast %87 : vector<1x4x128xf32> to vector<4x128xf32>
    %c0_47 = arith.constant 0 : index
    %c2_48 = arith.constant 2 : index
    %89 = vector.load %arg1[%c0_47, %c2_48] : memref<3x28xf32, #tpu.memory_space<vmem>>, vector<1x1xf32>
    %90 = vector.broadcast %89 : vector<1x1xf32> to vector<4x128xf32>
    %91 = arith.mulf %88, %90 : vector<4x128xf32>
    %92 = arith.addf %78, %91 : vector<4x128xf32>
    %c1_49 = arith.constant 1 : index
    %c2_50 = arith.constant 2 : index
    %93 = vector.load %arg1[%c1_49, %c2_50] : memref<3x28xf32, #tpu.memory_space<vmem>>, vector<1x1xf32>
    %94 = vector.broadcast %93 : vector<1x1xf32> to vector<4x128xf32>
    %95 = arith.mulf %88, %94 : vector<4x128xf32>
    %96 = arith.addf %82, %95 : vector<4x128xf32>
    %c2_51 = arith.constant 2 : index
    %c2_52 = arith.constant 2 : index
    %97 = vector.load %arg1[%c2_51, %c2_52] : memref<3x28xf32, #tpu.memory_space<vmem>>, vector<1x1xf32>
    %98 = vector.broadcast %97 : vector<1x1xf32> to vector<4x128xf32>
    %99 = arith.mulf %88, %98 : vector<4x128xf32>
    %100 = arith.addf %86, %99 : vector<4x128xf32>
    %c1_53 = arith.constant 1 : index
    %c1_54 = arith.constant 1 : index
    %c0_55 = arith.constant 0 : index
    %101 = vector.load %arg2[%c1_53, %c1_54, %c0_55] : memref<18x5x128xf32, #tpu.memory_space<vmem>>, vector<1x4x128xf32>
    %102 = vector.shape_cast %101 : vector<1x4x128xf32> to vector<4x128xf32>
    %c0_56 = arith.constant 0 : index
    %c11 = arith.constant 11 : index
    %103 = vector.load %arg1[%c0_56, %c11] : memref<3x28xf32, #tpu.memory_space<vmem>>, vector<1x1xf32>
    %104 = vector.broadcast %103 : vector<1x1xf32> to vector<4x128xf32>
    %105 = arith.mulf %102, %104 : vector<4x128xf32>
    %106 = arith.addf %92, %105 : vector<4x128xf32>
    %c1_57 = arith.constant 1 : index
    %c11_58 = arith.constant 11 : index
    %107 = vector.load %arg1[%c1_57, %c11_58] : memref<3x28xf32, #tpu.memory_space<vmem>>, vector<1x1xf32>
    %108 = vector.broadcast %107 : vector<1x1xf32> to vector<4x128xf32>
    %109 = arith.mulf %102, %108 : vector<4x128xf32>
    %110 = arith.addf %96, %109 : vector<4x128xf32>
    %c2_59 = arith.constant 2 : index
    %c11_60 = arith.constant 11 : index
    %111 = vector.load %arg1[%c2_59, %c11_60] : memref<3x28xf32, #tpu.memory_space<vmem>>, vector<1x1xf32>
    %112 = vector.broadcast %111 : vector<1x1xf32> to vector<4x128xf32>
    %113 = arith.mulf %102, %112 : vector<4x128xf32>
    %114 = arith.addf %100, %113 : vector<4x128xf32>
    %c2_61 = arith.constant 2 : index
    %c1_62 = arith.constant 1 : index
    %c0_63 = arith.constant 0 : index
    %115 = vector.load %arg2[%c2_61, %c1_62, %c0_63] : memref<18x5x128xf32, #tpu.memory_space<vmem>>, vector<1x4x128xf32>
    %116 = vector.shape_cast %115 : vector<1x4x128xf32> to vector<4x128xf32>
    %c0_64 = arith.constant 0 : index
    %c20 = arith.constant 20 : index
    %117 = vector.load %arg1[%c0_64, %c20] : memref<3x28xf32, #tpu.memory_space<vmem>>, vector<1x1xf32>
    %118 = vector.broadcast %117 : vector<1x1xf32> to vector<4x128xf32>
    %119 = arith.mulf %116, %118 : vector<4x128xf32>
    %120 = arith.addf %106, %119 : vector<4x128xf32>
    %c1_65 = arith.constant 1 : index
    %c20_66 = arith.constant 20 : index
    %121 = vector.load %arg1[%c1_65, %c20_66] : memref<3x28xf32, #tpu.memory_space<vmem>>, vector<1x1xf32>
    %122 = vector.broadcast %121 : vector<1x1xf32> to vector<4x128xf32>
    %123 = arith.mulf %116, %122 : vector<4x128xf32>
    %124 = arith.addf %110, %123 : vector<4x128xf32>
    %c2_67 = arith.constant 2 : index
    %c20_68 = arith.constant 20 : index
    %125 = vector.load %arg1[%c2_67, %c20_68] : memref<3x28xf32, #tpu.memory_space<vmem>>, vector<1x1xf32>
    %126 = vector.broadcast %125 : vector<1x1xf32> to vector<4x128xf32>
    %127 = arith.mulf %116, %126 : vector<4x128xf32>
    %128 = arith.addf %114, %127 : vector<4x128xf32>
    %c6 = arith.constant 6 : index
    %c0_69 = arith.constant 0 : index
    %c0_70 = arith.constant 0 : index
    %129 = vector.load %arg2[%c6, %c0_69, %c0_70] : memref<18x5x128xf32, #tpu.memory_space<vmem>>, vector<1x4x128xf32>
    %130 = vector.shape_cast %129 : vector<1x4x128xf32> to vector<4x128xf32>
    %c0_71 = arith.constant 0 : index
    %c3_72 = arith.constant 3 : index
    %131 = vector.load %arg1[%c0_71, %c3_72] : memref<3x28xf32, #tpu.memory_space<vmem>>, vector<1x1xf32>
    %132 = vector.broadcast %131 : vector<1x1xf32> to vector<4x128xf32>
    %133 = arith.mulf %130, %132 : vector<4x128xf32>
    %134 = arith.addf %120, %133 : vector<4x128xf32>
    %c1_73 = arith.constant 1 : index
    %c3_74 = arith.constant 3 : index
    %135 = vector.load %arg1[%c1_73, %c3_74] : memref<3x28xf32, #tpu.memory_space<vmem>>, vector<1x1xf32>
    %136 = vector.broadcast %135 : vector<1x1xf32> to vector<4x128xf32>
    %137 = arith.mulf %130, %136 : vector<4x128xf32>
    %138 = arith.addf %124, %137 : vector<4x128xf32>
    %c2_75 = arith.constant 2 : index
    %c3_76 = arith.constant 3 : index
    %139 = vector.load %arg1[%c2_75, %c3_76] : memref<3x28xf32, #tpu.memory_space<vmem>>, vector<1x1xf32>
    %140 = vector.broadcast %139 : vector<1x1xf32> to vector<4x128xf32>
    %141 = arith.mulf %130, %140 : vector<4x128xf32>
    %142 = arith.addf %128, %141 : vector<4x128xf32>
    %c7 = arith.constant 7 : index
    %c0_77 = arith.constant 0 : index
    %c0_78 = arith.constant 0 : index
    %143 = vector.load %arg2[%c7, %c0_77, %c0_78] : memref<18x5x128xf32, #tpu.memory_space<vmem>>, vector<1x4x128xf32>
    %144 = vector.shape_cast %143 : vector<1x4x128xf32> to vector<4x128xf32>
    %c0_79 = arith.constant 0 : index
    %c12 = arith.constant 12 : index
    %145 = vector.load %arg1[%c0_79, %c12] : memref<3x28xf32, #tpu.memory_space<vmem>>, vector<1x1xf32>
    %146 = vector.broadcast %145 : vector<1x1xf32> to vector<4x128xf32>
    %147 = arith.mulf %144, %146 : vector<4x128xf32>
    %148 = arith.addf %134, %147 : vector<4x128xf32>
    %c1_80 = arith.constant 1 : index
    %c12_81 = arith.constant 12 : index
    %149 = vector.load %arg1[%c1_80, %c12_81] : memref<3x28xf32, #tpu.memory_space<vmem>>, vector<1x1xf32>
    %150 = vector.broadcast %149 : vector<1x1xf32> to vector<4x128xf32>
    %151 = arith.mulf %144, %150 : vector<4x128xf32>
    %152 = arith.addf %138, %151 : vector<4x128xf32>
    %c2_82 = arith.constant 2 : index
    %c12_83 = arith.constant 12 : index
    %153 = vector.load %arg1[%c2_82, %c12_83] : memref<3x28xf32, #tpu.memory_space<vmem>>, vector<1x1xf32>
    %154 = vector.broadcast %153 : vector<1x1xf32> to vector<4x128xf32>
    %155 = arith.mulf %144, %154 : vector<4x128xf32>
    %156 = arith.addf %142, %155 : vector<4x128xf32>
    %c8 = arith.constant 8 : index
    %c0_84 = arith.constant 0 : index
    %c0_85 = arith.constant 0 : index
    %157 = vector.load %arg2[%c8, %c0_84, %c0_85] : memref<18x5x128xf32, #tpu.memory_space<vmem>>, vector<1x4x128xf32>
    %158 = vector.shape_cast %157 : vector<1x4x128xf32> to vector<4x128xf32>
    %c0_86 = arith.constant 0 : index
    %c21 = arith.constant 21 : index
    %159 = vector.load %arg1[%c0_86, %c21] : memref<3x28xf32, #tpu.memory_space<vmem>>, vector<1x1xf32>
    %160 = vector.broadcast %159 : vector<1x1xf32> to vector<4x128xf32>
    %161 = arith.mulf %158, %160 : vector<4x128xf32>
    %162 = arith.addf %148, %161 : vector<4x128xf32>
    %c1_87 = arith.constant 1 : index
    %c21_88 = arith.constant 21 : index
    %163 = vector.load %arg1[%c1_87, %c21_88] : memref<3x28xf32, #tpu.memory_space<vmem>>, vector<1x1xf32>
    %164 = vector.broadcast %163 : vector<1x1xf32> to vector<4x128xf32>
    %165 = arith.mulf %158, %164 : vector<4x128xf32>
    %166 = arith.addf %152, %165 : vector<4x128xf32>
    %c2_89 = arith.constant 2 : index
    %c21_90 = arith.constant 21 : index
    %167 = vector.load %arg1[%c2_89, %c21_90] : memref<3x28xf32, #tpu.memory_space<vmem>>, vector<1x1xf32>
    %168 = vector.broadcast %167 : vector<1x1xf32> to vector<4x128xf32>
    %169 = arith.mulf %158, %168 : vector<4x128xf32>
    %170 = arith.addf %156, %169 : vector<4x128xf32>
    %c9_91 = arith.constant 9 : index
    %c0_92 = arith.constant 0 : index
    %c0_93 = arith.constant 0 : index
    %171 = vector.load %arg2[%c9_91, %c0_92, %c0_93] : memref<18x5x128xf32, #tpu.memory_space<vmem>>, vector<1x4x128xf32>
    %172 = vector.shape_cast %171 : vector<1x4x128xf32> to vector<4x128xf32>
    %c0_94 = arith.constant 0 : index
    %c4_95 = arith.constant 4 : index
    %173 = vector.load %arg1[%c0_94, %c4_95] : memref<3x28xf32, #tpu.memory_space<vmem>>, vector<1x1xf32>
    %174 = vector.broadcast %173 : vector<1x1xf32> to vector<4x128xf32>
    %175 = arith.mulf %172, %174 : vector<4x128xf32>
    %176 = arith.addf %162, %175 : vector<4x128xf32>
    %c1_96 = arith.constant 1 : index
    %c4_97 = arith.constant 4 : index
    %177 = vector.load %arg1[%c1_96, %c4_97] : memref<3x28xf32, #tpu.memory_space<vmem>>, vector<1x1xf32>
    %178 = vector.broadcast %177 : vector<1x1xf32> to vector<4x128xf32>
    %179 = arith.mulf %172, %178 : vector<4x128xf32>
    %180 = arith.addf %166, %179 : vector<4x128xf32>
    %c2_98 = arith.constant 2 : index
    %c4_99 = arith.constant 4 : index
    %181 = vector.load %arg1[%c2_98, %c4_99] : memref<3x28xf32, #tpu.memory_space<vmem>>, vector<1x1xf32>
    %182 = vector.broadcast %181 : vector<1x1xf32> to vector<4x128xf32>
    %183 = arith.mulf %172, %182 : vector<4x128xf32>
    %184 = arith.addf %170, %183 : vector<4x128xf32>
    %c10_100 = arith.constant 10 : index
    %c0_101 = arith.constant 0 : index
    %c0_102 = arith.constant 0 : index
    %185 = vector.load %arg2[%c10_100, %c0_101, %c0_102] : memref<18x5x128xf32, #tpu.memory_space<vmem>>, vector<1x4x128xf32>
    %186 = vector.shape_cast %185 : vector<1x4x128xf32> to vector<4x128xf32>
    %c0_103 = arith.constant 0 : index
    %c13 = arith.constant 13 : index
    %187 = vector.load %arg1[%c0_103, %c13] : memref<3x28xf32, #tpu.memory_space<vmem>>, vector<1x1xf32>
    %188 = vector.broadcast %187 : vector<1x1xf32> to vector<4x128xf32>
    %189 = arith.mulf %186, %188 : vector<4x128xf32>
    %190 = arith.addf %176, %189 : vector<4x128xf32>
    %c1_104 = arith.constant 1 : index
    %c13_105 = arith.constant 13 : index
    %191 = vector.load %arg1[%c1_104, %c13_105] : memref<3x28xf32, #tpu.memory_space<vmem>>, vector<1x1xf32>
    %192 = vector.broadcast %191 : vector<1x1xf32> to vector<4x128xf32>
    %193 = arith.mulf %186, %192 : vector<4x128xf32>
    %194 = arith.addf %180, %193 : vector<4x128xf32>
    %c2_106 = arith.constant 2 : index
    %c13_107 = arith.constant 13 : index
    %195 = vector.load %arg1[%c2_106, %c13_107] : memref<3x28xf32, #tpu.memory_space<vmem>>, vector<1x1xf32>
    %196 = vector.broadcast %195 : vector<1x1xf32> to vector<4x128xf32>
    %197 = arith.mulf %186, %196 : vector<4x128xf32>
    %198 = arith.addf %184, %197 : vector<4x128xf32>
    %c11_108 = arith.constant 11 : index
    %c0_109 = arith.constant 0 : index
    %c0_110 = arith.constant 0 : index
    %199 = vector.load %arg2[%c11_108, %c0_109, %c0_110] : memref<18x5x128xf32, #tpu.memory_space<vmem>>, vector<1x4x128xf32>
    %200 = vector.shape_cast %199 : vector<1x4x128xf32> to vector<4x128xf32>
    %c0_111 = arith.constant 0 : index
    %c22 = arith.constant 22 : index
    %201 = vector.load %arg1[%c0_111, %c22] : memref<3x28xf32, #tpu.memory_space<vmem>>, vector<1x1xf32>
    %202 = vector.broadcast %201 : vector<1x1xf32> to vector<4x128xf32>
    %203 = arith.mulf %200, %202 : vector<4x128xf32>
    %204 = arith.addf %190, %203 : vector<4x128xf32>
    %c1_112 = arith.constant 1 : index
    %c22_113 = arith.constant 22 : index
    %205 = vector.load %arg1[%c1_112, %c22_113] : memref<3x28xf32, #tpu.memory_space<vmem>>, vector<1x1xf32>
    %206 = vector.broadcast %205 : vector<1x1xf32> to vector<4x128xf32>
    %207 = arith.mulf %200, %206 : vector<4x128xf32>
    %208 = arith.addf %194, %207 : vector<4x128xf32>
    %c2_114 = arith.constant 2 : index
    %c22_115 = arith.constant 22 : index
    %209 = vector.load %arg1[%c2_114, %c22_115] : memref<3x28xf32, #tpu.memory_space<vmem>>, vector<1x1xf32>
    %210 = vector.broadcast %209 : vector<1x1xf32> to vector<4x128xf32>
    %211 = arith.mulf %200, %210 : vector<4x128xf32>
    %212 = arith.addf %198, %211 : vector<4x128xf32>
    %c6_116 = arith.constant 6 : index
    %c1_117 = arith.constant 1 : index
    %c0_118 = arith.constant 0 : index
    %213 = vector.load %arg2[%c6_116, %c1_117, %c0_118] : memref<18x5x128xf32, #tpu.memory_space<vmem>>, vector<1x4x128xf32>
    %214 = vector.shape_cast %213 : vector<1x4x128xf32> to vector<4x128xf32>
    %c0_119 = arith.constant 0 : index
    %c5_120 = arith.constant 5 : index
    %215 = vector.load %arg1[%c0_119, %c5_120] : memref<3x28xf32, #tpu.memory_space<vmem>>, vector<1x1xf32>
    %216 = vector.broadcast %215 : vector<1x1xf32> to vector<4x128xf32>
    %217 = arith.mulf %214, %216 : vector<4x128xf32>
    %218 = arith.addf %204, %217 : vector<4x128xf32>
    %c1_121 = arith.constant 1 : index
    %c5_122 = arith.constant 5 : index
    %219 = vector.load %arg1[%c1_121, %c5_122] : memref<3x28xf32, #tpu.memory_space<vmem>>, vector<1x1xf32>
    %220 = vector.broadcast %219 : vector<1x1xf32> to vector<4x128xf32>
    %221 = arith.mulf %214, %220 : vector<4x128xf32>
    %222 = arith.addf %208, %221 : vector<4x128xf32>
    %c2_123 = arith.constant 2 : index
    %c5_124 = arith.constant 5 : index
    %223 = vector.load %arg1[%c2_123, %c5_124] : memref<3x28xf32, #tpu.memory_space<vmem>>, vector<1x1xf32>
    %224 = vector.broadcast %223 : vector<1x1xf32> to vector<4x128xf32>
    %225 = arith.mulf %214, %224 : vector<4x128xf32>
    %226 = arith.addf %212, %225 : vector<4x128xf32>
    %c7_125 = arith.constant 7 : index
    %c1_126 = arith.constant 1 : index
    %c0_127 = arith.constant 0 : index
    %227 = vector.load %arg2[%c7_125, %c1_126, %c0_127] : memref<18x5x128xf32, #tpu.memory_space<vmem>>, vector<1x4x128xf32>
    %228 = vector.shape_cast %227 : vector<1x4x128xf32> to vector<4x128xf32>
    %c0_128 = arith.constant 0 : index
    %c14 = arith.constant 14 : index
    %229 = vector.load %arg1[%c0_128, %c14] : memref<3x28xf32, #tpu.memory_space<vmem>>, vector<1x1xf32>
    %230 = vector.broadcast %229 : vector<1x1xf32> to vector<4x128xf32>
    %231 = arith.mulf %228, %230 : vector<4x128xf32>
    %232 = arith.addf %218, %231 : vector<4x128xf32>
    %c1_129 = arith.constant 1 : index
    %c14_130 = arith.constant 14 : index
    %233 = vector.load %arg1[%c1_129, %c14_130] : memref<3x28xf32, #tpu.memory_space<vmem>>, vector<1x1xf32>
    %234 = vector.broadcast %233 : vector<1x1xf32> to vector<4x128xf32>
    %235 = arith.mulf %228, %234 : vector<4x128xf32>
    %236 = arith.addf %222, %235 : vector<4x128xf32>
    %c2_131 = arith.constant 2 : index
    %c14_132 = arith.constant 14 : index
    %237 = vector.load %arg1[%c2_131, %c14_132] : memref<3x28xf32, #tpu.memory_space<vmem>>, vector<1x1xf32>
    %238 = vector.broadcast %237 : vector<1x1xf32> to vector<4x128xf32>
    %239 = arith.mulf %228, %238 : vector<4x128xf32>
    %240 = arith.addf %226, %239 : vector<4x128xf32>
    %c8_133 = arith.constant 8 : index
    %c1_134 = arith.constant 1 : index
    %c0_135 = arith.constant 0 : index
    %241 = vector.load %arg2[%c8_133, %c1_134, %c0_135] : memref<18x5x128xf32, #tpu.memory_space<vmem>>, vector<1x4x128xf32>
    %242 = vector.shape_cast %241 : vector<1x4x128xf32> to vector<4x128xf32>
    %c0_136 = arith.constant 0 : index
    %c23 = arith.constant 23 : index
    %243 = vector.load %arg1[%c0_136, %c23] : memref<3x28xf32, #tpu.memory_space<vmem>>, vector<1x1xf32>
    %244 = vector.broadcast %243 : vector<1x1xf32> to vector<4x128xf32>
    %245 = arith.mulf %242, %244 : vector<4x128xf32>
    %246 = arith.addf %232, %245 : vector<4x128xf32>
    %c1_137 = arith.constant 1 : index
    %c23_138 = arith.constant 23 : index
    %247 = vector.load %arg1[%c1_137, %c23_138] : memref<3x28xf32, #tpu.memory_space<vmem>>, vector<1x1xf32>
    %248 = vector.broadcast %247 : vector<1x1xf32> to vector<4x128xf32>
    %249 = arith.mulf %242, %248 : vector<4x128xf32>
    %250 = arith.addf %236, %249 : vector<4x128xf32>
    %c2_139 = arith.constant 2 : index
    %c23_140 = arith.constant 23 : index
    %251 = vector.load %arg1[%c2_139, %c23_140] : memref<3x28xf32, #tpu.memory_space<vmem>>, vector<1x1xf32>
    %252 = vector.broadcast %251 : vector<1x1xf32> to vector<4x128xf32>
    %253 = arith.mulf %242, %252 : vector<4x128xf32>
    %254 = arith.addf %240, %253 : vector<4x128xf32>
    %c12_141 = arith.constant 12 : index
    %c0_142 = arith.constant 0 : index
    %c0_143 = arith.constant 0 : index
    %255 = vector.load %arg2[%c12_141, %c0_142, %c0_143] : memref<18x5x128xf32, #tpu.memory_space<vmem>>, vector<1x4x128xf32>
    %256 = vector.shape_cast %255 : vector<1x4x128xf32> to vector<4x128xf32>
    %c0_144 = arith.constant 0 : index
    %c6_145 = arith.constant 6 : index
    %257 = vector.load %arg1[%c0_144, %c6_145] : memref<3x28xf32, #tpu.memory_space<vmem>>, vector<1x1xf32>
    %258 = vector.broadcast %257 : vector<1x1xf32> to vector<4x128xf32>
    %259 = arith.mulf %256, %258 : vector<4x128xf32>
    %260 = arith.addf %246, %259 : vector<4x128xf32>
    %c1_146 = arith.constant 1 : index
    %c6_147 = arith.constant 6 : index
    %261 = vector.load %arg1[%c1_146, %c6_147] : memref<3x28xf32, #tpu.memory_space<vmem>>, vector<1x1xf32>
    %262 = vector.broadcast %261 : vector<1x1xf32> to vector<4x128xf32>
    %263 = arith.mulf %256, %262 : vector<4x128xf32>
    %264 = arith.addf %250, %263 : vector<4x128xf32>
    %c2_148 = arith.constant 2 : index
    %c6_149 = arith.constant 6 : index
    %265 = vector.load %arg1[%c2_148, %c6_149] : memref<3x28xf32, #tpu.memory_space<vmem>>, vector<1x1xf32>
    %266 = vector.broadcast %265 : vector<1x1xf32> to vector<4x128xf32>
    %267 = arith.mulf %256, %266 : vector<4x128xf32>
    %268 = arith.addf %254, %267 : vector<4x128xf32>
    %c13_150 = arith.constant 13 : index
    %c0_151 = arith.constant 0 : index
    %c0_152 = arith.constant 0 : index
    %269 = vector.load %arg2[%c13_150, %c0_151, %c0_152] : memref<18x5x128xf32, #tpu.memory_space<vmem>>, vector<1x4x128xf32>
    %270 = vector.shape_cast %269 : vector<1x4x128xf32> to vector<4x128xf32>
    %c0_153 = arith.constant 0 : index
    %c15 = arith.constant 15 : index
    %271 = vector.load %arg1[%c0_153, %c15] : memref<3x28xf32, #tpu.memory_space<vmem>>, vector<1x1xf32>
    %272 = vector.broadcast %271 : vector<1x1xf32> to vector<4x128xf32>
    %273 = arith.mulf %270, %272 : vector<4x128xf32>
    %274 = arith.addf %260, %273 : vector<4x128xf32>
    %c1_154 = arith.constant 1 : index
    %c15_155 = arith.constant 15 : index
    %275 = vector.load %arg1[%c1_154, %c15_155] : memref<3x28xf32, #tpu.memory_space<vmem>>, vector<1x1xf32>
    %276 = vector.broadcast %275 : vector<1x1xf32> to vector<4x128xf32>
    %277 = arith.mulf %270, %276 : vector<4x128xf32>
    %278 = arith.addf %264, %277 : vector<4x128xf32>
    %c2_156 = arith.constant 2 : index
    %c15_157 = arith.constant 15 : index
    %279 = vector.load %arg1[%c2_156, %c15_157] : memref<3x28xf32, #tpu.memory_space<vmem>>, vector<1x1xf32>
    %280 = vector.broadcast %279 : vector<1x1xf32> to vector<4x128xf32>
    %281 = arith.mulf %270, %280 : vector<4x128xf32>
    %282 = arith.addf %268, %281 : vector<4x128xf32>
    %c14_158 = arith.constant 14 : index
    %c0_159 = arith.constant 0 : index
    %c0_160 = arith.constant 0 : index
    %283 = vector.load %arg2[%c14_158, %c0_159, %c0_160] : memref<18x5x128xf32, #tpu.memory_space<vmem>>, vector<1x4x128xf32>
    %284 = vector.shape_cast %283 : vector<1x4x128xf32> to vector<4x128xf32>
    %c0_161 = arith.constant 0 : index
    %c24 = arith.constant 24 : index
    %285 = vector.load %arg1[%c0_161, %c24] : memref<3x28xf32, #tpu.memory_space<vmem>>, vector<1x1xf32>
    %286 = vector.broadcast %285 : vector<1x1xf32> to vector<4x128xf32>
    %287 = arith.mulf %284, %286 : vector<4x128xf32>
    %288 = arith.addf %274, %287 : vector<4x128xf32>
    %c1_162 = arith.constant 1 : index
    %c24_163 = arith.constant 24 : index
    %289 = vector.load %arg1[%c1_162, %c24_163] : memref<3x28xf32, #tpu.memory_space<vmem>>, vector<1x1xf32>
    %290 = vector.broadcast %289 : vector<1x1xf32> to vector<4x128xf32>
    %291 = arith.mulf %284, %290 : vector<4x128xf32>
    %292 = arith.addf %278, %291 : vector<4x128xf32>
    %c2_164 = arith.constant 2 : index
    %c24_165 = arith.constant 24 : index
    %293 = vector.load %arg1[%c2_164, %c24_165] : memref<3x28xf32, #tpu.memory_space<vmem>>, vector<1x1xf32>
    %294 = vector.broadcast %293 : vector<1x1xf32> to vector<4x128xf32>
    %295 = arith.mulf %284, %294 : vector<4x128xf32>
    %296 = arith.addf %282, %295 : vector<4x128xf32>
    %c15_166 = arith.constant 15 : index
    %c0_167 = arith.constant 0 : index
    %c0_168 = arith.constant 0 : index
    %297 = vector.load %arg2[%c15_166, %c0_167, %c0_168] : memref<18x5x128xf32, #tpu.memory_space<vmem>>, vector<1x4x128xf32>
    %298 = vector.shape_cast %297 : vector<1x4x128xf32> to vector<4x128xf32>
    %c0_169 = arith.constant 0 : index
    %c7_170 = arith.constant 7 : index
    %299 = vector.load %arg1[%c0_169, %c7_170] : memref<3x28xf32, #tpu.memory_space<vmem>>, vector<1x1xf32>
    %300 = vector.broadcast %299 : vector<1x1xf32> to vector<4x128xf32>
    %301 = arith.mulf %298, %300 : vector<4x128xf32>
    %302 = arith.addf %288, %301 : vector<4x128xf32>
    %c1_171 = arith.constant 1 : index
    %c7_172 = arith.constant 7 : index
    %303 = vector.load %arg1[%c1_171, %c7_172] : memref<3x28xf32, #tpu.memory_space<vmem>>, vector<1x1xf32>
    %304 = vector.broadcast %303 : vector<1x1xf32> to vector<4x128xf32>
    %305 = arith.mulf %298, %304 : vector<4x128xf32>
    %306 = arith.addf %292, %305 : vector<4x128xf32>
    %c2_173 = arith.constant 2 : index
    %c7_174 = arith.constant 7 : index
    %307 = vector.load %arg1[%c2_173, %c7_174] : memref<3x28xf32, #tpu.memory_space<vmem>>, vector<1x1xf32>
    %308 = vector.broadcast %307 : vector<1x1xf32> to vector<4x128xf32>
    %309 = arith.mulf %298, %308 : vector<4x128xf32>
    %310 = arith.addf %296, %309 : vector<4x128xf32>
    %c16 = arith.constant 16 : index
    %c0_175 = arith.constant 0 : index
    %c0_176 = arith.constant 0 : index
    %311 = vector.load %arg2[%c16, %c0_175, %c0_176] : memref<18x5x128xf32, #tpu.memory_space<vmem>>, vector<1x4x128xf32>
    %312 = vector.shape_cast %311 : vector<1x4x128xf32> to vector<4x128xf32>
    %c0_177 = arith.constant 0 : index
    %c16_178 = arith.constant 16 : index
    %313 = vector.load %arg1[%c0_177, %c16_178] : memref<3x28xf32, #tpu.memory_space<vmem>>, vector<1x1xf32>
    %314 = vector.broadcast %313 : vector<1x1xf32> to vector<4x128xf32>
    %315 = arith.mulf %312, %314 : vector<4x128xf32>
    %316 = arith.addf %302, %315 : vector<4x128xf32>
    %c1_179 = arith.constant 1 : index
    %c16_180 = arith.constant 16 : index
    %317 = vector.load %arg1[%c1_179, %c16_180] : memref<3x28xf32, #tpu.memory_space<vmem>>, vector<1x1xf32>
    %318 = vector.broadcast %317 : vector<1x1xf32> to vector<4x128xf32>
    %319 = arith.mulf %312, %318 : vector<4x128xf32>
    %320 = arith.addf %306, %319 : vector<4x128xf32>
    %c2_181 = arith.constant 2 : index
    %c16_182 = arith.constant 16 : index
    %321 = vector.load %arg1[%c2_181, %c16_182] : memref<3x28xf32, #tpu.memory_space<vmem>>, vector<1x1xf32>
    %322 = vector.broadcast %321 : vector<1x1xf32> to vector<4x128xf32>
    %323 = arith.mulf %312, %322 : vector<4x128xf32>
    %324 = arith.addf %310, %323 : vector<4x128xf32>
    %c17 = arith.constant 17 : index
    %c0_183 = arith.constant 0 : index
    %c0_184 = arith.constant 0 : index
    %325 = vector.load %arg2[%c17, %c0_183, %c0_184] : memref<18x5x128xf32, #tpu.memory_space<vmem>>, vector<1x4x128xf32>
    %326 = vector.shape_cast %325 : vector<1x4x128xf32> to vector<4x128xf32>
    %c0_185 = arith.constant 0 : index
    %c25 = arith.constant 25 : index
    %327 = vector.load %arg1[%c0_185, %c25] : memref<3x28xf32, #tpu.memory_space<vmem>>, vector<1x1xf32>
    %328 = vector.broadcast %327 : vector<1x1xf32> to vector<4x128xf32>
    %329 = arith.mulf %326, %328 : vector<4x128xf32>
    %330 = arith.addf %316, %329 : vector<4x128xf32>
    %c1_186 = arith.constant 1 : index
    %c25_187 = arith.constant 25 : index
    %331 = vector.load %arg1[%c1_186, %c25_187] : memref<3x28xf32, #tpu.memory_space<vmem>>, vector<1x1xf32>
    %332 = vector.broadcast %331 : vector<1x1xf32> to vector<4x128xf32>
    %333 = arith.mulf %326, %332 : vector<4x128xf32>
    %334 = arith.addf %320, %333 : vector<4x128xf32>
    %c2_188 = arith.constant 2 : index
    %c25_189 = arith.constant 25 : index
    %335 = vector.load %arg1[%c2_188, %c25_189] : memref<3x28xf32, #tpu.memory_space<vmem>>, vector<1x1xf32>
    %336 = vector.broadcast %335 : vector<1x1xf32> to vector<4x128xf32>
    %337 = arith.mulf %326, %336 : vector<4x128xf32>
    %338 = arith.addf %324, %337 : vector<4x128xf32>
    %c12_190 = arith.constant 12 : index
    %c1_191 = arith.constant 1 : index
    %c0_192 = arith.constant 0 : index
    %339 = vector.load %arg2[%c12_190, %c1_191, %c0_192] : memref<18x5x128xf32, #tpu.memory_space<vmem>>, vector<1x4x128xf32>
    %340 = vector.shape_cast %339 : vector<1x4x128xf32> to vector<4x128xf32>
    %c0_193 = arith.constant 0 : index
    %c8_194 = arith.constant 8 : index
    %341 = vector.load %arg1[%c0_193, %c8_194] : memref<3x28xf32, #tpu.memory_space<vmem>>, vector<1x1xf32>
    %342 = vector.broadcast %341 : vector<1x1xf32> to vector<4x128xf32>
    %343 = arith.mulf %340, %342 : vector<4x128xf32>
    %344 = arith.addf %330, %343 : vector<4x128xf32>
    %c1_195 = arith.constant 1 : index
    %c8_196 = arith.constant 8 : index
    %345 = vector.load %arg1[%c1_195, %c8_196] : memref<3x28xf32, #tpu.memory_space<vmem>>, vector<1x1xf32>
    %346 = vector.broadcast %345 : vector<1x1xf32> to vector<4x128xf32>
    %347 = arith.mulf %340, %346 : vector<4x128xf32>
    %348 = arith.addf %334, %347 : vector<4x128xf32>
    %c2_197 = arith.constant 2 : index
    %c8_198 = arith.constant 8 : index
    %349 = vector.load %arg1[%c2_197, %c8_198] : memref<3x28xf32, #tpu.memory_space<vmem>>, vector<1x1xf32>
    %350 = vector.broadcast %349 : vector<1x1xf32> to vector<4x128xf32>
    %351 = arith.mulf %340, %350 : vector<4x128xf32>
    %352 = arith.addf %338, %351 : vector<4x128xf32>
    %c13_199 = arith.constant 13 : index
    %c1_200 = arith.constant 1 : index
    %c0_201 = arith.constant 0 : index
    %353 = vector.load %arg2[%c13_199, %c1_200, %c0_201] : memref<18x5x128xf32, #tpu.memory_space<vmem>>, vector<1x4x128xf32>
    %354 = vector.shape_cast %353 : vector<1x4x128xf32> to vector<4x128xf32>
    %c0_202 = arith.constant 0 : index
    %c17_203 = arith.constant 17 : index
    %355 = vector.load %arg1[%c0_202, %c17_203] : memref<3x28xf32, #tpu.memory_space<vmem>>, vector<1x1xf32>
    %356 = vector.broadcast %355 : vector<1x1xf32> to vector<4x128xf32>
    %357 = arith.mulf %354, %356 : vector<4x128xf32>
    %358 = arith.addf %344, %357 : vector<4x128xf32>
    %c1_204 = arith.constant 1 : index
    %c17_205 = arith.constant 17 : index
    %359 = vector.load %arg1[%c1_204, %c17_205] : memref<3x28xf32, #tpu.memory_space<vmem>>, vector<1x1xf32>
    %360 = vector.broadcast %359 : vector<1x1xf32> to vector<4x128xf32>
    %361 = arith.mulf %354, %360 : vector<4x128xf32>
    %362 = arith.addf %348, %361 : vector<4x128xf32>
    %c2_206 = arith.constant 2 : index
    %c17_207 = arith.constant 17 : index
    %363 = vector.load %arg1[%c2_206, %c17_207] : memref<3x28xf32, #tpu.memory_space<vmem>>, vector<1x1xf32>
    %364 = vector.broadcast %363 : vector<1x1xf32> to vector<4x128xf32>
    %365 = arith.mulf %354, %364 : vector<4x128xf32>
    %366 = arith.addf %352, %365 : vector<4x128xf32>
    %c14_208 = arith.constant 14 : index
    %c1_209 = arith.constant 1 : index
    %c0_210 = arith.constant 0 : index
    %367 = vector.load %arg2[%c14_208, %c1_209, %c0_210] : memref<18x5x128xf32, #tpu.memory_space<vmem>>, vector<1x4x128xf32>
    %368 = vector.shape_cast %367 : vector<1x4x128xf32> to vector<4x128xf32>
    %c0_211 = arith.constant 0 : index
    %c26 = arith.constant 26 : index
    %369 = vector.load %arg1[%c0_211, %c26] : memref<3x28xf32, #tpu.memory_space<vmem>>, vector<1x1xf32>
    %370 = vector.broadcast %369 : vector<1x1xf32> to vector<4x128xf32>
    %371 = arith.mulf %368, %370 : vector<4x128xf32>
    %372 = arith.addf %358, %371 : vector<4x128xf32>
    %c1_212 = arith.constant 1 : index
    %c26_213 = arith.constant 26 : index
    %373 = vector.load %arg1[%c1_212, %c26_213] : memref<3x28xf32, #tpu.memory_space<vmem>>, vector<1x1xf32>
    %374 = vector.broadcast %373 : vector<1x1xf32> to vector<4x128xf32>
    %375 = arith.mulf %368, %374 : vector<4x128xf32>
    %376 = arith.addf %362, %375 : vector<4x128xf32>
    %c2_214 = arith.constant 2 : index
    %c26_215 = arith.constant 26 : index
    %377 = vector.load %arg1[%c2_214, %c26_215] : memref<3x28xf32, #tpu.memory_space<vmem>>, vector<1x1xf32>
    %378 = vector.broadcast %377 : vector<1x1xf32> to vector<4x128xf32>
    %379 = arith.mulf %368, %378 : vector<4x128xf32>
    %380 = arith.addf %366, %379 : vector<4x128xf32>
    %c0_216 = arith.constant 0 : index
    %c27 = arith.constant 27 : index
    %381 = vector.load %arg1[%c0_216, %c27] : memref<3x28xf32, #tpu.memory_space<vmem>>, vector<1x1xf32>
    %382 = vector.broadcast %381 : vector<1x1xf32> to vector<4x128xf32>
    %383 = arith.addf %372, %382 : vector<4x128xf32>
    %cst = arith.constant 0.000000e+00 : f32
    %384 = vector.broadcast %cst : f32 to vector<4x128xf32>
    %385 = arith.maximumf %383, %384 : vector<4x128xf32>
    %c0_217 = arith.constant 0 : index
    %c0_218 = arith.constant 0 : index
    %c0_219 = arith.constant 0 : index
    %386 = vector.load %arg3[%c0_217, %c0_218, %c0_219] : memref<3x4x128xf32, #tpu.memory_space<vmem>>, vector<1x4x128xf32>
    %387 = vector.shape_cast %386 : vector<1x4x128xf32> to vector<4x128xf32>
    %388 = vector.shape_cast %385 : vector<4x128xf32> to vector<1x4x128xf32>
    tpu.vector_store %arg3[%c0_217, %c0_218, %c0_219], %388 {strides = array<i32>} : memref<3x4x128xf32, #tpu.memory_space<vmem>>, vector<1x4x128xf32>,
    %cst_220 = arith.constant 0.000000e+00 : f32
    %389 = vector.broadcast %cst_220 : f32 to vector<4x128xf32>
    %390 = arith.select %5, %385, %389 : vector<4x128xi1>, vector<4x128xf32>
    %391 = vector.shape_cast %390 : vector<4x128xf32> to vector<1x4x128xf32>
    %cst_221 = arith.constant dense<0.000000e+00> : vector<1xf32>
    %392 = vector.multi_reduction <add>, %391, %cst_221 [1, 2] : vector<1x4x128xf32> to vector<1xf32>
    %393 = vector.shape_cast %392 : vector<1xf32> to vector<1x1x1xf32>
    %394 = vector.extract %393[0, 0, 0] : f32 from vector<1x1x1xf32>
    %395 = vector.broadcast %394 : f32 to vector<1x1xf32>
    %396 = arith.mulf %390, %390 : vector<4x128xf32>
    %397 = vector.shape_cast %396 : vector<4x128xf32> to vector<1x4x128xf32>
    %cst_222 = arith.constant dense<0.000000e+00> : vector<1xf32>
    %398 = vector.multi_reduction <add>, %397, %cst_222 [1, 2] : vector<1x4x128xf32> to vector<1xf32>
    %399 = vector.shape_cast %398 : vector<1xf32> to vector<1x1x1xf32>
    %400 = vector.extract %399[0, 0, 0] : f32 from vector<1x1x1xf32>
    %401 = vector.broadcast %400 : f32 to vector<1x1xf32>
    %c1_223 = arith.constant 1 : index
    %c27_224 = arith.constant 27 : index
    %402 = vector.load %arg1[%c1_223, %c27_224] : memref<3x28xf32, #tpu.memory_space<vmem>>, vector<1x1xf32>
    %403 = vector.broadcast %402 : vector<1x1xf32> to vector<4x128xf32>
    %404 = arith.addf %376, %403 : vector<4x128xf32>
    %cst_225 = arith.constant 0.000000e+00 : f32
    %405 = vector.broadcast %cst_225 : f32 to vector<4x128xf32>
    %406 = arith.maximumf %404, %405 : vector<4x128xf32>
    %c1_226 = arith.constant 1 : index
    %c0_227 = arith.constant 0 : index
    %c0_228 = arith.constant 0 : index
    %407 = vector.load %arg3[%c1_226, %c0_227, %c0_228] : memref<3x4x128xf32, #tpu.memory_space<vmem>>, vector<1x4x128xf32>
    %408 = vector.shape_cast %407 : vector<1x4x128xf32> to vector<4x128xf32>
    %409 = vector.shape_cast %406 : vector<4x128xf32> to vector<1x4x128xf32>
    tpu.vector_store %arg3[%c1_226, %c0_227, %c0_228], %409 {strides = array<i32>} : memref<3x4x128xf32, #tpu.memory_space<vmem>>, vector<1x4x128xf32>,
    %cst_229 = arith.constant 0.000000e+00 : f32
    %410 = vector.broadcast %cst_229 : f32 to vector<4x128xf32>
    %411 = arith.select %5, %406, %410 : vector<4x128xi1>, vector<4x128xf32>
    %412 = vector.shape_cast %411 : vector<4x128xf32> to vector<1x4x128xf32>
    %cst_230 = arith.constant dense<0.000000e+00> : vector<1xf32>
    %413 = vector.multi_reduction <add>, %412, %cst_230 [1, 2] : vector<1x4x128xf32> to vector<1xf32>
    %414 = vector.shape_cast %413 : vector<1xf32> to vector<1x1x1xf32>
    %415 = vector.extract %414[0, 0, 0] : f32 from vector<1x1x1xf32>
    %416 = vector.broadcast %415 : f32 to vector<1x1xf32>
    %417 = arith.mulf %411, %411 : vector<4x128xf32>
    %418 = vector.shape_cast %417 : vector<4x128xf32> to vector<1x4x128xf32>
    %cst_231 = arith.constant dense<0.000000e+00> : vector<1xf32>
    %419 = vector.multi_reduction <add>, %418, %cst_231 [1, 2] : vector<1x4x128xf32> to vector<1xf32>
    %420 = vector.shape_cast %419 : vector<1xf32> to vector<1x1x1xf32>
    %421 = vector.extract %420[0, 0, 0] : f32 from vector<1x1x1xf32>
    %422 = vector.broadcast %421 : f32 to vector<1x1xf32>
    %c2_232 = arith.constant 2 : index
    %c27_233 = arith.constant 27 : index
    %423 = vector.load %arg1[%c2_232, %c27_233] : memref<3x28xf32, #tpu.memory_space<vmem>>, vector<1x1xf32>
    %424 = vector.broadcast %423 : vector<1x1xf32> to vector<4x128xf32>
    %425 = arith.addf %380, %424 : vector<4x128xf32>
    %cst_234 = arith.constant 0.000000e+00 : f32
    %426 = vector.broadcast %cst_234 : f32 to vector<4x128xf32>
    %427 = arith.maximumf %425, %426 : vector<4x128xf32>
    %c2_235 = arith.constant 2 : index
    %c0_236 = arith.constant 0 : index
    %c0_237 = arith.constant 0 : index
    %428 = vector.load %arg3[%c2_235, %c0_236, %c0_237] : memref<3x4x128xf32, #tpu.memory_space<vmem>>, vector<1x4x128xf32>
    %429 = vector.shape_cast %428 : vector<1x4x128xf32> to vector<4x128xf32>
    %430 = vector.shape_cast %427 : vector<4x128xf32> to vector<1x4x128xf32>
    tpu.vector_store %arg3[%c2_235, %c0_236, %c0_237], %430 {strides = array<i32>} : memref<3x4x128xf32, #tpu.memory_space<vmem>>, vector<1x4x128xf32>,
    %cst_238 = arith.constant 0.000000e+00 : f32
    %431 = vector.broadcast %cst_238 : f32 to vector<4x128xf32>
    %432 = arith.select %5, %427, %431 : vector<4x128xi1>, vector<4x128xf32>
    %433 = vector.shape_cast %432 : vector<4x128xf32> to vector<1x4x128xf32>
    %cst_239 = arith.constant dense<0.000000e+00> : vector<1xf32>
    %434 = vector.multi_reduction <add>, %433, %cst_239 [1, 2] : vector<1x4x128xf32> to vector<1xf32>
    %435 = vector.shape_cast %434 : vector<1xf32> to vector<1x1x1xf32>
    %436 = vector.extract %435[0, 0, 0] : f32 from vector<1x1x1xf32>
    %437 = vector.broadcast %436 : f32 to vector<1x1xf32>
    %438 = arith.mulf %432, %432 : vector<4x128xf32>
    %439 = vector.shape_cast %438 : vector<4x128xf32> to vector<1x4x128xf32>
    %cst_240 = arith.constant dense<0.000000e+00> : vector<1xf32>
    %440 = vector.multi_reduction <add>, %439, %cst_240 [1, 2] : vector<1x4x128xf32> to vector<1xf32>
    %441 = vector.shape_cast %440 : vector<1xf32> to vector<1x1x1xf32>
    %442 = vector.extract %441[0, 0, 0] : f32 from vector<1x1x1xf32>
    %443 = vector.broadcast %442 : f32 to vector<1x1xf32>
    %444 = tpu.concatenate %395, %416, %437 in 0 : vector<1x1xf32>, vector<1x1xf32>, vector<1x1xf32> -> vector<3x1xf32>
    %445 = vector.shape_cast %444 : vector<3x1xf32> to vector<1x3x1xf32>
    %c0_241 = arith.constant 0 : index
    %c0_242 = arith.constant 0 : index
    %c0_243 = arith.constant 0 : index
    %446 = vector.load %arg4[%c0_241, %c0_242, %c0_243] : memref<1x3x1xf32, #tpu.memory_space<vmem>>, vector<1x3x1xf32>
    tpu.vector_store %arg4[%c0_241, %c0_242, %c0_243], %445 {strides = array<i32>} : memref<1x3x1xf32, #tpu.memory_space<vmem>>, vector<1x3x1xf32>,
    %447 = tpu.concatenate %401, %422, %443 in 0 : vector<1x1xf32>, vector<1x1xf32>, vector<1x1xf32> -> vector<3x1xf32>
    %448 = vector.shape_cast %447 : vector<3x1xf32> to vector<1x3x1xf32>
    %c0_244 = arith.constant 0 : index
    %c0_245 = arith.constant 0 : index
    %c0_246 = arith.constant 0 : index
    %449 = vector.load %arg5[%c0_244, %c0_245, %c0_246] : memref<1x3x1xf32, #tpu.memory_space<vmem>>, vector<1x3x1xf32>
    tpu.vector_store %arg5[%c0_244, %c0_245, %c0_246], %448 {strides = array<i32>} : memref<1x3x1xf32, #tpu.memory_space<vmem>>, vector<1x3x1xf32>,
    return
  }
  func.func @transform_0(%arg0: i32) -> (i32, i32) {
    %c0_i32 = arith.constant 0 : i32
    %c0_i32_0 = arith.constant 0 : i32
    %c0_i32_1 = arith.constant 0 : i32
    return %c0_i32, %c0_i32_0 : i32, i32
  }
  func.func @transform_1(%arg0: i32) -> (i32, i32, i32) {
    %c0_i32 = arith.constant 0 : i32
    %c0_i32_0 = arith.constant 0 : i32
    %c0_i32_1 = arith.constant 0 : i32
    return %c0_i32, %c0_i32_0, %arg0 : i32, i32, i32
  }
  func.func @transform_2(%arg0: i32) -> (i32, i32, i32) {
    %c0_i32 = arith.constant 0 : i32
    %c0_i32_0 = arith.constant 0 : i32
    %c0_i32_1 = arith.constant 0 : i32
    return %c0_i32, %c0_i32_0, %arg0 : i32, i32, i32
  }
  func.func @transform_3(%arg0: i32) -> (i32, i32, i32) {
    %c0_i32 = arith.constant 0 : i32
    %c0_i32_0 = arith.constant 0 : i32
    %c0_i32_1 = arith.constant 0 : i32
    return %arg0, %c0_i32, %c0_i32_0 : i32, i32, i32
  }
  func.func @transform_4(%arg0: i32) -> (i32, i32, i32) {
    %c0_i32 = arith.constant 0 : i32
    %c0_i32_0 = arith.constant 0 : i32
    %c0_i32_1 = arith.constant 0 : i32
    return %arg0, %c0_i32, %c0_i32_0 : i32, i32, i32
  }
}

</mosaic_0001>

<bundles_post_ra>
// kernel: encoder_forward.2
= control target key start
LH: loop header
LB: loop body
LE: loop exit
PB: predicated region body
PF: predicated region fallthrough
CT: control target
= control target key end

     0   :  { %s979_s19 = smov 119   ;;  %s980_s22 = smov 110   ;;  %vm724_vm1 = vcmask 1040384   ;;  %vm726_vm2 = vcmask 1041408   ;;  %vm728_vm3 = vcmask 2048   ;;  %s1436_s0 = inlined_call_operand.vmem [shape: f32[3,28], index: 0, kind: input, shape index: {}]   ;;  %s1437_s1 = inlined_call_operand.vmem [shape: f32[18,9,128], index: 1, kind: input, shape index: {}]   ;;  %s1438_s2 = inlined_call_operand.vmem [shape: f32[3,8,128], index: 2, kind: output, shape index: {0}]   ;;  %s1439_s3 = inlined_call_operand.vmem [shape: f32[1,3,1], index: 3, kind: output, shape index: {1}]   ;;  %s1440_s4 = inlined_call_operand.vmem [shape: f32[1,3,1], index: 4, kind: output, shape index: {2}]  }
   0x1   :  { %v1034_v0 = vld [vmem:[%s1436_s0 + $0x2] sm:$0x1]  ;;  %v1039_v1 = vld [vmem:[%s1436_s0] sm:$0x1]  ;;  %v1046_v2 = vld [vmem:[%s1436_s0 + $0x1] sm:$0x1] }
   0x2   :  { %55 = vrot.lane.b32.xlu1 %v1034_v0, %s979_s19  ;;  %41 = vrot.lane.b32.xlu0 %v1039_v1, %s979_s19  ;;  %772 = vpush %v1039_v1  ;;  %s981_s23 = smov 127   ;;  %s982_s24 = smov 118   ;;  %v1080_v3 = vld [vmem:[%s1437_s1] sm:$0xff]  ;;  %v1145_v36 = vld [vmem:[%s1437_s1 + $0x10] sm:$0xff] }
   0x3   :  { %774 = vpush %v1046_v2  ;;  %s983_s25 = smov 109   ;;  %s984_s26 = smov 126   ;;  %v1155_v45 = vld [vmem:[%s1437_s1 + $0x20] sm:$0xff]  ;;  %v1162_v53 = vld [vmem:[%s1437_s1 + $0x30] sm:$0xff] }
   0x4   :  { %776 = vpush %v1034_v0  ;;  %s985_s27 = smov 117   ;;  %s986_s28 = smov 108  }
   0x5   :  { %s987_s29 = smov 125   ;;  %s988_s8 = smov 116  }
   0x6   :  { %64 = vrot.lane.b32.xlu1 %v1039_v1, %s980_s22  ;;  %48 = vrot.lane.b32.xlu0 %v1046_v2, %s979_s19  ;;  %s989_s9 = smov 107   ;;  %s990_s10 = smov 124  }
   0x7   :  { %s991_s11 = smov 115   ;;  %s992_s12 = smov 106  }
   0x8   :  { %s993_s13 = smov 123   ;;  %s994_s14 = smov 114  }
   0x9   :  { %s995_s15 = smov 105   ;;  %s996_s16 = smov 122  }
   0xa   :  { %78 = vrot.lane.b32.xlu1 %v1034_v0, %s980_s22  ;;  %71 = vrot.lane.b32.xlu0 %v1046_v2, %s980_s22  ;;  %s997_s17 = smov 113   ;;  %s998_s18 = smov 104  }
   0xb   :  { %s999_s19 = smov 121   ;;  %s1000_s20 = smov 112  }
   0xc   :  { %s1001_s21 = smov 103   ;;  %s1002_s22 = smov 120  }
   0xe   :  { %94 = vrot.lane.b32.xlu1 %v1046_v2, %s981_s23  ;;  %87 = vrot.lane.b32.xlu0 %v1039_v1, %s981_s23 }
  0x12   :  { %110 = vrot.lane.b32.xlu1 %v1039_v1, %s982_s24  ;;  %101 = vrot.lane.b32.xlu0 %v1034_v0, %s981_s23  ;;  %s1003_s23 = smov 111  }
  0x16   :  { %124 = vrot.lane.b32.xlu1 %v1034_v0, %s982_s24  ;;  %117 = vrot.lane.b32.xlu0 %v1046_v2, %s982_s24  ;;  %s1004_s24 = smov 102  }
  0x1a   :  { %140 = vrot.lane.b32.xlu1 %v1046_v2, %s983_s25  ;;  %133 = vrot.lane.b32.xlu0 %v1039_v1, %s983_s25 }
  0x1e   :  { %155 = vrot.lane.b32.xlu1 %v1039_v1, %s984_s26  ;;  %147 = vrot.lane.b32.xlu0 %v1034_v0, %s983_s25  ;;  %s1005_s25 = smov 101  }
  0x22   :  { %169 = vrot.lane.b32.xlu1 %v1034_v0, %s984_s26  ;;  %162 = vrot.lane.b32.xlu0 %v1046_v2, %s984_s26 }
  0x26   :  { %184 = vrot.lane.b32.xlu1 %v1046_v2, %s985_s27  ;;  %177 = vrot.lane.b32.xlu0 %v1039_v1, %s985_s27 }
  0x2a   :  { %199 = vrot.lane.b32.xlu1 %v1039_v1, %s986_s28  ;;  %191 = vrot.lane.b32.xlu0 %v1034_v0, %s985_s27 }
  0x2e   :  { %213 = vrot.lane.b32.xlu1 %v1034_v0, %s986_s28  ;;  %206 = vrot.lane.b32.xlu0 %v1046_v2, %s986_s28 }
  0x32   :  { %229 = vrot.lane.b32.xlu1 %v1046_v2, %s987_s29  ;;  %222 = vrot.lane.b32.xlu0 %v1039_v1, %s987_s29 }
  0x33   :  { %s1075_s30 = spop %772 }
  0x34   :  { %s775_s5 = spop %774 }
  0x35   :  { %v30_v4 = vstv %s775_s5  ;;  %s777_s26 = spop %776 }
  0x36   :  { %245 = vrot.lane.b32.xlu1 %v1039_v1, %s988_s8  ;;  %236 = vrot.lane.b32.xlu0 %v1034_v0, %s987_s29  ;;  %v1085_v5 = vmul.f32 %v30_v4, %v1080_v3  ;;  %v36_v32 = vstv %s777_s26 }
  0x37   :  { %v38_v35 = vmul.f32 %v36_v32, %v1080_v3 }
  0x3a   :  { %259 = vrot.lane.b32.xlu1 %v1034_v0, %s988_s8  ;;  %252 = vrot.lane.b32.xlu0 %v1046_v2, %s988_s8 }
  0x3e   :  { %275 = vrot.lane.b32.xlu1 %v1046_v2, %s989_s9  ;;  %268 = vrot.lane.b32.xlu0 %v1039_v1, %s989_s9 }
  0x42   :  { %291 = vrot.lane.b32.xlu1 %v1039_v1, %s990_s10  ;;  %282 = vrot.lane.b32.xlu0 %v1034_v0, %s989_s9 }
  0x46   :  { %305 = vrot.lane.b32.xlu1 %v1034_v0, %s990_s10  ;;  %298 = vrot.lane.b32.xlu0 %v1046_v2, %s990_s10 }
  0x4a   :  { %321 = vrot.lane.b32.xlu1 %v1046_v2, %s991_s11  ;;  %314 = vrot.lane.b32.xlu0 %v1039_v1, %s991_s11 }
  0x4e   :  { %337 = vrot.lane.b32.xlu1 %v1039_v1, %s992_s12  ;;  %328 = vrot.lane.b32.xlu0 %v1034_v0, %s991_s11 }
  0x52   :  { %351 = vrot.lane.b32.xlu1 %v1034_v0, %s992_s12  ;;  %344 = vrot.lane.b32.xlu0 %v1046_v2, %s992_s12 }
  0x56   :  { %366 = vrot.lane.b32.xlu1 %v1046_v2, %s993_s13  ;;  %359 = vrot.lane.b32.xlu0 %v1039_v1, %s993_s13 }
  0x5a   :  { %381 = vrot.lane.b32.xlu1 %v1039_v1, %s994_s14  ;;  %373 = vrot.lane.b32.xlu0 %v1034_v0, %s993_s13 }
  0x5e   :  { %395 = vrot.lane.b32.xlu1 %v1034_v0, %s994_s14  ;;  %388 = vrot.lane.b32.xlu0 %v1046_v2, %s994_s14 }
  0x62   :  { %410 = vrot.lane.b32.xlu1 %v1046_v2, %s995_s15  ;;  %403 = vrot.lane.b32.xlu0 %v1039_v1, %s995_s15 }
  0x66   :  { %426 = vrot.lane.b32.xlu1 %v1039_v1, %s996_s16  ;;  %417 = vrot.lane.b32.xlu0 %v1034_v0, %s995_s15 }
  0x6a   :  { %440 = vrot.lane.b32.xlu1 %v1034_v0, %s996_s16  ;;  %433 = vrot.lane.b32.xlu0 %v1046_v2, %s996_s16 }
  0x6e   :  { %456 = vrot.lane.b32.xlu1 %v1046_v2, %s997_s17  ;;  %449 = vrot.lane.b32.xlu0 %v1039_v1, %s997_s17 }
  0x72   :  { %472 = vrot.lane.b32.xlu1 %v1039_v1, %s998_s18  ;;  %463 = vrot.lane.b32.xlu0 %v1034_v0, %s997_s17 }
  0x74   :  { %v56_v6 = vpop.permute.xlu1 %55  ;;  %v42_v7 = vpop.permute.xlu0 %41 }
  0x75   :  { %778 = vpush %v42_v7 }
  0x76   :  { %486 = vrot.lane.b32.xlu1 %v1034_v0, %s998_s18  ;;  %479 = vrot.lane.b32.xlu0 %v1046_v2, %s998_s18 }
  0x78   :  { %v65_v8 = vpop.permute.xlu1 %64  ;;  %v49_v9 = vpop.permute.xlu0 %48 }
  0x79   :  { %780 = vpush %v49_v9 }
  0x7a   :  { %782 = vpush %v56_v6  ;;  %502 = vrot.lane.b32.xlu1 %v1046_v2, %s999_s19  ;;  %495 = vrot.lane.b32.xlu0 %v1039_v1, %s999_s19 }
  0x7b   :  { %784 = vpush %v65_v8 }
  0x7c   :  { %v79_v10 = vpop.permute.xlu1 %78  ;;  %v72_v11 = vpop.permute.xlu0 %71 }
  0x7d   :  { %786 = vpush %v72_v11 }
  0x7e   :  { %788 = vpush %v79_v10  ;;  %518 = vrot.lane.b32.xlu1 %v1039_v1, %s1000_s20  ;;  %509 = vrot.lane.b32.xlu0 %v1034_v0, %s999_s19  ;;  %v1180_v10 = vld [vmem:[%s1437_s1 + $0x50] sm:$0xff] }
  0x80   :  { %v95_v12 = vpop.permute.xlu1 %94  ;;  %v88_v13 = vpop.permute.xlu0 %87 }
  0x81   :  { %790 = vpush %v88_v13 }
  0x82   :  { %792 = vpush %v95_v12  ;;  %532 = vrot.lane.b32.xlu1 %v1034_v0, %s1000_s20  ;;  %525 = vrot.lane.b32.xlu0 %v1046_v2, %s1000_s20 }
  0x84   :  { %v111_v14 = vpop.permute.xlu1 %110  ;;  %v102_v15 = vpop.permute.xlu0 %101 }
  0x85   :  { %794 = vpush %v102_v15 }
  0x86   :  { %796 = vpush %v111_v14  ;;  %548 = vrot.lane.b32.xlu1 %v1046_v2, %s1001_s21  ;;  %541 = vrot.lane.b32.xlu0 %v1039_v1, %s1001_s21 }
  0x88   :  { %v125_v16 = vpop.permute.xlu1 %124  ;;  %v118_v17 = vpop.permute.xlu0 %117 }
  0x89   :  { %798 = vpush %v118_v17 }
  0x8a   :  { %800 = vpush %v125_v16  ;;  %563 = vrot.lane.b32.xlu1 %v1039_v1, %s1002_s22  ;;  %555 = vrot.lane.b32.xlu0 %v1034_v0, %s1001_s21 }
  0x8c   :  { %v141_v18 = vpop.permute.xlu1 %140  ;;  %v134_v19 = vpop.permute.xlu0 %133 }
  0x8d   :  { %802 = vpush %v134_v19 }
  0x8e   :  { %804 = vpush %v141_v18  ;;  %577 = vrot.lane.b32.xlu1 %v1034_v0, %s1002_s22  ;;  %570 = vrot.lane.b32.xlu0 %v1046_v2, %s1002_s22 }
  0x90   :  { %v156_v20 = vpop.permute.xlu1 %155  ;;  %v148_v21 = vpop.permute.xlu0 %147 }
  0x91   :  { %806 = vpush %v148_v21 }
  0x92   :  { %808 = vpush %v156_v20  ;;  %592 = vrot.lane.b32.xlu1 %v1046_v2, %s1003_s23  ;;  %585 = vrot.lane.b32.xlu0 %v1039_v1, %s1003_s23 }
  0x94   :  { %v170_v22 = vpop.permute.xlu1 %169  ;;  %v163_v23 = vpop.permute.xlu0 %162 }
  0x95   :  { %810 = vpush %v163_v23 }
  0x96   :  { %812 = vpush %v170_v22  ;;  %607 = vrot.lane.b32.xlu1 %v1039_v1, %s1004_s24  ;;  %599 = vrot.lane.b32.xlu0 %v1034_v0, %s1003_s23  ;;  %v1191_v22 = vld [vmem:[%s1437_s1 + $0x1] sm:$0xff] }
  0x98   :  { %v185_v24 = vpop.permute.xlu1 %184  ;;  %v178_v25 = vpop.permute.xlu0 %177 }
  0x99   :  { %814 = vpush %v178_v25 }
  0x9a   :  { %816 = vpush %v185_v24  ;;  %621 = vrot.lane.b32.xlu1 %v1034_v0, %s1004_s24  ;;  %614 = vrot.lane.b32.xlu0 %v1046_v2, %s1004_s24 }
  0x9c   :  { %v200_v26 = vpop.permute.xlu1 %199  ;;  %v192_v27 = vpop.permute.xlu0 %191 }
  0x9d   :  { %818 = vpush %v192_v27 }
  0x9e   :  { %820 = vpush %v200_v26  ;;  %628 = vrot.lane.b32.xlu0 %v1039_v1, %s1005_s25  ;;  %v1173_v1 = vld [vmem:[%s1437_s1 + $0x40] sm:$0xff] }
  0xa0   :  { %v214_v28 = vpop.permute.xlu1 %213  ;;  %v207_v29 = vpop.permute.xlu0 %206 }
  0xa1   :  { %822 = vpush %v207_v29 }
  0xa2   :  { %824 = vpush %v214_v28 }
  0xa4   :  { %v230_v30 = vpop.permute.xlu1 %229  ;;  %v223_v31 = vpop.permute.xlu0 %222 }
  0xa5   :  { %826 = vpush %v223_v31 }
  0xa6   :  { %828 = vpush %v230_v30  ;;  %s1139_s27 = spop %778  ;;  %v1198_v30 = vld [vmem:[%s1437_s1 + $0x11] sm:$0xff] }
  0xa8   :  { %v246_v33 = vpop.permute.xlu1 %245  ;;  %v237_v34 = vpop.permute.xlu0 %236 }
  0xa9   :  { %830 = vpush %v237_v34 }
  0xaa   :  { %832 = vpush %v246_v33  ;;  %s781_s28 = spop %780 }
  0xab   :  { %v51_v37 = vstv %s781_s28  ;;  %s783_s6 = spop %782 }
  0xac   :  { %v53_v38 = vmul.f32 %v1145_v36, %v51_v37  ;;  %v58_v39 = vstv %s783_s6  ;;  %v260_v40 = vpop.permute.xlu1 %259  ;;  %v253_v41 = vpop.permute.xlu0 %252  ;;  %s1149_s7 = spop %784 }
  0xad   :  { %v60_v42 = vmul.f32 %v1145_v36, %v58_v39  ;;  %834 = vpush %v253_v41 }
  0xae   :  { %v54_v43 = vadd.f32 %v53_v38, %v1085_v5  ;;  %836 = vpush %v260_v40  ;;  %s787_s8 = spop %786 }
  0xaf   :  { %v61_v44 = vadd.f32 %v60_v42, %v38_v35  ;;  %v74_v46 = vstv %s787_s8  ;;  %s789_s11 = spop %788 }
  0xb0   :  { %v76_v47 = vmul.f32 %v1155_v45, %v74_v46  ;;  %v81_v48 = vstv %s789_s11  ;;  %v276_v49 = vpop.permute.xlu1 %275  ;;  %v269_v50 = vpop.permute.xlu0 %268 }
  0xb1   :  { %v83_v51 = vmul.f32 %v1155_v45, %v81_v48  ;;  %838 = vpush %v269_v50 }
  0xb2   :  { %v77_v52 = vadd.f32 %v76_v47, %v54_v43  ;;  %840 = vpush %v276_v49  ;;  %s1164_s14 = spop %790  ;;  %v1209_v43 = vld [vmem:[%s1437_s1 + $0x21] sm:$0xff] }
  0xb3   :  { %v84_v54 = vadd.f32 %v83_v51, %v61_v44  ;;  %s793_s15 = spop %792 }
  0xb4   :  { %v97_v55 = vstv %s793_s15  ;;  %v292_v56 = vpop.permute.xlu1 %291  ;;  %v283_v57 = vpop.permute.xlu0 %282 }
  0xb5   :  { %v99_v58 = vmul.f32 %v1162_v53, %v97_v55  ;;  %842 = vpush %v283_v57 }
  0xb6   :  { %844 = vpush %v292_v56  ;;  %s795_s16 = spop %794 }
  0xb7   :  { %v100_v59 = vadd.f32 %v99_v58, %v77_v52  ;;  %v104_v60 = vstv %s795_s16  ;;  %s1168_s17 = spop %796  ;;  %v1216_v52 = vld [vmem:[%s1437_s1 + $0x60] sm:$0xff] }
  0xb8   :  { %v106_v61 = vmul.f32 %v1162_v53, %v104_v60  ;;  %v306_v62 = vpop.permute.xlu1 %305  ;;  %v299_v63 = vpop.permute.xlu0 %298 }
  0xb9   :  { %846 = vpush %v299_v63 }
  0xba   :  { %v107_v0 = vadd.f32 %v106_v61, %v84_v54  ;;  %848 = vpush %v306_v62  ;;  %s799_s18 = spop %798 }
  0xbb   :  { %v120_v2 = vstv %s799_s18  ;;  %s801_s21 = spop %800 }
  0xbc   :  { %v122_v4 = vmul.f32 %v1173_v1, %v120_v2  ;;  %v127_v5 = vstv %s801_s21  ;;  %v322_v6 = vpop.permute.xlu1 %321  ;;  %v315_v7 = vpop.permute.xlu0 %314  ;;  %v1227_v2 = vld [vmem:[%s1437_s1 + $0x70] sm:$0xff] }
  0xbd   :  { %v129_v8 = vmul.f32 %v1173_v1, %v127_v5  ;;  %850 = vpush %v315_v7 }
  0xbe   :  { %v123_v9 = vadd.f32 %v122_v4, %v100_v59  ;;  %852 = vpush %v322_v6  ;;  %s1182_s24 = spop %802 }
  0xbf   :  { %v130_v11 = vadd.f32 %v129_v8, %v107_v0  ;;  %s805_s26 = spop %804 }
  0xc0   :  { %v143_v12 = vstv %s805_s26  ;;  %v338_v13 = vpop.permute.xlu1 %337  ;;  %v329_v14 = vpop.permute.xlu0 %328 }
  0xc1   :  { %v145_v15 = vmul.f32 %v1180_v10, %v143_v12  ;;  %854 = vpush %v329_v14  ;;  %v1234_v12 = vld [vmem:[%s1437_s1 + $0x80] sm:$0xff] }
  0xc2   :  { %856 = vpush %v338_v13  ;;  %s807_s28 = spop %806 }
  0xc3   :  { %v146_v16 = vadd.f32 %v145_v15, %v123_v9  ;;  %v150_v17 = vstv %s807_s28  ;;  %s1186_s29 = spop %808 }
  0xc4   :  { %v152_v18 = vmul.f32 %v1180_v10, %v150_v17  ;;  %v352_v19 = vpop.permute.xlu1 %351  ;;  %v345_v20 = vpop.permute.xlu0 %344 }
  0xc5   :  { %858 = vpush %v345_v20 }
  0xc6   :  { %v153_v21 = vadd.f32 %v152_v18, %v130_v11  ;;  %860 = vpush %v352_v19  ;;  %s811_s5 = spop %810 }
  0xc7   :  { %v165_v23 = vstv %s811_s5  ;;  %s813_s9 = spop %812 }
  0xc8   :  { %v167_v24 = vmul.f32 %v165_v23, %v1191_v22  ;;  %v172_v25 = vstv %s813_s9  ;;  %v367_v26 = vpop.permute.xlu1 %366  ;;  %v360_v27 = vpop.permute.xlu0 %359 }
  0xc9   :  { %v174_v28 = vmul.f32 %v172_v25, %v1191_v22  ;;  %862 = vpush %v360_v27  ;;  %v1245_v25 = vld [vmem:[%s1437_s1 + $0x90] sm:$0xff] }
  0xca   :  { %v168_v29 = vadd.f32 %v167_v24, %v146_v16  ;;  %864 = vpush %v367_v26  ;;  %s1200_s12 = spop %814 }
  0xcb   :  { %v175_v31 = vadd.f32 %v174_v28, %v153_v21  ;;  %s817_s13 = spop %816 }
  0xcc   :  { %v187_v32 = vstv %s817_s13  ;;  %v382_v33 = vpop.permute.xlu1 %381  ;;  %v374_v34 = vpop.permute.xlu0 %373 }
  0xcd   :  { %v189_v35 = vmul.f32 %v1198_v30, %v187_v32  ;;  %866 = vpush %v374_v34  ;;  %v1252_v34 = vld [vmem:[%s1437_s1 + $0xa0] sm:$0xff] }
  0xce   :  { %868 = vpush %v382_v33  ;;  %s819_s15 = spop %818 }
  0xcf   :  { %v190_v37 = vadd.f32 %v189_v35, %v168_v29  ;;  %v194_v38 = vstv %s819_s15  ;;  %s1204_s16 = spop %820 }
  0xd0   :  { %v196_v39 = vmul.f32 %v1198_v30, %v194_v38  ;;  %v396_v40 = vpop.permute.xlu1 %395  ;;  %v389_v41 = vpop.permute.xlu0 %388 }
  0xd1   :  { %870 = vpush %v389_v41 }
  0xd2   :  { %v197_v42 = vadd.f32 %v196_v39, %v175_v31  ;;  %872 = vpush %v396_v40  ;;  %s823_s18 = spop %822 }
  0xd3   :  { %v209_v44 = vstv %s823_s18  ;;  %s825_s21 = spop %824 }
  0xd4   :  { %v211_v46 = vmul.f32 %v1209_v43, %v209_v44  ;;  %v216_v47 = vstv %s825_s21  ;;  %v411_v48 = vpop.permute.xlu1 %410  ;;  %v404_v49 = vpop.permute.xlu0 %403 }
  0xd5   :  { %v218_v50 = vmul.f32 %v1209_v43, %v216_v47  ;;  %874 = vpush %v404_v49  ;;  %v1263_v49 = vld [vmem:[%s1437_s1 + $0xb0] sm:$0xff] }
  0xd6   :  { %v212_v51 = vadd.f32 %v211_v46, %v190_v37  ;;  %876 = vpush %v411_v48  ;;  %s1218_s26 = spop %826 }
  0xd7   :  { %v219_v54 = vadd.f32 %v218_v50, %v197_v42  ;;  %s829_s28 = spop %828 }
  0xd8   :  { %v232_v55 = vstv %s829_s28  ;;  %v427_v56 = vpop.permute.xlu1 %426  ;;  %v418_v57 = vpop.permute.xlu0 %417 }
  0xd9   :  { %v234_v58 = vmul.f32 %v1216_v52, %v232_v55  ;;  %878 = vpush %v418_v57 }
  0xda   :  { %880 = vpush %v427_v56  ;;  %s831_s5 = spop %830 }
  0xdb   :  { %v235_v59 = vadd.f32 %v234_v58, %v212_v51  ;;  %v239_v60 = vstv %s831_s5  ;;  %s1222_s6 = spop %832 }
  0xdc   :  { %v241_v61 = vmul.f32 %v1216_v52, %v239_v60  ;;  %v441_v62 = vpop.permute.xlu1 %440  ;;  %v434_v63 = vpop.permute.xlu0 %433 }
  0xdd   :  { %882 = vpush %v434_v63 }
  0xde   :  { %v242_v0 = vadd.f32 %v241_v61, %v219_v54  ;;  %884 = vpush %v441_v62  ;;  %s835_s8 = spop %834 }
  0xdf   :  { %v255_v4 = vstv %s835_s8  ;;  %s837_s11 = spop %836 }
  0xe0   :  { %v257_v5 = vmul.f32 %v1227_v2, %v255_v4  ;;  %v262_v6 = vstv %s837_s11  ;;  %v457_v7 = vpop.permute.xlu1 %456  ;;  %v450_v8 = vpop.permute.xlu0 %449 }
  0xe1   :  { %v264_v9 = vmul.f32 %v1227_v2, %v262_v6  ;;  %886 = vpush %v450_v8 }
  0xe2   :  { %v258_v11 = vadd.f32 %v257_v5, %v235_v59  ;;  %888 = vpush %v457_v7  ;;  %s1236_s18 = spop %838  ;;  %v1270_v59 = vld [vmem:[%s1437_s1 + $0x61] sm:$0xff] }
  0xe3   :  { %v265_v13 = vadd.f32 %v264_v9, %v242_v0  ;;  %s841_s19 = spop %840 }
  0xe4   :  { %v278_v14 = vstv %s841_s19  ;;  %v473_v15 = vpop.permute.xlu1 %472  ;;  %v464_v16 = vpop.permute.xlu0 %463 }
  0xe5   :  { %v280_v17 = vmul.f32 %v1234_v12, %v278_v14  ;;  %890 = vpush %v464_v16 }
  0xe6   :  { %892 = vpush %v473_v15  ;;  %s843_s20 = spop %842 }
  0xe7   :  { %v281_v18 = vadd.f32 %v280_v17, %v258_v11  ;;  %v285_v19 = vstv %s843_s20  ;;  %s1240_s21 = spop %844  ;;  %v1281_v11 = vld [vmem:[%s1437_s1 + $0x71] sm:$0xff] }
  0xe8   :  { %v287_v20 = vmul.f32 %v1234_v12, %v285_v19  ;;  %v487_v21 = vpop.permute.xlu1 %486  ;;  %v480_v23 = vpop.permute.xlu0 %479 }
  0xe9   :  { %894 = vpush %v480_v23 }
  0xea   :  { %v288_v24 = vadd.f32 %v287_v20, %v265_v13  ;;  %896 = vpush %v487_v21  ;;  %s847_s22 = spop %846  ;;  %v1288_v20 = vld [vmem:[%s1437_s1 + $0x81] sm:$0xff] }
  0xeb   :  { %v301_v26 = vstv %s847_s22  ;;  %s849_s5 = spop %848 }
  0xec   :  { %v303_v27 = vmul.f32 %v1245_v25, %v301_v26  ;;  %v308_v28 = vstv %s849_s5  ;;  %v503_v29 = vpop.permute.xlu1 %502  ;;  %v496_v31 = vpop.permute.xlu0 %495 }
  0xed   :  { %v310_v32 = vmul.f32 %v1245_v25, %v308_v28  ;;  %898 = vpush %v496_v31  ;;  %v44_v28 = vstv %s1139_s27  ;;  %v67_v31 = vstv %s1149_s7 }
  0xee   :  { %v304_v33 = vadd.f32 %v303_v27, %v281_v18  ;;  %900 = vpush %v503_v29  ;;  %s1254_s10 = spop %850  ;;  %v24_v27 = vstv %s1075_s30 }
  0xef   :  { %v311_v35 = vadd.f32 %v310_v32, %v288_v24  ;;  %s853_s11 = spop %852 }
  0xf0   :  { %v324_v37 = vstv %s853_s11  ;;  %v519_v38 = vpop.permute.xlu1 %518  ;;  %v510_v39 = vpop.permute.xlu0 %509 }
  0xf1   :  { %v326_v40 = vmul.f32 %v1252_v34, %v324_v37  ;;  %902 = vpush %v510_v39  ;;  %v46_v37 = vmul.f32 %v1145_v36, %v44_v28 }
  0xf2   :  { %904 = vpush %v519_v38  ;;  %s855_s13 = spop %854 }
  0xf3   :  { %v327_v41 = vadd.f32 %v326_v40, %v304_v33  ;;  %v331_v42 = vstv %s855_s13  ;;  %s1258_s15 = spop %856 }
  0xf4   :  { %v333_v44 = vmul.f32 %v1252_v34, %v331_v42  ;;  %v533_v46 = vpop.permute.xlu1 %532  ;;  %v526_v47 = vpop.permute.xlu0 %525  ;;  %v69_v42 = vmul.f32 %v1155_v45, %v67_v31 }
  0xf5   :  { %906 = vpush %v526_v47 }
  0xf6   :  { %v334_v48 = vadd.f32 %v333_v44, %v311_v35  ;;  %908 = vpush %v533_v46  ;;  %s859_s19 = spop %858  ;;  %v26_v35 = vmul.f32 %v24_v27, %v1080_v3  ;;  %v113_v46 = vstv %s1168_s17  ;;  %v1307_v3 = vld [vmem:[%s1437_s1 + $0xc0] sm:$0xff]  ;;  %v271_v27 = vstv %s1236_s18 }
  0xf7   :  { %v347_v50 = vstv %s859_s19  ;;  %s861_s23 = spop %860 }
  0xf8   :  { %v349_v51 = vmul.f32 %v1263_v49, %v347_v50  ;;  %v354_v54 = vstv %s861_s23  ;;  %v549_v55 = vpop.permute.xlu1 %548  ;;  %v542_v56 = vpop.permute.xlu0 %541  ;;  %v47_v47 = vadd.f32 %v46_v37, %v26_v35  ;;  %v273_v37 = vmul.f32 %v1234_v12, %v271_v27 }
  0xf9   :  { %v356_v57 = vmul.f32 %v1263_v49, %v354_v54  ;;  %910 = vpush %v542_v56  ;;  %v136_v54 = vstv %s1182_s24 }
  0xfa   :  { %v350_v58 = vadd.f32 %v349_v51, %v327_v41  ;;  %912 = vpush %v549_v55  ;;  %s1272_s8 = spop %862  ;;  %v90_v41 = vstv %s1164_s14  ;;  %v70_v56 = vadd.f32 %v69_v42, %v47_v47  ;;  %v340_v42 = vstv %s1258_s15 }
  0xfb   :  { %v357_v60 = vadd.f32 %v356_v57, %v334_v48  ;;  %s865_s9 = spop %864  ;;  %v92_v48 = vmul.f32 %v1162_v53, %v90_v41  ;;  %v115_v57 = vmul.f32 %v1173_v1, %v113_v46  ;;  %v158_v53 = vstv %s1186_s29 }
  0xfc   :  { %v369_v61 = vstv %s865_s9  ;;  %v564_v62 = vpop.permute.xlu1 %563  ;;  %v556_v63 = vpop.permute.xlu0 %555 }
  0xfd   :  { %v371_v0 = vmul.f32 %v1270_v59, %v369_v61  ;;  %914 = vpush %v556_v63  ;;  %v138_v63 = vmul.f32 %v1180_v10, %v136_v54  ;;  %v765_v54 = vld [vmem:[%s1437_s1 + $0x100] sm:$0xff] }
  0xfe   :  { %916 = vpush %v564_v62  ;;  %s867_s11 = spop %866  ;;  %v93_v62 = vadd.f32 %v92_v48, %v70_v56 }
  0xff   :  { %v372_v4 = vadd.f32 %v371_v0, %v350_v58  ;;  %v376_v5 = vstv %s867_s11  ;;  %s1276_s13 = spop %868 }
 0x100   :  { %v378_v6 = vmul.f32 %v1270_v59, %v376_v5  ;;  %v578_v7 = vpop.permute.xlu1 %577  ;;  %v571_v8 = vpop.permute.xlu0 %570  ;;  %v116_v1 = vadd.f32 %v115_v57, %v93_v62 }
 0x101   :  { %918 = vpush %v571_v8 }
 0x102   :  { %v379_v9 = vadd.f32 %v378_v6, %v357_v60  ;;  %920 = vpush %v578_v7  ;;  %s871_s19 = spop %870  ;;  %v1317_v60 = vld [vmem:[%s1437_s1 + $0xd0] sm:$0xff]  ;;  %v160_v6 = vmul.f32 %v158_v53, %v1191_v22  ;;  %v202_v7 = vstv %s1204_s16  ;;  %v248_v22 = vstv %s1222_s6 }
 0x103   :  { %v391_v13 = vstv %s871_s19  ;;  %s873_s23 = spop %872 }
 0x104   :  { %v393_v14 = vmul.f32 %v1281_v11, %v391_v13  ;;  %v398_v15 = vstv %s873_s23  ;;  %v593_v16 = vpop.permute.xlu1 %592  ;;  %v586_v17 = vpop.permute.xlu0 %585  ;;  %v139_v13 = vadd.f32 %v138_v63, %v116_v1 }
 0x105   :  { %v400_v18 = vmul.f32 %v1281_v11, %v398_v15  ;;  %922 = vpush %v586_v17  ;;  %v204_v17 = vmul.f32 %v1209_v43, %v202_v7 }
 0x106   :  { %v394_v19 = vadd.f32 %v393_v14, %v372_v4  ;;  %924 = vpush %v593_v16  ;;  %s1290_s9 = spop %874  ;;  %v180_v4 = vstv %s1200_s12  ;;  %v225_v16 = vstv %s1218_s26  ;;  %v161_v10 = vadd.f32 %v160_v6, %v139_v13 }
 0x107   :  { %v401_v21 = vadd.f32 %v400_v18, %v379_v9  ;;  %s877_s11 = spop %876  ;;  %v182_v14 = vmul.f32 %v1198_v30, %v180_v4  ;;  %v406_v53 = vstv %s1290_s9 }
 0x108   :  { %v413_v23 = vstv %s877_s11  ;;  %v608_v24 = vpop.permute.xlu1 %607  ;;  %v600_v26 = vpop.permute.xlu0 %599  ;;  %v408_v1 = vmul.f32 %v1288_v20, %v406_v53 }
 0x109   :  { %v415_v29 = vmul.f32 %v1288_v20, %v413_v23  ;;  %926 = vpush %v600_v26  ;;  %v183_v30 = vadd.f32 %v182_v14, %v161_v10  ;;  %v227_v23 = vmul.f32 %v1216_v52, %v225_v16  ;;  %v294_v52 = vstv %s1240_s21 }
 0x10a   :  { %928 = vpush %v608_v24  ;;  %s879_s19 = spop %878  ;;  %v296_v41 = vmul.f32 %v1245_v25, %v294_v52  ;;  %v384_v25 = vstv %s1276_s13 }
 0x10b   :  { %v416_v32 = vadd.f32 %v415_v29, %v394_v19  ;;  %v420_v33 = vstv %s879_s19  ;;  %s1300_s30 = spop %880  ;;  %v1337_v19 = vld [vmem:[%s1437_s1 + $0xe0] sm:$0xff]  ;;  %v205_v28 = vadd.f32 %v204_v17, %v183_v30  ;;  %v250_v29 = vmul.f32 %v1227_v2, %v248_v22 }
 0x10c   :  { %v422_v38 = vmul.f32 %v1288_v20, %v420_v33  ;;  %v622_v39 = vpop.permute.xlu1 %621  ;;  %v615_v40 = vpop.permute.xlu0 %614  ;;  %v429_v4 = vstv %s1300_s30 }
 0x10d   :  { %930 = vpush %v615_v40  ;;  %v228_v35 = vadd.f32 %v227_v23, %v205_v28 }
 0x10e   :  { %v423_v44 = vadd.f32 %v422_v38, %v401_v21  ;;  %932 = vpush %v622_v39  ;;  %s883_s27 = spop %882  ;;  %v317_v39 = vstv %s1254_s10 }
 0x10f   :  { %v436_v36 = vstv %s883_s27  ;;  %s885_s22 = spop %884  ;;  %v251_v2 = vadd.f32 %v250_v29, %v228_v35  ;;  %v319_v47 = vmul.f32 %v1252_v34, %v317_v39 }
 0x110   :  { %v438_v50 = vmul.f32 %v1307_v3, %v436_v36  ;;  %v443_v51 = vstv %s885_s22  ;;  %v629_v45 = vpop.permute.xlu0 %628 }
 0x111   :  { %v445_v55 = vmul.f32 %v1307_v3, %v443_v51  ;;  %934 = vpush %v629_v45  ;;  %v274_v36 = vadd.f32 %v273_v37, %v251_v2  ;;  %v342_v51 = vmul.f32 %v1263_v49, %v340_v42  ;;  %v386_v49 = vmul.f32 %v1281_v11, %v384_v25 }
 0x112   :  { %v439_v58 = vadd.f32 %v438_v50, %v416_v32  ;;  %s1319_s23 = spop %886  ;;  %v1347_v32 = vld [vmem:[%s1437_s1 + $0xf0] sm:$0xff]  ;;  %v362_v50 = vstv %s1272_s8  ;;  %v431_v11 = vmul.f32 %v1307_v3, %v429_v4  ;;  %v767_v3 = vld [vmem:[%s1437_s1 + $0xc1] sm:$0xff] }
 0x113   :  { %v446_v61 = vadd.f32 %v445_v55, %v423_v44  ;;  %s889_s28 = spop %888  ;;  %v297_v12 = vadd.f32 %v296_v41, %v274_v36  ;;  %v364_v56 = vmul.f32 %v1270_v59, %v362_v50  ;;  %v452_v7 = vstv %s1319_s23 }
 0x114   :  { %v459_v0 = vstv %s889_s28  ;;  %v454_v10 = vmul.f32 %v1317_v60, %v452_v7 }
 0x115   :  { %v461_v5 = vmul.f32 %v1317_v60, %v459_v0  ;;  %v320_v34 = vadd.f32 %v319_v47, %v297_v12  ;;  %v766_v0 = vld [vmem:[%s1437_s1 + $0x110] sm:$0xff]  ;;  %v14_v12 = vlaneseq }
 0x116   :  { %s891_s24 = spop %890 }
 0x117   :  { %v462_v8 = vadd.f32 %v461_v5, %v439_v58  ;;  %v466_v9 = vstv %s891_s24  ;;  %s1330_s29 = spop %892  ;;  %v343_v62 = vadd.f32 %v342_v51, %v320_v34 }
 0x118   :  { %v468_v15 = vmul.f32 %v1317_v60, %v466_v9  ;;  %v475_v13 = vstv %s1330_s29 }
 0x119   :  { %v365_v59 = vadd.f32 %v364_v56, %v343_v62  ;;  %v477_v20 = vmul.f32 %v1337_v19, %v475_v13 }
 0x11a   :  { %v469_v18 = vadd.f32 %v468_v15, %v446_v61  ;;  %s895_s12 = spop %894 }
 0x11b   :  { %v482_v21 = vstv %s895_s12  ;;  %s897_s11 = spop %896  ;;  %v387_v9 = vadd.f32 %v386_v49, %v365_v59  ;;  %v658_v59 = vld [vmem:[%s1436_s0 + $0x1] sm:$0x1] }
 0x11c   :  { %v484_v24 = vmul.f32 %v1337_v19, %v482_v21  ;;  %v489_v26 = vstv %s897_s11 }
 0x11d   :  { %v491_v43 = vmul.f32 %v1337_v19, %v489_v26  ;;  %v409_v16 = vadd.f32 %v408_v1, %v387_v9  ;;  %v768_v19 = vld [vmem:[%s1437_s1 + $0xd1] sm:$0xff] }
 0x11e   :  { %v485_v31 = vadd.f32 %v484_v24, %v462_v8  ;;  %s1349_s19 = spop %898 }
 0x11f   :  { %v492_v33 = vadd.f32 %v491_v43, %v469_v18  ;;  %s901_s27 = spop %900  ;;  %v498_v18 = vstv %s1349_s19  ;;  %v432_v22 = vadd.f32 %v431_v11, %v409_v16 }
 0x120   :  { %v505_v38 = vstv %s901_s27  ;;  %v500_v26 = vmul.f32 %v1347_v32, %v498_v18 }
 0x121   :  { %v507_v40 = vmul.f32 %v1347_v32, %v505_v38  ;;  %v455_v24 = vadd.f32 %v454_v10, %v432_v22 }
 0x122   :  { %s903_s18 = spop %902 }
 0x123   :  { %v508_v44 = vadd.f32 %v507_v40, %v485_v31  ;;  %v512_v46 = vstv %s903_s18  ;;  %s1360_s21 = spop %904  ;;  %v478_v29 = vadd.f32 %v477_v20, %v455_v24 }
 0x124   :  { %v514_v48 = vmul.f32 %v1347_v32, %v512_v46  ;;  %v521_v30 = vstv %s1360_s21  ;;  %v769_v46 = vld [vmem:[%s1437_s1 + $0xe1] sm:$0xff] }
 0x125   :  { %v523_v31 = vmul.f32 %v765_v54, %v521_v30  ;;  %v501_v37 = vadd.f32 %v500_v26, %v478_v29  ;;  %v691_v26 = vld [vmem:[%s1436_s0 + $0x2] sm:$0x1] }
 0x126   :  { %v515_v45 = vadd.f32 %v514_v48, %v492_v33  ;;  %s907_s10 = spop %906 }
 0x127   :  { %v528_v55 = vstv %s907_s10  ;;  %s909_s20 = spop %908  ;;  %v524_v2 = vadd.f32 %v523_v31, %v501_v37 }
 0x128   :  { %v530_v57 = vmul.f32 %v765_v54, %v528_v55  ;;  %v535_v58 = vstv %s909_s20 }
 0x129   :  { %v537_v61 = vmul.f32 %v765_v54, %v535_v58  ;;  %v1395_v58 = vand.u32 127, %v14_v12 }
 0x12a   :  { %v531_v63 = vadd.f32 %v530_v57, %v508_v44  ;;  %s1373_s22 = spop %910 }
 0x12b   :  { %v538_v5 = vadd.f32 %v537_v61, %v515_v45  ;;  %s913_s14 = spop %912  ;;  %v544_v43 = vstv %s1373_s22  ;;  %vm19_vm0 = vcmp.lt.s32.totalorder %v1395_v58, 16 }
 0x12c   :  { %v551_v6 = vstv %s913_s14  ;;  %v546_v38 = vmul.f32 %v766_v0, %v544_v43 }
 0x12d   :  { %v553_v8 = vmul.f32 %v766_v0, %v551_v6 }
 0x12e   :  { %s915_s9 = spop %914  ;;  %v547_v36 = vadd.f32 %v546_v38, %v524_v2 }
 0x12f   :  { %v554_v14 = vadd.f32 %v553_v8, %v531_v63  ;;  %v558_v15 = vstv %s915_s9  ;;  %s917_s30 = spop %916 }
 0x130   :  { %v560_v17 = vmul.f32 %v766_v0, %v558_v15  ;;  %v566_v33 = vstv %s917_s30 }
 0x131   :  { %v568_v41 = vmul.f32 %v767_v3, %v566_v33 }
 0x132   :  { %v561_v21 = vadd.f32 %v560_v17, %v538_v5  ;;  %s919_s17 = spop %918 }
 0x133   :  { %v573_v23 = vstv %s919_s17  ;;  %s921_s24 = spop %920  ;;  %v569_v51 = vadd.f32 %v568_v41, %v547_v36 }
 0x134   :  { %v575_v60 = vmul.f32 %v767_v3, %v573_v23  ;;  %v580_v27 = vstv %s921_s24 }
 0x135   :  { %v582_v28 = vmul.f32 %v767_v3, %v580_v27 }
 0x136   :  { %v576_v52 = vadd.f32 %v575_v60, %v554_v14  ;;  %s923_s5 = spop %922 }
 0x137   :  { %v583_v35 = vadd.f32 %v582_v28, %v561_v21  ;;  %s925_s16 = spop %924  ;;  %v588_v40 = vstv %s923_s5 }
 0x138   :  { %v595_v39 = vstv %s925_s16  ;;  %v590_v47 = vmul.f32 %v768_v19, %v588_v40 }
 0x139   :  { %v597_v32 = vmul.f32 %v768_v19, %v595_v39 }
 0x13a   :  { %s927_s11 = spop %926  ;;  %v591_v55 = vadd.f32 %v590_v47, %v569_v51 }
 0x13b   :  { %v598_v42 = vadd.f32 %v597_v32, %v576_v52  ;;  %v602_v44 = vstv %s927_s11  ;;  %s929_s19 = spop %928 }
 0x13c   :  { %v604_v48 = vmul.f32 %v768_v19, %v602_v44  ;;  %v610_v50 = vstv %s929_s19 }
 0x13d   :  { %v612_v25 = vmul.f32 %v769_v46, %v610_v50 }
 0x13e   :  { %v605_v45 = vadd.f32 %v604_v48, %v583_v35  ;;  %s931_s27 = spop %930 }
 0x13f   :  { %v617_v54 = vstv %s931_s27  ;;  %s933_s18 = spop %932  ;;  %v613_v53 = vadd.f32 %v612_v25, %v591_v55 }
 0x140   :  { %v619_v34 = vmul.f32 %v769_v46, %v617_v54  ;;  %v624_v56 = vstv %s933_s18 }
 0x141   :  { %v626_v57 = vmul.f32 %v769_v46, %v624_v56 }
 0x142   :  { %s935_s1 = spop %934  ;;  %v620_v61 = vadd.f32 %v619_v34, %v598_v42 }
 0x143   :  { %v631_v62 = vstv %s935_s1  ;;  %v1397_v49 = vadd.f32 %v626_v57, %v605_v45 }
 0x144   :  { %v633_v63 = vadd.f32 %v631_v62, %v613_v53 }
 0x146   :  { %v634_v0 = vmax.f32 %v633_v63, 0.0 }
 0x148   :  { %635 = vst [vmem:[%s1438_s2] sm:$0xff] %v634_v0  ;;  %v636_v4 = vsel %vm19_vm0, %v634_v0, 0.0 }
 0x149   :  { %637 = vadd.xlane.f32.xlu1 %v636_v4  ;;  %v647_v5 = vmul.f32 %v636_v4, %v636_v4 }
 0x14b   :  { %648 = vadd.xlane.f32.xlu0 %v647_v5 }
 0x161   :  { %660 = vrot.lane.b32.xlu0 %v658_v59, %s1005_s25 }
 0x1d6   :  { %v638_v1 = vpop.xlane.xlu1 %637 }
 0x1d7   :  { %v639_v6 = vrot.slane %v638_v1, 4 }
 0x1d8   :  { %v649_v7 = vpop.xlane.xlu0 %648 }
 0x1d9   :  { %v640_v8 = vadd.f32 %v639_v6, %v638_v1  ;;  %v650_v9 = vrot.slane %v649_v7, 4 }
 0x1db   :  { %v641_v11 = vrot.slane %v640_v8, 2  ;;  %v651_v13 = vadd.f32 %v650_v9, %v649_v7 }
 0x1dc   :  { %v661_v22 = vpop.permute.xlu0 %660 }
 0x1dd   :  { %v652_v14 = vrot.slane %v651_v13, 2  ;;  %v642_v15 = vadd.f32 %v641_v11, %v640_v8 }
 0x1df   :  { %v643_v16 = vrot.slane %v642_v15, 1  ;;  %v653_v10 = vadd.f32 %v652_v14, %v651_v13 }
 0x1e1   :  { %v644_v17 = vadd.f32 %v643_v16, %v642_v15  ;;  %v654_v18 = vrot.slane %v653_v10, 1 }
 0x1e3   :  { %936 = vpush %v644_v17  ;;  %v655_v20 = vadd.f32 %v654_v18, %v653_v10 }
 0x1e5   :  { %938 = vpush %v655_v20 }
 0x1e6   :  { %940 = vpush %v661_v22 }
 0x214   :  { %s1409_s20 = spop %936 }
 0x215   :  { %v646_v2 = vstv %s1409_s20 }
 0x216   :  { %s1411_s8 = spop %938 }
 0x217   :  { %s941_s13 = spop %940  ;;  %v657_v44 = vstv %s1411_s8 }
 0x218   :  { %v663_v21 = vstv %s941_s13 }
 0x219   :  { %v665_v30 = vadd.f32 %v663_v21, %v620_v61 }
 0x21b   :  { %v666_v3 = vmax.f32 %v665_v30, 0.0 }
 0x21d   :  { %770 = vst [vmem:[%s1438_s2 + $0x8] sm:$0xff] %v666_v3  ;;  %v669_v23 = vsel %vm19_vm0, %v666_v3, 0.0 }
 0x21e   :  { %670 = vadd.xlane.f32.xlu1 %v669_v23  ;;  %v680_v24 = vmul.f32 %v669_v23, %v669_v23 }
 0x222   :  { %681 = vadd.xlane.f32.xlu1 %v680_v24 }
 0x233   :  { %693 = vrot.lane.b32.xlu1 %v691_v26, %s1005_s25 }
 0x2ab   :  { %v671_v60 = vpop.xlane.xlu1 %670 }
 0x2ac   :  { %v672_v27 = vrot.slane %v671_v60, 4 }
 0x2ae   :  { %v673_v43 = vadd.f32 %v672_v27, %v671_v60 }
 0x2af   :  { %v682_v28 = vpop.xlane.xlu1 %681 }
 0x2b0   :  { %v674_v29 = vrot.slane %v673_v43, 2  ;;  %v683_v31 = vrot.slane %v682_v28, 4 }
 0x2b2   :  { %v684_v52 = vadd.f32 %v683_v31, %v682_v28  ;;  %v675_v19 = vadd.f32 %v674_v29, %v673_v43 }
 0x2b3   :  { %v694_v40 = vpop.permute.xlu1 %693 }
 0x2b4   :  { %v685_v33 = vrot.slane %v684_v52, 2  ;;  %v676_v35 = vrot.slane %v675_v19, 1 }
 0x2b6   :  { %v677_v37 = vadd.f32 %v676_v35, %v675_v19  ;;  %v686_v38 = vadd.f32 %v685_v33, %v684_v52 }
 0x2b8   :  { %942 = vpush %v677_v37  ;;  %v687_v39 = vrot.slane %v686_v38, 1 }
 0x2ba   :  { %v688_v32 = vadd.f32 %v687_v39, %v686_v38 }
 0x2bc   :  { %944 = vpush %v688_v32 }
 0x2bd   :  { %946 = vpush %v694_v40 }
 0x2e9   :  { %s943_s0 = spop %942 }
 0x2ea   :  { %v679_v41 = vstv %s943_s0 }
 0x2eb   :  { %v725_v42 = vsel %vm724_vm1, %v646_v2, %v679_v41 }
 0x2ed   :  { %s945_s25 = spop %944 }
 0x2ee   :  { %v690_v46 = vstv %s945_s25  ;;  %s947_s17 = spop %946 }
 0x2ef   :  { %v730_v36 = vsel %vm724_vm1, %v657_v44, %v690_v46  ;;  %v696_v47 = vstv %s947_s17 }
 0x2f0   :  { %v698_v48 = vadd.f32 %v696_v47, %v1397_v49 }
 0x2f2   :  { %v699_v50 = vmax.f32 %v698_v48, 0.0 }
 0x2f4   :  { %771 = vst [vmem:[%s1438_s2 + $0x10] sm:$0xff] %v699_v50  ;;  %v702_v12 = vsel %vm19_vm0, %v699_v50, 0.0 }
 0x2f5   :  { %703 = vadd.xlane.f32.xlu0 %v702_v12  ;;  %v713_v51 = vmul.f32 %v702_v12, %v702_v12 }
 0x2f7   :  { %714 = vadd.xlane.f32.xlu1 %v713_v51 }
 0x382   :  { %v704_v45 = vpop.xlane.xlu0 %703 }
 0x383   :  { %v705_v25 = vrot.slane %v704_v45, 4 }
 0x384   :  { %v715_v54 = vpop.xlane.xlu1 %714 }
 0x385   :  { %v706_v55 = vadd.f32 %v705_v25, %v704_v45  ;;  %v716_v34 = vrot.slane %v715_v54, 4 }
 0x387   :  { %v707_v56 = vrot.slane %v706_v55, 2  ;;  %v717_v57 = vadd.f32 %v716_v34, %v715_v54 }
 0x389   :  { %v708_v53 = vadd.f32 %v707_v56, %v706_v55  ;;  %v718_v61 = vrot.slane %v717_v57, 2 }
 0x38b   :  { %v719_v62 = vadd.f32 %v718_v61, %v717_v57  ;;  %v709_v49 = vrot.slane %v708_v53, 1 }
 0x38d   :  { %v710_v63 = vadd.f32 %v709_v49, %v708_v53  ;;  %v720_v0 = vrot.slane %v719_v62, 1 }
 0x38f   :  { %948 = vpush %v710_v63  ;;  %v721_v4 = vadd.f32 %v720_v0, %v719_v62 }
 0x391   :  { %950 = vpush %v721_v4 }
 0x3c0   :  { %s949_s2 = spop %948 }
 0x3c1   :  { %v712_v58 = vstv %s949_s2 }
 0x3c2   :  { %v727_v5 = vsel %vm726_vm2, %v725_v42, %v712_v58  ;;  %s951_s24 = spop %950 }
 0x3c3   :  { %729 = vst.msk [vmem:[%s1439_s3] sm:$0x7] %vm728_vm3, %v727_v5  ;;  %v723_v59 = vstv %s951_s24 }
 0x3c4   :  { %v731_v1 = vsel %vm726_vm2, %v730_v36, %v723_v59 }
 0x3c5   :  { %732 = vst.msk [vmem:[%s1440_s4] sm:$0x7] %vm728_vm3, %v731_v1 }

// kernel: encoder_forward.3
= control target key start
LH: loop header
LB: loop body
LE: loop exit
PB: predicated region body
PF: predicated region fallthrough
CT: control target
= control target key end

     0   :  { %s986_s19 = smov 119   ;;  %s987_s22 = smov 110   ;;  %vm637_vm1 = vcmask 1043456   ;;  %vm731_vm2 = vcmask 1040384   ;;  %vm733_vm3 = vcmask 1041408   ;;  %vm735_vm4 = vcmask 2048   ;;  %s1449_s0 = inlined_call_operand.vmem [shape: f32[3,28], index: 0, kind: input, shape index: {}]   ;;  %s1450_s1 = inlined_call_operand.vmem [shape: f32[18,5,128], index: 1, kind: input, shape index: {}]   ;;  %s1451_s2 = inlined_call_operand.vmem [shape: f32[3,4,128], index: 2, kind: output, shape index: {0}]   ;;  %s1452_s3 = inlined_call_operand.vmem [shape: f32[1,3,1], index: 3, kind: output, shape index: {1}]   ;;  %s1453_s4 = inlined_call_operand.vmem [shape: f32[1,3,1], index: 4, kind: output, shape index: {2}]  }
   0x1   :  { %v1041_v0 = vld [vmem:[%s1449_s0 + $0x2] sm:$0x1]  ;;  %v1046_v1 = vld [vmem:[%s1449_s0] sm:$0x1]  ;;  %v1053_v2 = vld [vmem:[%s1449_s0 + $0x1] sm:$0x1] }
   0x2   :  { %55 = vrot.lane.b32.xlu1 %v1041_v0, %s986_s19  ;;  %41 = vrot.lane.b32.xlu0 %v1046_v1, %s986_s19  ;;  %779 = vpush %v1046_v1  ;;  %s988_s23 = smov 127   ;;  %s989_s24 = smov 118   ;;  %v1087_v3 = vld [vmem:[%s1450_s1] sm:$0xf]  ;;  %v1152_v36 = vld [vmem:[%s1450_s1 + $0x8] sm:$0xf] }
   0x3   :  { %781 = vpush %v1053_v2  ;;  %s990_s25 = smov 109   ;;  %s991_s26 = smov 126   ;;  %v1162_v45 = vld [vmem:[%s1450_s1 + $0x10] sm:$0xf]  ;;  %v1169_v53 = vld [vmem:[%s1450_s1 + $0x18] sm:$0xf] }
   0x4   :  { %783 = vpush %v1041_v0  ;;  %s992_s27 = smov 117   ;;  %s993_s28 = smov 108  }
   0x5   :  { %s994_s29 = smov 125   ;;  %s995_s8 = smov 116  }
   0x6   :  { %64 = vrot.lane.b32.xlu1 %v1046_v1, %s987_s22  ;;  %48 = vrot.lane.b32.xlu0 %v1053_v2, %s986_s19  ;;  %s996_s9 = smov 107   ;;  %s997_s10 = smov 124  }
   0x7   :  { %s998_s11 = smov 115   ;;  %s999_s12 = smov 106  }
   0x8   :  { %s1000_s13 = smov 123   ;;  %s1001_s14 = smov 114  }
   0x9   :  { %s1002_s15 = smov 105   ;;  %s1003_s16 = smov 122  }
   0xa   :  { %78 = vrot.lane.b32.xlu1 %v1041_v0, %s987_s22  ;;  %71 = vrot.lane.b32.xlu0 %v1053_v2, %s987_s22  ;;  %s1004_s17 = smov 113   ;;  %s1005_s18 = smov 104  }
   0xb   :  { %s1006_s19 = smov 121   ;;  %s1007_s20 = smov 112  }
   0xc   :  { %s1008_s21 = smov 103   ;;  %s1009_s22 = smov 120  }
   0xe   :  { %94 = vrot.lane.b32.xlu1 %v1053_v2, %s988_s23  ;;  %87 = vrot.lane.b32.xlu0 %v1046_v1, %s988_s23 }
  0x12   :  { %110 = vrot.lane.b32.xlu1 %v1046_v1, %s989_s24  ;;  %101 = vrot.lane.b32.xlu0 %v1041_v0, %s988_s23  ;;  %s1010_s23 = smov 111  }
  0x16   :  { %124 = vrot.lane.b32.xlu1 %v1041_v0, %s989_s24  ;;  %117 = vrot.lane.b32.xlu0 %v1053_v2, %s989_s24  ;;  %s1011_s24 = smov 102  }
  0x1a   :  { %140 = vrot.lane.b32.xlu1 %v1053_v2, %s990_s25  ;;  %133 = vrot.lane.b32.xlu0 %v1046_v1, %s990_s25 }
  0x1e   :  { %155 = vrot.lane.b32.xlu1 %v1046_v1, %s991_s26  ;;  %147 = vrot.lane.b32.xlu0 %v1041_v0, %s990_s25  ;;  %s1012_s25 = smov 101  }
  0x22   :  { %169 = vrot.lane.b32.xlu1 %v1041_v0, %s991_s26  ;;  %162 = vrot.lane.b32.xlu0 %v1053_v2, %s991_s26 }
  0x26   :  { %184 = vrot.lane.b32.xlu1 %v1053_v2, %s992_s27  ;;  %177 = vrot.lane.b32.xlu0 %v1046_v1, %s992_s27 }
  0x2a   :  { %199 = vrot.lane.b32.xlu1 %v1046_v1, %s993_s28  ;;  %191 = vrot.lane.b32.xlu0 %v1041_v0, %s992_s27 }
  0x2e   :  { %213 = vrot.lane.b32.xlu1 %v1041_v0, %s993_s28  ;;  %206 = vrot.lane.b32.xlu0 %v1053_v2, %s993_s28 }
  0x32   :  { %229 = vrot.lane.b32.xlu1 %v1053_v2, %s994_s29  ;;  %222 = vrot.lane.b32.xlu0 %v1046_v1, %s994_s29 }
  0x33   :  { %s1082_s30 = spop %779 }
  0x34   :  { %s782_s5 = spop %781 }
  0x35   :  { %v30_v4 = vstv %s782_s5  ;;  %s784_s26 = spop %783 }
  0x36   :  { %245 = vrot.lane.b32.xlu1 %v1046_v1, %s995_s8  ;;  %236 = vrot.lane.b32.xlu0 %v1041_v0, %s994_s29  ;;  %v1092_v5 = vmul.f32 %v30_v4, %v1087_v3  ;;  %v36_v32 = vstv %s784_s26 }
  0x37   :  { %v38_v35 = vmul.f32 %v36_v32, %v1087_v3 }
  0x3a   :  { %259 = vrot.lane.b32.xlu1 %v1041_v0, %s995_s8  ;;  %252 = vrot.lane.b32.xlu0 %v1053_v2, %s995_s8 }
  0x3e   :  { %275 = vrot.lane.b32.xlu1 %v1053_v2, %s996_s9  ;;  %268 = vrot.lane.b32.xlu0 %v1046_v1, %s996_s9 }
  0x42   :  { %291 = vrot.lane.b32.xlu1 %v1046_v1, %s997_s10  ;;  %282 = vrot.lane.b32.xlu0 %v1041_v0, %s996_s9 }
  0x46   :  { %305 = vrot.lane.b32.xlu1 %v1041_v0, %s997_s10  ;;  %298 = vrot.lane.b32.xlu0 %v1053_v2, %s997_s10 }
  0x4a   :  { %321 = vrot.lane.b32.xlu1 %v1053_v2, %s998_s11  ;;  %314 = vrot.lane.b32.xlu0 %v1046_v1, %s998_s11 }
  0x4e   :  { %337 = vrot.lane.b32.xlu1 %v1046_v1, %s999_s12  ;;  %328 = vrot.lane.b32.xlu0 %v1041_v0, %s998_s11 }
  0x52   :  { %351 = vrot.lane.b32.xlu1 %v1041_v0, %s999_s12  ;;  %344 = vrot.lane.b32.xlu0 %v1053_v2, %s999_s12 }
  0x56   :  { %366 = vrot.lane.b32.xlu1 %v1053_v2, %s1000_s13  ;;  %359 = vrot.lane.b32.xlu0 %v1046_v1, %s1000_s13 }
  0x5a   :  { %381 = vrot.lane.b32.xlu1 %v1046_v1, %s1001_s14  ;;  %373 = vrot.lane.b32.xlu0 %v1041_v0, %s1000_s13 }
  0x5e   :  { %395 = vrot.lane.b32.xlu1 %v1041_v0, %s1001_s14  ;;  %388 = vrot.lane.b32.xlu0 %v1053_v2, %s1001_s14 }
  0x62   :  { %410 = vrot.lane.b32.xlu1 %v1053_v2, %s1002_s15  ;;  %403 = vrot.lane.b32.xlu0 %v1046_v1, %s1002_s15 }
  0x66   :  { %426 = vrot.lane.b32.xlu1 %v1046_v1, %s1003_s16  ;;  %417 = vrot.lane.b32.xlu0 %v1041_v0, %s1002_s15 }
  0x6a   :  { %440 = vrot.lane.b32.xlu1 %v1041_v0, %s1003_s16  ;;  %433 = vrot.lane.b32.xlu0 %v1053_v2, %s1003_s16 }
  0x6e   :  { %456 = vrot.lane.b32.xlu1 %v1053_v2, %s1004_s17  ;;  %449 = vrot.lane.b32.xlu0 %v1046_v1, %s1004_s17 }
  0x72   :  { %472 = vrot.lane.b32.xlu1 %v1046_v1, %s1005_s18  ;;  %463 = vrot.lane.b32.xlu0 %v1041_v0, %s1004_s17 }
  0x74   :  { %v56_v6 = vpop.permute.xlu1 %55  ;;  %v42_v7 = vpop.permute.xlu0 %41 }
  0x75   :  { %785 = vpush %v42_v7 }
  0x76   :  { %486 = vrot.lane.b32.xlu1 %v1041_v0, %s1005_s18  ;;  %479 = vrot.lane.b32.xlu0 %v1053_v2, %s1005_s18 }
  0x78   :  { %v65_v8 = vpop.permute.xlu1 %64  ;;  %v49_v9 = vpop.permute.xlu0 %48 }
  0x79   :  { %787 = vpush %v49_v9 }
  0x7a   :  { %789 = vpush %v56_v6  ;;  %502 = vrot.lane.b32.xlu1 %v1053_v2, %s1006_s19  ;;  %495 = vrot.lane.b32.xlu0 %v1046_v1, %s1006_s19 }
  0x7b   :  { %791 = vpush %v65_v8 }
  0x7c   :  { %v79_v10 = vpop.permute.xlu1 %78  ;;  %v72_v11 = vpop.permute.xlu0 %71 }
  0x7d   :  { %793 = vpush %v72_v11 }
  0x7e   :  { %795 = vpush %v79_v10  ;;  %518 = vrot.lane.b32.xlu1 %v1046_v1, %s1007_s20  ;;  %509 = vrot.lane.b32.xlu0 %v1041_v0, %s1006_s19  ;;  %v1187_v10 = vld [vmem:[%s1450_s1 + $0x28] sm:$0xf] }
  0x80   :  { %v95_v12 = vpop.permute.xlu1 %94  ;;  %v88_v13 = vpop.permute.xlu0 %87 }
  0x81   :  { %797 = vpush %v88_v13 }
  0x82   :  { %799 = vpush %v95_v12  ;;  %532 = vrot.lane.b32.xlu1 %v1041_v0, %s1007_s20  ;;  %525 = vrot.lane.b32.xlu0 %v1053_v2, %s1007_s20 }
  0x84   :  { %v111_v14 = vpop.permute.xlu1 %110  ;;  %v102_v15 = vpop.permute.xlu0 %101 }
  0x85   :  { %801 = vpush %v102_v15 }
  0x86   :  { %803 = vpush %v111_v14  ;;  %548 = vrot.lane.b32.xlu1 %v1053_v2, %s1008_s21  ;;  %541 = vrot.lane.b32.xlu0 %v1046_v1, %s1008_s21 }
  0x88   :  { %v125_v16 = vpop.permute.xlu1 %124  ;;  %v118_v17 = vpop.permute.xlu0 %117 }
  0x89   :  { %805 = vpush %v118_v17 }
  0x8a   :  { %807 = vpush %v125_v16  ;;  %563 = vrot.lane.b32.xlu1 %v1046_v1, %s1009_s22  ;;  %555 = vrot.lane.b32.xlu0 %v1041_v0, %s1008_s21 }
  0x8c   :  { %v141_v18 = vpop.permute.xlu1 %140  ;;  %v134_v19 = vpop.permute.xlu0 %133 }
  0x8d   :  { %809 = vpush %v134_v19 }
  0x8e   :  { %811 = vpush %v141_v18  ;;  %577 = vrot.lane.b32.xlu1 %v1041_v0, %s1009_s22  ;;  %570 = vrot.lane.b32.xlu0 %v1053_v2, %s1009_s22 }
  0x90   :  { %v156_v20 = vpop.permute.xlu1 %155  ;;  %v148_v21 = vpop.permute.xlu0 %147 }
  0x91   :  { %813 = vpush %v148_v21 }
  0x92   :  { %815 = vpush %v156_v20  ;;  %592 = vrot.lane.b32.xlu1 %v1053_v2, %s1010_s23  ;;  %585 = vrot.lane.b32.xlu0 %v1046_v1, %s1010_s23 }
  0x94   :  { %v170_v22 = vpop.permute.xlu1 %169  ;;  %v163_v23 = vpop.permute.xlu0 %162 }
  0x95   :  { %817 = vpush %v163_v23 }
  0x96   :  { %819 = vpush %v170_v22  ;;  %607 = vrot.lane.b32.xlu1 %v1046_v1, %s1011_s24  ;;  %599 = vrot.lane.b32.xlu0 %v1041_v0, %s1010_s23  ;;  %v1198_v22 = vld [vmem:[%s1450_s1 + $0x1] sm:$0xf] }
  0x98   :  { %v185_v24 = vpop.permute.xlu1 %184  ;;  %v178_v25 = vpop.permute.xlu0 %177 }
  0x99   :  { %821 = vpush %v178_v25 }
  0x9a   :  { %823 = vpush %v185_v24  ;;  %621 = vrot.lane.b32.xlu1 %v1041_v0, %s1011_s24  ;;  %614 = vrot.lane.b32.xlu0 %v1053_v2, %s1011_s24 }
  0x9c   :  { %v200_v26 = vpop.permute.xlu1 %199  ;;  %v192_v27 = vpop.permute.xlu0 %191 }
  0x9d   :  { %825 = vpush %v192_v27 }
  0x9e   :  { %827 = vpush %v200_v26  ;;  %628 = vrot.lane.b32.xlu0 %v1046_v1, %s1012_s25  ;;  %v1180_v1 = vld [vmem:[%s1450_s1 + $0x20] sm:$0xf] }
  0xa0   :  { %v214_v28 = vpop.permute.xlu1 %213  ;;  %v207_v29 = vpop.permute.xlu0 %206 }
  0xa1   :  { %829 = vpush %v207_v29 }
  0xa2   :  { %831 = vpush %v214_v28 }
  0xa4   :  { %v230_v30 = vpop.permute.xlu1 %229  ;;  %v223_v31 = vpop.permute.xlu0 %222 }
  0xa5   :  { %833 = vpush %v223_v31 }
  0xa6   :  { %835 = vpush %v230_v30  ;;  %s1146_s27 = spop %785  ;;  %v1205_v30 = vld [vmem:[%s1450_s1 + $0x9] sm:$0xf] }
  0xa8   :  { %v246_v33 = vpop.permute.xlu1 %245  ;;  %v237_v34 = vpop.permute.xlu0 %236 }
  0xa9   :  { %837 = vpush %v237_v34 }
  0xaa   :  { %839 = vpush %v246_v33  ;;  %s788_s28 = spop %787 }
  0xab   :  { %v51_v37 = vstv %s788_s28  ;;  %s790_s6 = spop %789 }
  0xac   :  { %v53_v38 = vmul.f32 %v1152_v36, %v51_v37  ;;  %v58_v39 = vstv %s790_s6  ;;  %v260_v40 = vpop.permute.xlu1 %259  ;;  %v253_v41 = vpop.permute.xlu0 %252  ;;  %s1156_s7 = spop %791 }
  0xad   :  { %v60_v42 = vmul.f32 %v1152_v36, %v58_v39  ;;  %841 = vpush %v253_v41 }
  0xae   :  { %v54_v43 = vadd.f32 %v53_v38, %v1092_v5  ;;  %843 = vpush %v260_v40  ;;  %s794_s8 = spop %793 }
  0xaf   :  { %v61_v44 = vadd.f32 %v60_v42, %v38_v35  ;;  %v74_v46 = vstv %s794_s8  ;;  %s796_s11 = spop %795 }
  0xb0   :  { %v76_v47 = vmul.f32 %v1162_v45, %v74_v46  ;;  %v81_v48 = vstv %s796_s11  ;;  %v276_v49 = vpop.permute.xlu1 %275  ;;  %v269_v50 = vpop.permute.xlu0 %268 }
  0xb1   :  { %v83_v51 = vmul.f32 %v1162_v45, %v81_v48  ;;  %845 = vpush %v269_v50 }
  0xb2   :  { %v77_v52 = vadd.f32 %v76_v47, %v54_v43  ;;  %847 = vpush %v276_v49  ;;  %s1171_s14 = spop %797  ;;  %v1216_v43 = vld [vmem:[%s1450_s1 + $0x11] sm:$0xf] }
  0xb3   :  { %v84_v54 = vadd.f32 %v83_v51, %v61_v44  ;;  %s800_s15 = spop %799 }
  0xb4   :  { %v97_v55 = vstv %s800_s15  ;;  %v292_v56 = vpop.permute.xlu1 %291  ;;  %v283_v57 = vpop.permute.xlu0 %282 }
  0xb5   :  { %v99_v58 = vmul.f32 %v1169_v53, %v97_v55  ;;  %849 = vpush %v283_v57 }
  0xb6   :  { %851 = vpush %v292_v56  ;;  %s802_s16 = spop %801 }
  0xb7   :  { %v100_v59 = vadd.f32 %v99_v58, %v77_v52  ;;  %v104_v60 = vstv %s802_s16  ;;  %s1175_s17 = spop %803  ;;  %v1223_v52 = vld [vmem:[%s1450_s1 + $0x30] sm:$0xf] }
  0xb8   :  { %v106_v61 = vmul.f32 %v1169_v53, %v104_v60  ;;  %v306_v62 = vpop.permute.xlu1 %305  ;;  %v299_v63 = vpop.permute.xlu0 %298 }
  0xb9   :  { %853 = vpush %v299_v63 }
  0xba   :  { %v107_v0 = vadd.f32 %v106_v61, %v84_v54  ;;  %855 = vpush %v306_v62  ;;  %s806_s18 = spop %805 }
  0xbb   :  { %v120_v2 = vstv %s806_s18  ;;  %s808_s21 = spop %807 }
  0xbc   :  { %v122_v4 = vmul.f32 %v1180_v1, %v120_v2  ;;  %v127_v5 = vstv %s808_s21  ;;  %v322_v6 = vpop.permute.xlu1 %321  ;;  %v315_v7 = vpop.permute.xlu0 %314  ;;  %v1234_v2 = vld [vmem:[%s1450_s1 + $0x38] sm:$0xf] }
  0xbd   :  { %v129_v8 = vmul.f32 %v1180_v1, %v127_v5  ;;  %857 = vpush %v315_v7 }
  0xbe   :  { %v123_v9 = vadd.f32 %v122_v4, %v100_v59  ;;  %859 = vpush %v322_v6  ;;  %s1189_s24 = spop %809 }
  0xbf   :  { %v130_v11 = vadd.f32 %v129_v8, %v107_v0  ;;  %s812_s26 = spop %811 }
  0xc0   :  { %v143_v12 = vstv %s812_s26  ;;  %v338_v13 = vpop.permute.xlu1 %337  ;;  %v329_v14 = vpop.permute.xlu0 %328 }
  0xc1   :  { %v145_v15 = vmul.f32 %v1187_v10, %v143_v12  ;;  %861 = vpush %v329_v14  ;;  %v1241_v12 = vld [vmem:[%s1450_s1 + $0x40] sm:$0xf] }
  0xc2   :  { %863 = vpush %v338_v13  ;;  %s814_s28 = spop %813 }
  0xc3   :  { %v146_v16 = vadd.f32 %v145_v15, %v123_v9  ;;  %v150_v17 = vstv %s814_s28  ;;  %s1193_s29 = spop %815 }
  0xc4   :  { %v152_v18 = vmul.f32 %v1187_v10, %v150_v17  ;;  %v352_v19 = vpop.permute.xlu1 %351  ;;  %v345_v20 = vpop.permute.xlu0 %344 }
  0xc5   :  { %865 = vpush %v345_v20 }
  0xc6   :  { %v153_v21 = vadd.f32 %v152_v18, %v130_v11  ;;  %867 = vpush %v352_v19  ;;  %s818_s5 = spop %817 }
  0xc7   :  { %v165_v23 = vstv %s818_s5  ;;  %s820_s9 = spop %819 }
  0xc8   :  { %v167_v24 = vmul.f32 %v165_v23, %v1198_v22  ;;  %v172_v25 = vstv %s820_s9  ;;  %v367_v26 = vpop.permute.xlu1 %366  ;;  %v360_v27 = vpop.permute.xlu0 %359 }
  0xc9   :  { %v174_v28 = vmul.f32 %v172_v25, %v1198_v22  ;;  %869 = vpush %v360_v27  ;;  %v1252_v25 = vld [vmem:[%s1450_s1 + $0x48] sm:$0xf] }
  0xca   :  { %v168_v29 = vadd.f32 %v167_v24, %v146_v16  ;;  %871 = vpush %v367_v26  ;;  %s1207_s12 = spop %821 }
  0xcb   :  { %v175_v31 = vadd.f32 %v174_v28, %v153_v21  ;;  %s824_s13 = spop %823 }
  0xcc   :  { %v187_v32 = vstv %s824_s13  ;;  %v382_v33 = vpop.permute.xlu1 %381  ;;  %v374_v34 = vpop.permute.xlu0 %373 }
  0xcd   :  { %v189_v35 = vmul.f32 %v1205_v30, %v187_v32  ;;  %873 = vpush %v374_v34  ;;  %v1259_v34 = vld [vmem:[%s1450_s1 + $0x50] sm:$0xf] }
  0xce   :  { %875 = vpush %v382_v33  ;;  %s826_s15 = spop %825 }
  0xcf   :  { %v190_v37 = vadd.f32 %v189_v35, %v168_v29  ;;  %v194_v38 = vstv %s826_s15  ;;  %s1211_s16 = spop %827 }
  0xd0   :  { %v196_v39 = vmul.f32 %v1205_v30, %v194_v38  ;;  %v396_v40 = vpop.permute.xlu1 %395  ;;  %v389_v41 = vpop.permute.xlu0 %388 }
  0xd1   :  { %877 = vpush %v389_v41 }
  0xd2   :  { %v197_v42 = vadd.f32 %v196_v39, %v175_v31  ;;  %879 = vpush %v396_v40  ;;  %s830_s18 = spop %829 }
  0xd3   :  { %v209_v44 = vstv %s830_s18  ;;  %s832_s21 = spop %831 }
  0xd4   :  { %v211_v46 = vmul.f32 %v1216_v43, %v209_v44  ;;  %v216_v47 = vstv %s832_s21  ;;  %v411_v48 = vpop.permute.xlu1 %410  ;;  %v404_v49 = vpop.permute.xlu0 %403 }
  0xd5   :  { %v218_v50 = vmul.f32 %v1216_v43, %v216_v47  ;;  %881 = vpush %v404_v49  ;;  %v1270_v49 = vld [vmem:[%s1450_s1 + $0x58] sm:$0xf] }
  0xd6   :  { %v212_v51 = vadd.f32 %v211_v46, %v190_v37  ;;  %883 = vpush %v411_v48  ;;  %s1225_s26 = spop %833 }
  0xd7   :  { %v219_v54 = vadd.f32 %v218_v50, %v197_v42  ;;  %s836_s28 = spop %835 }
  0xd8   :  { %v232_v55 = vstv %s836_s28  ;;  %v427_v56 = vpop.permute.xlu1 %426  ;;  %v418_v57 = vpop.permute.xlu0 %417 }
  0xd9   :  { %v234_v58 = vmul.f32 %v1223_v52, %v232_v55  ;;  %885 = vpush %v418_v57 }
  0xda   :  { %887 = vpush %v427_v56  ;;  %s838_s5 = spop %837 }
  0xdb   :  { %v235_v59 = vadd.f32 %v234_v58, %v212_v51  ;;  %v239_v60 = vstv %s838_s5  ;;  %s1229_s6 = spop %839 }
  0xdc   :  { %v241_v61 = vmul.f32 %v1223_v52, %v239_v60  ;;  %v441_v62 = vpop.permute.xlu1 %440  ;;  %v434_v63 = vpop.permute.xlu0 %433 }
  0xdd   :  { %889 = vpush %v434_v63 }
  0xde   :  { %v242_v0 = vadd.f32 %v241_v61, %v219_v54  ;;  %891 = vpush %v441_v62  ;;  %s842_s8 = spop %841 }
  0xdf   :  { %v255_v4 = vstv %s842_s8  ;;  %s844_s11 = spop %843 }
  0xe0   :  { %v257_v5 = vmul.f32 %v1234_v2, %v255_v4  ;;  %v262_v6 = vstv %s844_s11  ;;  %v457_v7 = vpop.permute.xlu1 %456  ;;  %v450_v8 = vpop.permute.xlu0 %449 }
  0xe1   :  { %v264_v9 = vmul.f32 %v1234_v2, %v262_v6  ;;  %893 = vpush %v450_v8 }
  0xe2   :  { %v258_v11 = vadd.f32 %v257_v5, %v235_v59  ;;  %895 = vpush %v457_v7  ;;  %s1243_s18 = spop %845  ;;  %v1277_v59 = vld [vmem:[%s1450_s1 + $0x31] sm:$0xf] }
  0xe3   :  { %v265_v13 = vadd.f32 %v264_v9, %v242_v0  ;;  %s848_s19 = spop %847 }
  0xe4   :  { %v278_v14 = vstv %s848_s19  ;;  %v473_v15 = vpop.permute.xlu1 %472  ;;  %v464_v16 = vpop.permute.xlu0 %463 }
  0xe5   :  { %v280_v17 = vmul.f32 %v1241_v12, %v278_v14  ;;  %897 = vpush %v464_v16 }
  0xe6   :  { %899 = vpush %v473_v15  ;;  %s850_s20 = spop %849 }
  0xe7   :  { %v281_v18 = vadd.f32 %v280_v17, %v258_v11  ;;  %v285_v19 = vstv %s850_s20  ;;  %s1247_s21 = spop %851  ;;  %v1288_v11 = vld [vmem:[%s1450_s1 + $0x39] sm:$0xf] }
  0xe8   :  { %v287_v20 = vmul.f32 %v1241_v12, %v285_v19  ;;  %v487_v21 = vpop.permute.xlu1 %486  ;;  %v480_v23 = vpop.permute.xlu0 %479 }
  0xe9   :  { %901 = vpush %v480_v23 }
  0xea   :  { %v288_v24 = vadd.f32 %v287_v20, %v265_v13  ;;  %903 = vpush %v487_v21  ;;  %s854_s22 = spop %853  ;;  %v1295_v20 = vld [vmem:[%s1450_s1 + $0x41] sm:$0xf] }
  0xeb   :  { %v301_v26 = vstv %s854_s22  ;;  %s856_s5 = spop %855 }
  0xec   :  { %v303_v27 = vmul.f32 %v1252_v25, %v301_v26  ;;  %v308_v28 = vstv %s856_s5  ;;  %v503_v29 = vpop.permute.xlu1 %502  ;;  %v496_v31 = vpop.permute.xlu0 %495 }
  0xed   :  { %v310_v32 = vmul.f32 %v1252_v25, %v308_v28  ;;  %905 = vpush %v496_v31  ;;  %v44_v28 = vstv %s1146_s27  ;;  %v67_v31 = vstv %s1156_s7 }
  0xee   :  { %v304_v33 = vadd.f32 %v303_v27, %v281_v18  ;;  %907 = vpush %v503_v29  ;;  %s1261_s10 = spop %857  ;;  %v24_v27 = vstv %s1082_s30 }
  0xef   :  { %v311_v35 = vadd.f32 %v310_v32, %v288_v24  ;;  %s860_s11 = spop %859 }
  0xf0   :  { %v324_v37 = vstv %s860_s11  ;;  %v519_v38 = vpop.permute.xlu1 %518  ;;  %v510_v39 = vpop.permute.xlu0 %509 }
  0xf1   :  { %v326_v40 = vmul.f32 %v1259_v34, %v324_v37  ;;  %909 = vpush %v510_v39  ;;  %v46_v37 = vmul.f32 %v1152_v36, %v44_v28 }
  0xf2   :  { %911 = vpush %v519_v38  ;;  %s862_s13 = spop %861 }
  0xf3   :  { %v327_v41 = vadd.f32 %v326_v40, %v304_v33  ;;  %v331_v42 = vstv %s862_s13  ;;  %s1265_s15 = spop %863 }
  0xf4   :  { %v333_v44 = vmul.f32 %v1259_v34, %v331_v42  ;;  %v533_v46 = vpop.permute.xlu1 %532  ;;  %v526_v47 = vpop.permute.xlu0 %525  ;;  %v69_v42 = vmul.f32 %v1162_v45, %v67_v31 }
  0xf5   :  { %913 = vpush %v526_v47 }
  0xf6   :  { %v334_v48 = vadd.f32 %v333_v44, %v311_v35  ;;  %915 = vpush %v533_v46  ;;  %s866_s19 = spop %865  ;;  %v26_v35 = vmul.f32 %v24_v27, %v1087_v3  ;;  %v113_v46 = vstv %s1175_s17  ;;  %v1314_v3 = vld [vmem:[%s1450_s1 + $0x60] sm:$0xf]  ;;  %v271_v27 = vstv %s1243_s18 }
  0xf7   :  { %v347_v50 = vstv %s866_s19  ;;  %s868_s23 = spop %867 }
  0xf8   :  { %v349_v51 = vmul.f32 %v1270_v49, %v347_v50  ;;  %v354_v54 = vstv %s868_s23  ;;  %v549_v55 = vpop.permute.xlu1 %548  ;;  %v542_v56 = vpop.permute.xlu0 %541  ;;  %v47_v47 = vadd.f32 %v46_v37, %v26_v35  ;;  %v273_v37 = vmul.f32 %v1241_v12, %v271_v27 }
  0xf9   :  { %v356_v57 = vmul.f32 %v1270_v49, %v354_v54  ;;  %917 = vpush %v542_v56  ;;  %v136_v54 = vstv %s1189_s24 }
  0xfa   :  { %v350_v58 = vadd.f32 %v349_v51, %v327_v41  ;;  %919 = vpush %v549_v55  ;;  %s1279_s8 = spop %869  ;;  %v90_v41 = vstv %s1171_s14  ;;  %v70_v56 = vadd.f32 %v69_v42, %v47_v47  ;;  %v340_v42 = vstv %s1265_s15 }
  0xfb   :  { %v357_v60 = vadd.f32 %v356_v57, %v334_v48  ;;  %s872_s9 = spop %871  ;;  %v92_v48 = vmul.f32 %v1169_v53, %v90_v41  ;;  %v115_v57 = vmul.f32 %v1180_v1, %v113_v46  ;;  %v158_v53 = vstv %s1193_s29 }
  0xfc   :  { %v369_v61 = vstv %s872_s9  ;;  %v564_v62 = vpop.permute.xlu1 %563  ;;  %v556_v63 = vpop.permute.xlu0 %555 }
  0xfd   :  { %v371_v0 = vmul.f32 %v1277_v59, %v369_v61  ;;  %921 = vpush %v556_v63  ;;  %v138_v63 = vmul.f32 %v1187_v10, %v136_v54  ;;  %v772_v54 = vld [vmem:[%s1450_s1 + $0x80] sm:$0xf] }
  0xfe   :  { %923 = vpush %v564_v62  ;;  %s874_s11 = spop %873  ;;  %v93_v62 = vadd.f32 %v92_v48, %v70_v56 }
  0xff   :  { %v372_v4 = vadd.f32 %v371_v0, %v350_v58  ;;  %v376_v5 = vstv %s874_s11  ;;  %s1283_s13 = spop %875 }
 0x100   :  { %v378_v6 = vmul.f32 %v1277_v59, %v376_v5  ;;  %v578_v7 = vpop.permute.xlu1 %577  ;;  %v571_v8 = vpop.permute.xlu0 %570  ;;  %v116_v1 = vadd.f32 %v115_v57, %v93_v62 }
 0x101   :  { %925 = vpush %v571_v8 }
 0x102   :  { %v379_v9 = vadd.f32 %v378_v6, %v357_v60  ;;  %927 = vpush %v578_v7  ;;  %s878_s19 = spop %877  ;;  %v1324_v60 = vld [vmem:[%s1450_s1 + $0x68] sm:$0xf]  ;;  %v160_v6 = vmul.f32 %v158_v53, %v1198_v22  ;;  %v202_v7 = vstv %s1211_s16  ;;  %v248_v22 = vstv %s1229_s6 }
 0x103   :  { %v391_v13 = vstv %s878_s19  ;;  %s880_s23 = spop %879 }
 0x104   :  { %v393_v14 = vmul.f32 %v1288_v11, %v391_v13  ;;  %v398_v15 = vstv %s880_s23  ;;  %v593_v16 = vpop.permute.xlu1 %592  ;;  %v586_v17 = vpop.permute.xlu0 %585  ;;  %v139_v13 = vadd.f32 %v138_v63, %v116_v1 }
 0x105   :  { %v400_v18 = vmul.f32 %v1288_v11, %v398_v15  ;;  %929 = vpush %v586_v17  ;;  %v204_v17 = vmul.f32 %v1216_v43, %v202_v7 }
 0x106   :  { %v394_v19 = vadd.f32 %v393_v14, %v372_v4  ;;  %931 = vpush %v593_v16  ;;  %s1297_s9 = spop %881  ;;  %v180_v4 = vstv %s1207_s12  ;;  %v225_v16 = vstv %s1225_s26  ;;  %v161_v10 = vadd.f32 %v160_v6, %v139_v13 }
 0x107   :  { %v401_v21 = vadd.f32 %v400_v18, %v379_v9  ;;  %s884_s11 = spop %883  ;;  %v182_v14 = vmul.f32 %v1205_v30, %v180_v4  ;;  %v406_v53 = vstv %s1297_s9 }
 0x108   :  { %v413_v23 = vstv %s884_s11  ;;  %v608_v24 = vpop.permute.xlu1 %607  ;;  %v600_v26 = vpop.permute.xlu0 %599  ;;  %v408_v1 = vmul.f32 %v1295_v20, %v406_v53 }
 0x109   :  { %v415_v29 = vmul.f32 %v1295_v20, %v413_v23  ;;  %933 = vpush %v600_v26  ;;  %v183_v30 = vadd.f32 %v182_v14, %v161_v10  ;;  %v227_v23 = vmul.f32 %v1223_v52, %v225_v16  ;;  %v294_v52 = vstv %s1247_s21 }
 0x10a   :  { %935 = vpush %v608_v24  ;;  %s886_s19 = spop %885  ;;  %v296_v41 = vmul.f32 %v1252_v25, %v294_v52  ;;  %v384_v25 = vstv %s1283_s13 }
 0x10b   :  { %v416_v32 = vadd.f32 %v415_v29, %v394_v19  ;;  %v420_v33 = vstv %s886_s19  ;;  %s1307_s30 = spop %887  ;;  %v1344_v19 = vld [vmem:[%s1450_s1 + $0x70] sm:$0xf]  ;;  %v205_v28 = vadd.f32 %v204_v17, %v183_v30  ;;  %v250_v29 = vmul.f32 %v1234_v2, %v248_v22 }
 0x10c   :  { %v422_v38 = vmul.f32 %v1295_v20, %v420_v33  ;;  %v622_v39 = vpop.permute.xlu1 %621  ;;  %v615_v40 = vpop.permute.xlu0 %614  ;;  %v429_v4 = vstv %s1307_s30 }
 0x10d   :  { %937 = vpush %v615_v40  ;;  %v228_v35 = vadd.f32 %v227_v23, %v205_v28 }
 0x10e   :  { %v423_v44 = vadd.f32 %v422_v38, %v401_v21  ;;  %939 = vpush %v622_v39  ;;  %s890_s27 = spop %889  ;;  %v317_v39 = vstv %s1261_s10 }
 0x10f   :  { %v436_v36 = vstv %s890_s27  ;;  %s892_s22 = spop %891  ;;  %v251_v2 = vadd.f32 %v250_v29, %v228_v35  ;;  %v319_v47 = vmul.f32 %v1259_v34, %v317_v39 }
 0x110   :  { %v438_v50 = vmul.f32 %v1314_v3, %v436_v36  ;;  %v443_v51 = vstv %s892_s22  ;;  %v629_v45 = vpop.permute.xlu0 %628 }
 0x111   :  { %v445_v55 = vmul.f32 %v1314_v3, %v443_v51  ;;  %941 = vpush %v629_v45  ;;  %v274_v36 = vadd.f32 %v273_v37, %v251_v2  ;;  %v342_v51 = vmul.f32 %v1270_v49, %v340_v42  ;;  %v386_v49 = vmul.f32 %v1288_v11, %v384_v25 }
 0x112   :  { %v439_v58 = vadd.f32 %v438_v50, %v416_v32  ;;  %s1326_s23 = spop %893  ;;  %v1354_v32 = vld [vmem:[%s1450_s1 + $0x78] sm:$0xf]  ;;  %v362_v50 = vstv %s1279_s8  ;;  %v431_v11 = vmul.f32 %v1314_v3, %v429_v4  ;;  %v774_v3 = vld [vmem:[%s1450_s1 + $0x61] sm:$0xf] }
 0x113   :  { %v446_v61 = vadd.f32 %v445_v55, %v423_v44  ;;  %s896_s28 = spop %895  ;;  %v297_v12 = vadd.f32 %v296_v41, %v274_v36  ;;  %v364_v56 = vmul.f32 %v1277_v59, %v362_v50  ;;  %v452_v7 = vstv %s1326_s23 }
 0x114   :  { %v459_v0 = vstv %s896_s28  ;;  %v454_v10 = vmul.f32 %v1324_v60, %v452_v7 }
 0x115   :  { %v461_v5 = vmul.f32 %v1324_v60, %v459_v0  ;;  %v320_v34 = vadd.f32 %v319_v47, %v297_v12  ;;  %v773_v0 = vld [vmem:[%s1450_s1 + $0x88] sm:$0xf]  ;;  %v14_v12 = vlaneseq }
 0x116   :  { %s898_s24 = spop %897 }
 0x117   :  { %v462_v8 = vadd.f32 %v461_v5, %v439_v58  ;;  %v466_v9 = vstv %s898_s24  ;;  %s1337_s29 = spop %899  ;;  %v343_v62 = vadd.f32 %v342_v51, %v320_v34 }
 0x118   :  { %v468_v15 = vmul.f32 %v1324_v60, %v466_v9  ;;  %v475_v13 = vstv %s1337_s29 }
 0x119   :  { %v365_v59 = vadd.f32 %v364_v56, %v343_v62  ;;  %v477_v20 = vmul.f32 %v1344_v19, %v475_v13 }
 0x11a   :  { %v469_v18 = vadd.f32 %v468_v15, %v446_v61  ;;  %s902_s12 = spop %901 }
 0x11b   :  { %v482_v21 = vstv %s902_s12  ;;  %s904_s11 = spop %903  ;;  %v387_v9 = vadd.f32 %v386_v49, %v365_v59 }
 0x11c   :  { %v484_v24 = vmul.f32 %v1344_v19, %v482_v21  ;;  %v489_v26 = vstv %s904_s11 }
 0x11d   :  { %v491_v43 = vmul.f32 %v1344_v19, %v489_v26  ;;  %v409_v16 = vadd.f32 %v408_v1, %v387_v9  ;;  %v775_v19 = vld [vmem:[%s1450_s1 + $0x69] sm:$0xf] }
 0x11e   :  { %v485_v31 = vadd.f32 %v484_v24, %v462_v8  ;;  %s1356_s19 = spop %905 }
 0x11f   :  { %v492_v33 = vadd.f32 %v491_v43, %v469_v18  ;;  %s908_s27 = spop %907  ;;  %v498_v18 = vstv %s1356_s19  ;;  %v432_v22 = vadd.f32 %v431_v11, %v409_v16 }
 0x120   :  { %v505_v38 = vstv %s908_s27  ;;  %v500_v26 = vmul.f32 %v1354_v32, %v498_v18 }
 0x121   :  { %v507_v40 = vmul.f32 %v1354_v32, %v505_v38  ;;  %v455_v24 = vadd.f32 %v454_v10, %v432_v22 }
 0x122   :  { %s910_s18 = spop %909 }
 0x123   :  { %v508_v44 = vadd.f32 %v507_v40, %v485_v31  ;;  %v512_v46 = vstv %s910_s18  ;;  %s1367_s21 = spop %911  ;;  %v478_v29 = vadd.f32 %v477_v20, %v455_v24 }
 0x124   :  { %v514_v48 = vmul.f32 %v1354_v32, %v512_v46  ;;  %v521_v30 = vstv %s1367_s21  ;;  %v776_v46 = vld [vmem:[%s1450_s1 + $0x71] sm:$0xf] }
 0x125   :  { %v523_v31 = vmul.f32 %v772_v54, %v521_v30  ;;  %v501_v37 = vadd.f32 %v500_v26, %v478_v29 }
 0x126   :  { %v515_v45 = vadd.f32 %v514_v48, %v492_v33  ;;  %s914_s10 = spop %913 }
 0x127   :  { %v528_v55 = vstv %s914_s10  ;;  %s916_s20 = spop %915  ;;  %v524_v2 = vadd.f32 %v523_v31, %v501_v37 }
 0x128   :  { %v530_v57 = vmul.f32 %v772_v54, %v528_v55  ;;  %v535_v58 = vstv %s916_s20 }
 0x129   :  { %v537_v61 = vmul.f32 %v772_v54, %v535_v58  ;;  %v1402_v58 = vand.u32 127, %v14_v12 }
 0x12a   :  { %v531_v63 = vadd.f32 %v530_v57, %v508_v44  ;;  %s1380_s22 = spop %917 }
 0x12b   :  { %v538_v5 = vadd.f32 %v537_v61, %v515_v45  ;;  %s920_s14 = spop %919  ;;  %v544_v43 = vstv %s1380_s22  ;;  %vm19_vm0 = vcmp.lt.s32.totalorder %v1402_v58, 8 }
 0x12c   :  { %v551_v6 = vstv %s920_s14  ;;  %v546_v38 = vmul.f32 %v773_v0, %v544_v43 }
 0x12d   :  { %v553_v8 = vmul.f32 %v773_v0, %v551_v6  ;;  %v661_v6 = vld [vmem:[%s1449_s0 + $0x1] sm:$0x1] }
 0x12e   :  { %s922_s9 = spop %921  ;;  %v547_v36 = vadd.f32 %v546_v38, %v524_v2 }
 0x12f   :  { %v554_v14 = vadd.f32 %v553_v8, %v531_v63  ;;  %v558_v15 = vstv %s922_s9  ;;  %s924_s30 = spop %923 }
 0x130   :  { %v560_v17 = vmul.f32 %v773_v0, %v558_v15  ;;  %v566_v33 = vstv %s924_s30 }
 0x131   :  { %v568_v41 = vmul.f32 %v774_v3, %v566_v33 }
 0x132   :  { %v561_v21 = vadd.f32 %v560_v17, %v538_v5  ;;  %s926_s17 = spop %925 }
 0x133   :  { %v573_v23 = vstv %s926_s17  ;;  %s928_s24 = spop %927  ;;  %v569_v51 = vadd.f32 %v568_v41, %v547_v36 }
 0x134   :  { %v575_v60 = vmul.f32 %v774_v3, %v573_v23  ;;  %v580_v27 = vstv %s928_s24 }
 0x135   :  { %v582_v28 = vmul.f32 %v774_v3, %v580_v27 }
 0x136   :  { %v576_v52 = vadd.f32 %v575_v60, %v554_v14  ;;  %s930_s5 = spop %929 }
 0x137   :  { %v583_v35 = vadd.f32 %v582_v28, %v561_v21  ;;  %s932_s16 = spop %931  ;;  %v588_v40 = vstv %s930_s5  ;;  %v696_v28 = vld [vmem:[%s1449_s0 + $0x2] sm:$0x1] }
 0x138   :  { %v595_v39 = vstv %s932_s16  ;;  %v590_v47 = vmul.f32 %v775_v19, %v588_v40 }
 0x139   :  { %v597_v32 = vmul.f32 %v775_v19, %v595_v39 }
 0x13a   :  { %s934_s11 = spop %933  ;;  %v591_v55 = vadd.f32 %v590_v47, %v569_v51 }
 0x13b   :  { %v598_v42 = vadd.f32 %v597_v32, %v576_v52  ;;  %v602_v44 = vstv %s934_s11  ;;  %s936_s19 = spop %935 }
 0x13c   :  { %v604_v48 = vmul.f32 %v775_v19, %v602_v44  ;;  %v610_v50 = vstv %s936_s19 }
 0x13d   :  { %v612_v25 = vmul.f32 %v776_v46, %v610_v50 }
 0x13e   :  { %v605_v45 = vadd.f32 %v604_v48, %v583_v35  ;;  %s938_s27 = spop %937 }
 0x13f   :  { %v617_v54 = vstv %s938_s27  ;;  %s940_s18 = spop %939  ;;  %v613_v53 = vadd.f32 %v612_v25, %v591_v55 }
 0x140   :  { %v619_v34 = vmul.f32 %v776_v46, %v617_v54  ;;  %v624_v56 = vstv %s940_s18 }
 0x141   :  { %v626_v57 = vmul.f32 %v776_v46, %v624_v56 }
 0x142   :  { %s942_s1 = spop %941  ;;  %v620_v61 = vadd.f32 %v619_v34, %v598_v42 }
 0x143   :  { %v631_v62 = vstv %s942_s1  ;;  %v1404_v49 = vadd.f32 %v626_v57, %v605_v45 }
 0x144   :  { %v633_v63 = vadd.f32 %v631_v62, %v613_v53 }
 0x146   :  { %v634_v0 = vmax.f32 %v633_v63, 0.0 }
 0x148   :  { %635 = vst [vmem:[%s1451_s2] sm:$0xf] %v634_v0  ;;  %v636_v4 = vsel %vm19_vm0, %v634_v0, 0.0 }
 0x149   :  { %v638_v5 = vsel %vm637_vm1, %v636_v4, 0.0  ;;  %v649_v59 = vmul.f32 %v636_v4, %v636_v4 }
 0x14a   :  { %639 = vadd.xlane.f32.xlu1 %v638_v5 }
 0x14b   :  { %v650_v1 = vsel %vm637_vm1, %v649_v59, 0.0 }
 0x14c   :  { %651 = vadd.xlane.f32.xlu0 %v650_v1 }
 0x162   :  { %663 = vrot.lane.b32.xlu0 %v661_v6, %s1012_s25 }
 0x1d7   :  { %v640_v7 = vpop.xlane.xlu1 %639 }
 0x1d8   :  { %v641_v8 = vrot.slane %v640_v7, 4 }
 0x1d9   :  { %v652_v9 = vpop.xlane.xlu0 %651 }
 0x1da   :  { %v642_v11 = vadd.f32 %v641_v8, %v640_v7  ;;  %v653_v13 = vrot.slane %v652_v9, 4 }
 0x1dc   :  { %v643_v14 = vrot.slane %v642_v11, 2  ;;  %v654_v15 = vadd.f32 %v653_v13, %v652_v9 }
 0x1dd   :  { %v664_v21 = vpop.permute.xlu0 %663 }
 0x1de   :  { %v655_v16 = vrot.slane %v654_v15, 2  ;;  %v644_v10 = vadd.f32 %v643_v14, %v642_v11 }
 0x1e0   :  { %v645_v17 = vrot.slane %v644_v10, 1  ;;  %v656_v18 = vadd.f32 %v655_v16, %v654_v15 }
 0x1e2   :  { %v646_v22 = vadd.f32 %v645_v17, %v644_v10  ;;  %v657_v20 = vrot.slane %v656_v18, 1 }
 0x1e4   :  { %943 = vpush %v646_v22  ;;  %v658_v30 = vadd.f32 %v657_v20, %v656_v18 }
 0x1e6   :  { %945 = vpush %v658_v30 }
 0x1e7   :  { %947 = vpush %v664_v21 }
 0x215   :  { %s1418_s20 = spop %943 }
 0x216   :  { %v648_v46 = vstv %s1418_s20 }
 0x217   :  { %s1420_s8 = spop %945 }
 0x218   :  { %s948_s13 = spop %947  ;;  %v660_v48 = vstv %s1420_s8 }
 0x219   :  { %v666_v3 = vstv %s948_s13 }
 0x21a   :  { %v668_v23 = vadd.f32 %v666_v3, %v620_v61 }
 0x21c   :  { %v669_v24 = vmax.f32 %v668_v23, 0.0 }
 0x21e   :  { %777 = vst [vmem:[%s1451_s2 + $0x4] sm:$0xf] %v669_v24  ;;  %v672_v26 = vsel %vm19_vm0, %v669_v24, 0.0 }
 0x21f   :  { %v673_v60 = vsel %vm637_vm1, %v672_v26, 0.0  ;;  %v684_v27 = vmul.f32 %v672_v26, %v672_v26 }
 0x220   :  { %674 = vadd.xlane.f32.xlu1 %v673_v60 }
 0x221   :  { %v685_v43 = vsel %vm637_vm1, %v684_v27, 0.0 }
 0x224   :  { %686 = vadd.xlane.f32.xlu1 %v685_v43 }
 0x235   :  { %698 = vrot.lane.b32.xlu1 %v696_v28, %s1012_s25 }
 0x2ad   :  { %v675_v29 = vpop.xlane.xlu1 %674 }
 0x2ae   :  { %v676_v31 = vrot.slane %v675_v29, 4 }
 0x2b0   :  { %v677_v52 = vadd.f32 %v676_v31, %v675_v29 }
 0x2b1   :  { %v687_v19 = vpop.xlane.xlu1 %686 }
 0x2b2   :  { %v678_v33 = vrot.slane %v677_v52, 2  ;;  %v688_v35 = vrot.slane %v687_v19, 4 }
 0x2b4   :  { %v689_v37 = vadd.f32 %v688_v35, %v687_v19  ;;  %v679_v38 = vadd.f32 %v678_v33, %v677_v52 }
 0x2b5   :  { %v699_v42 = vpop.permute.xlu1 %698 }
 0x2b6   :  { %v690_v39 = vrot.slane %v689_v37, 2  ;;  %v680_v40 = vrot.slane %v679_v38, 1 }
 0x2b8   :  { %v681_v32 = vadd.f32 %v680_v40, %v679_v38  ;;  %v691_v2 = vadd.f32 %v690_v39, %v689_v37 }
 0x2ba   :  { %949 = vpush %v681_v32  ;;  %v692_v41 = vrot.slane %v691_v2, 1 }
 0x2bc   :  { %v693_v44 = vadd.f32 %v692_v41, %v691_v2 }
 0x2be   :  { %951 = vpush %v693_v44 }
 0x2bf   :  { %953 = vpush %v699_v42 }
 0x2eb   :  { %s950_s0 = spop %949 }
 0x2ec   :  { %v683_v36 = vstv %s950_s0 }
 0x2ed   :  { %v732_v47 = vsel %vm731_vm2, %v648_v46, %v683_v36 }
 0x2ef   :  { %s952_s25 = spop %951 }
 0x2f0   :  { %v695_v50 = vstv %s952_s25  ;;  %s954_s17 = spop %953 }
 0x2f1   :  { %v737_v12 = vsel %vm731_vm2, %v660_v48, %v695_v50  ;;  %v701_v51 = vstv %s954_s17 }
 0x2f2   :  { %v703_v45 = vadd.f32 %v701_v51, %v1404_v49 }
 0x2f4   :  { %v704_v25 = vmax.f32 %v703_v45, 0.0 }
 0x2f6   :  { %778 = vst [vmem:[%s1451_s2 + $0x8] sm:$0xf] %v704_v25  ;;  %v707_v54 = vsel %vm19_vm0, %v704_v25, 0.0 }
 0x2f7   :  { %v708_v55 = vsel %vm637_vm1, %v707_v54, 0.0  ;;  %v719_v34 = vmul.f32 %v707_v54, %v707_v54 }
 0x2f8   :  { %709 = vadd.xlane.f32.xlu0 %v708_v55 }
 0x2f9   :  { %v720_v56 = vsel %vm637_vm1, %v719_v34, 0.0 }
 0x2fa   :  { %721 = vadd.xlane.f32.xlu1 %v720_v56 }
 0x385   :  { %v710_v57 = vpop.xlane.xlu0 %709 }
 0x386   :  { %v711_v53 = vrot.slane %v710_v57, 4 }
 0x387   :  { %v722_v61 = vpop.xlane.xlu1 %721 }
 0x388   :  { %v712_v62 = vadd.f32 %v711_v53, %v710_v57  ;;  %v723_v49 = vrot.slane %v722_v61, 4 }
 0x38a   :  { %v713_v63 = vrot.slane %v712_v62, 2  ;;  %v724_v0 = vadd.f32 %v723_v49, %v722_v61 }
 0x38c   :  { %v714_v4 = vadd.f32 %v713_v63, %v712_v62  ;;  %v725_v5 = vrot.slane %v724_v0, 2 }
 0x38e   :  { %v726_v59 = vadd.f32 %v725_v5, %v724_v0  ;;  %v715_v1 = vrot.slane %v714_v4, 1 }
 0x390   :  { %v716_v58 = vadd.f32 %v715_v1, %v714_v4  ;;  %v727_v6 = vrot.slane %v726_v59, 1 }
 0x392   :  { %955 = vpush %v716_v58  ;;  %v728_v7 = vadd.f32 %v727_v6, %v726_v59 }
 0x394   :  { %957 = vpush %v728_v7 }
 0x3c3   :  { %s956_s2 = spop %955 }
 0x3c4   :  { %v718_v8 = vstv %s956_s2 }
 0x3c5   :  { %v734_v9 = vsel %vm733_vm3, %v732_v47, %v718_v8  ;;  %s958_s24 = spop %957 }
 0x3c6   :  { %736 = vst.msk [vmem:[%s1452_s3] sm:$0x7] %vm735_vm4, %v734_v9  ;;  %v730_v11 = vstv %s958_s24 }
 0x3c7   :  { %v738_v13 = vsel %vm733_vm3, %v737_v12, %v730_v11 }
 0x3c8   :  { %739 = vst.msk [vmem:[%s1453_s4] sm:$0x7] %vm735_vm4, %v738_v13 }

</bundles_post_ra>
